<compile_context>
chip_gen: v6e
topology: v6e:2x2x1
jax: 0.10.0
libtpu: 0.0.40
codegen_flags: <defaults>
</compile_context>

<pallas_src>
import functools

import jax
import jax.numpy as jnp
from jax import lax
from jax.experimental import pallas as pl
from jax.experimental.pallas import tpu as pltpu

EPS = 1e-5
PAD = 3            # conbr_block hard-codes padding=3
WIN_EXTRA = 128    # per-tile window over-fetch, lane-tile aligned (>= 2*halo)


# -----------------------------------------------------------------------------
# In-kernel helpers (traced inline into each Pallas kernel).
# -----------------------------------------------------------------------------
def _window_dma(x_hbm, xbuf, sem, n, t, slot, *, T, WB):
    """DMA descriptor moving the x window of tile (n, t) into xbuf[slot]."""
    return pltpu.make_async_copy(
        x_hbm.at[n, :, pl.ds(t * T, WB)], xbuf.at[slot], sem.at[slot])


def _fetch_window(x_hbm, xbuf, sem, *, T, WB):
    """Manually double-buffered pipeline of the overlapped x window (pattern P4).

    Primes at t == 0 of every batch row (megacore-safe: only the batch axis is
    marked "parallel"), prefetches tile t+1 while tile t is being consumed.
    Returns the (C_in, WB) window; column j holds x[n, :, t*T - halo + j]
    (zeros outside [0, L)).
    """
    n, t = pl.program_id(0), pl.program_id(1)
    num_t = pl.num_programs(1)
    slot = t % 2

    @pl.when(t == 0)
    def _():                      # prime the first tile of this batch row
        _window_dma(x_hbm, xbuf, sem, n, t, slot, T=T, WB=WB).start()

    @pl.when(t + 1 < num_t)
    def _():                      # prefetch the next tile
        _window_dma(x_hbm, xbuf, sem, n, t + 1, (t + 1) % 2, T=T, WB=WB).start()

    _window_dma(x_hbm, xbuf, sem, n, t, slot, T=T, WB=WB).wait()
    return xbuf[slot]


def _conv_taps(xw, wf, *, K, d, base, width, fuse):
    """Dilated conv over an in-VMEM window.

    xw : (C_in, >= base + (K-1)*d + width), compute dtype.
    wf : (C_out, K*C_in) fused weights, wf[o, k*C_in + c] = w[o, c, k].
    out: (C_out, width) f32, out[:, i] = sum_{k,c} w[o,c,k] * xw[c, base+i+k*d].

    fuse=True  -> one MXU matmul on the (K*C_in, width) stacked operand
                  (only used when the sublane stacking is tile-aligned).
    fuse=False -> K accumulated matmuls (same weight layout, sliced per tap).
    """
    C = xw.shape[0]
    taps = [xw[:, base + k * d: base + k * d + width] for k in range(K)]
    if fuse:
        stacked = taps[0] if K == 1 else jnp.concatenate(taps, axis=0)
        return jnp.dot(wf, stacked, preferred_element_type=jnp.float32)
    acc = jnp.dot(wf[:, :C], taps[0], preferred_element_type=jnp.float32)
    for k in range(1, K):
        acc = acc + jnp.dot(wf[:, k * C:(k + 1) * C], taps[k],
                            preferred_element_type=jnp.float32)
    return acc


def _valid_cols(t, T, L):
    """(1, T) mask of output columns of this tile that map to l < L."""
    col = lax.broadcasted_iota(jnp.int32, (1, T), 1)
    return (t * T + col) < L


def _y1_window(xw, w1s, sh1, t, *, K, d, T, L, fuse1):
    """relu(bn1(conv1(x))) on the extended range conv2 needs for this tile.

    w1s already has the BN1 scale folded in; sh1 is the BN1 shift.  Columns that
    fall outside conv1's valid output range [0, L) are zeroed (that is conv2's
    implicit zero padding of y1).  Returned in the matmul compute dtype.
    """
    halo = d * (K - 1)
    c1 = _conv_taps(xw, w1s, K=K, d=d, base=0, width=T + halo, fuse=fuse1)
    y1 = jnp.maximum(c1 + sh1, 0.0)
    j = lax.broadcasted_iota(jnp.int32, (1, T + halo), 1)
    l1 = t * T - PAD + j
    y1 = jnp.where((l1 >= 0) & (l1 < L), y1, 0.0)
    return y1.astype(xw.dtype)


# -----------------------------------------------------------------------------
# Kernels
# -----------------------------------------------------------------------------
def _conv1_stats_kernel(x_hbm, w1r_ref, sum_ref, sq_ref, xbuf, sem,
                        *, K, d, T, L, WB, fuse1, fuse2):
    t = pl.program_id(1)
    xw = _fetch_window(x_hbm, xbuf, sem, T=T, WB=WB)

    @pl.when(t == 0)
    def _():
        sum_ref[...] = jnp.zeros_like(sum_ref)
        sq_ref[...] = jnp.zeros_like(sq_ref)

    conv = _conv_taps(xw, w1r_ref[...], K=K, d=d, base=PAD, width=T, fuse=fuse1)
    conv = jnp.where(_valid_cols(t, T, L), conv, 0.0)
    sum_ref[...] += jnp.sum(conv, axis=1, keepdims=True)
    sq_ref[...] += jnp.sum(conv * conv, axis=1, keepdims=True)


def _conv2_stats_kernel(x_hbm, w1s_ref, sh1_ref, w2r_ref, sum_ref, sq_ref,
                        xbuf, sem, *, K, d, T, L, WB, fuse1, fuse2):
    t = pl.program_id(1)
    xw = _fetch_window(x_hbm, xbuf, sem, T=T, WB=WB)

    @pl.when(t == 0)
    def _():
        sum_ref[...] = jnp.zeros_like(sum_ref)
        sq_ref[...] = jnp.zeros_like(sq_ref)

    y1 = _y1_window(xw, w1s_ref[...], sh1_ref[...], t,
                    K=K, d=d, T=T, L=L, fuse1=fuse1)
    y2p = _conv_taps(y1, w2r_ref[...], K=K, d=d, base=0, width=T, fuse=fuse2)
    y2p = jnp.where(_valid_cols(t, T, L), y2p, 0.0)
    sum_ref[...] += jnp.sum(y2p, axis=1, keepdims=True)
    sq_ref[...] += jnp.sum(y2p * y2p, axis=1, keepdims=True)


def _pool_kernel(x_hbm, w1s_ref, sh1_ref, w2s_ref, sh2_ref, pool_ref,
                 xbuf, sem, *, K, d, T, L, WB, fuse1, fuse2):
    t = pl.program_id(1)
    xw = _fetch_window(x_hbm, xbuf, sem, T=T, WB=WB)

    @pl.when(t == 0)
    def _():
        pool_ref[...] = jnp.zeros_like(pool_ref)

    y1 = _y1_window(xw, w1s_ref[...], sh1_ref[...], t,
                    K=K, d=d, T=T, L=L, fuse1=fuse1)
    y2 = jnp.maximum(
        _conv_taps(y1, w2s_ref[...], K=K, d=d, base=0, width=T, fuse=fuse2)
        + sh2_ref[...], 0.0)
    y2 = jnp.where(_valid_cols(t, T, L), y2, 0.0)
    pool_ref[...] += jnp.sum(y2, axis=1, keepdims=True)


def _residual_out_kernel(x_hbm, xres_ref, w1s_ref, sh1_ref, w2s_ref, sh2_ref,
                         gate_ref, o_ref, xbuf, sem,
                         *, K, d, T, L, WB, fuse1, fuse2):
    t = pl.program_id(1)
    xw = _fetch_window(x_hbm, xbuf, sem, T=T, WB=WB)
    y1 = _y1_window(xw, w1s_ref[...], sh1_ref[...], t,
                    K=K, d=d, T=T, L=L, fuse1=fuse1)
    y2 = jnp.maximum(
        _conv_taps(y1, w2s_ref[...], K=K, d=d, base=0, width=T, fuse=fuse2)
        + sh2_ref[...], 0.0)
    # Columns >= L are garbage but are sliced off in the wrapper.
    o_ref[...] = xres_ref[...] + y2 + gate_ref[...]


# -----------------------------------------------------------------------------
# Wrapper
# -----------------------------------------------------------------------------
@functools.partial(jax.jit,
                   static_argnames=("kernel_size", "dilation", "max_tile",
                                    "compute_dtype"))
def re_block_forward(x, params, *, kernel_size, dilation, max_tile=1024,
                     compute_dtype=jnp.bfloat16):
    """Pallas TPU forward of re_block: x + se_block(cbr2(cbr1(x))).  x: (N, C, L) f32."""
    N, C_in, L = x.shape
    K, d = kernel_size, dilation
    halo = d * (K - 1)
    if halo != 2 * PAD:
        raise ValueError("re_block residual needs dilation*(kernel_size-1) == 2*padding == 6")
    cdt = jnp.dtype(compute_dtype)

    w1, g1, be1 = params["w1"], params["gamma1"], params["beta1"]
    w2, g2, be2 = params["w2"], params["gamma2"], params["beta2"]
    w_se1, b_se1 = params["w_se1"], params["b_se1"]
    w_se2, b_se2 = params["w_se2"], params["b_se2"]
    C1, C2 = w1.shape[0], w2.shape[0]
    assert w1.shape == (C1, C_in, K) and w2.shape == (C2, C1, K)
    assert C2 == C_in, "residual add requires out_layer == in_layer"
    # NOTE: cbr1/cbr2 Conv1d biases cancel exactly under training-mode BatchNorm,
    # so they are intentionally never sent to the kernels.

    # ---- tiling over the length (lane) axis ---------------------------------
    T = min(max_tile, 128 * pl.cdiv(L, 128))      # lane-dense, multiple of 128
    T_l = pl.cdiv(L, T)
    Lp = T_l * T
    WB = T + WIN_EXTRA                            # per-tile window (lane-aligned)
    assert WB >= T + 2 * halo

    # x_c[n, :, j] == x[n, :, j - halo]  (zeros outside [0, L)), compute dtype.
    # This single pad+cast copy replaces the old overlapping-window gather; each
    # pass DMAs its own tile windows straight out of it.
    x_c = jnp.pad(x, ((0, 0), (0, 0),
                      (halo, (Lp - L) + (WIN_EXTRA - halo)))).astype(cdt)
    # exact f32 residual term, read once (by the final pass only)
    x_res = jnp.pad(x, ((0, 0), (0, 0), (0, Lp - L))) if Lp != L else x

    # fused conv weights: wf[o, k*C_in + c] = w[o, c, k]
    w1f = jnp.transpose(w1, (0, 2, 1)).reshape(C1, K * C_in).astype(jnp.float32)
    w2f = jnp.transpose(w2, (0, 2, 1)).reshape(C2, K * C1).astype(jnp.float32)
    w1r = w1f.astype(cdt)                         # raw weights (pass 1 stats)
    w2r = w2f.astype(cdt)                         # raw weights (pass 2 stats)

    # Fuse the K taps into one matmul only when the sublane stacking is aligned
    # to the dtype's packing (8 rows for f32, 16 for bf16); fall back otherwise.
    rows_per_tile = 8 * (4 // cdt.itemsize)
    fuse1 = (C_in % rows_per_tile) == 0
    fuse2 = (C1 % rows_per_tile) == 0

    grid = (N, T_l)
    kb = dict(K=K, d=d, T=T, L=L, WB=WB, fuse1=fuse1, fuse2=fuse2)
    xany = pl.BlockSpec(memory_space=pl.ANY)
    w1_spec = pl.BlockSpec((C1, K * C_in), lambda n, t: (0, 0))
    w2_spec = pl.BlockSpec((C2, K * C1), lambda n, t: (0, 0))
    col1 = pl.BlockSpec((C1, 1), lambda n, t: (0, 0))
    col2 = pl.BlockSpec((C2, 1), lambda n, t: (0, 0))
    per_n1 = pl.BlockSpec((None, C1, 1), lambda n, t: (n, 0, 0))
    per_n2 = pl.BlockSpec((None, C2, 1), lambda n, t: (n, 0, 0))
    lane_nc = pl.BlockSpec((None, C2, T), lambda n, t: (n, 0, t))
    scratch = [pltpu.VMEM((2, C_in, WB), cdt),      # double-buffered x window
               pltpu.SemaphoreType.DMA((2,))]
    cparams = pltpu.CompilerParams(
        dimension_semantics=("parallel", "arbitrary"),   # batch / length axis
        vmem_limit_bytes=32 * 1024 * 1024)               # headroom on v7x 64 MiB

    cnt = float(N * L)

    # ---- pass 1: global batch stats of conv1 --------------------------------
    s1, q1 = pl.pallas_call(
        functools.partial(_conv1_stats_kernel, **kb),
        grid=grid,
        in_specs=[xany, w1_spec],
        out_specs=(per_n1, per_n1),
        out_shape=(jax.ShapeDtypeStruct((N, C1, 1), jnp.float32),) * 2,
        scratch_shapes=scratch,
        compiler_params=cparams,
    )(x_c, w1r)

    # Single-pass E[x^2]-E[x]^2 in f32 (fine at these magnitudes; consider
    # compensated/centered accumulation for very long L / large activations).
    mean1 = jnp.sum(s1, axis=0)[:, 0] / cnt
    var1 = jnp.sum(q1, axis=0)[:, 0] / cnt - mean1 * mean1
    sc1 = g1 * lax.rsqrt(var1 + EPS)
    sh1 = (be1 - mean1 * sc1).reshape(C1, 1).astype(jnp.float32)
    w1s = (w1f * sc1[:, None]).astype(cdt)        # BN1 scale folded into conv1

    # ---- pass 2: global batch stats of conv2(relu(bn1(conv1(x)))) -----------
    s2, q2 = pl.pallas_call(
        functools.partial(_conv2_stats_kernel, **kb),
        grid=grid,
        in_specs=[xany, w1_spec, col1, w2_spec],
        out_specs=(per_n2, per_n2),
        out_shape=(jax.ShapeDtypeStruct((N, C2, 1), jnp.float32),) * 2,
        scratch_shapes=scratch,
        compiler_params=cparams,
    )(x_c, w1s, sh1, w2r)

    mean2 = jnp.sum(s2, axis=0)[:, 0] / cnt
    var2 = jnp.sum(q2, axis=0)[:, 0] / cnt - mean2 * mean2
    sc2 = g2 * lax.rsqrt(var2 + EPS)
    sh2 = (be2 - mean2 * sc2).reshape(C2, 1).astype(jnp.float32)
    w2s = (w2f * sc2[:, None]).astype(cdt)        # BN2 scale folded into conv2

    # ---- pass 3: SE global average pool of y2 -------------------------------
    pool = pl.pallas_call(
        functools.partial(_pool_kernel, **kb),
        grid=grid,
        in_specs=[xany, w1_spec, col1, w2_spec, col2],
        out_specs=per_n2,
        out_shape=jax.ShapeDtypeStruct((N, C2, 1), jnp.float32),
        scratch_shapes=scratch,
        compiler_params=cparams,
    )(x_c, w1s, sh1, w2s, sh2)

    pooled = pool / float(L)                      # == adaptive_avg_pool1d(y2, 1)

    # SE squeeze-excite MLP on (N, C2) scalars — tiny wrapper glue.
    hid = jnp.maximum(
        jnp.einsum("rc,ncx->nrx", w_se1[:, :, 0], pooled) + b_se1[None, :, None],
        0.0)
    gate = jax.nn.sigmoid(
        jnp.einsum("cr,nrx->ncx", w_se2[:, :, 0], hid) + b_se2[None, :, None])
    gate = gate.astype(jnp.float32)               # (N, C2, 1)

    # ---- pass 4: recompute y2 per tile, emit x + y2 + gate (lane-dense f32) --
    out_p = pl.pallas_call(
        functools.partial(_residual_out_kernel, **kb),
        grid=grid,
        in_specs=[xany, lane_nc, w1_spec, col1, w2_spec, col2, per_n2],
        out_specs=lane_nc,
        out_shape=jax.ShapeDtypeStruct((N, C2, Lp), jnp.float32),
        scratch_shapes=scratch,
        compiler_params=cparams,
    )(x_c, x_res, w1s, sh1, w2s, sh2, gate)

    return out_p[:, :, :L] if Lp != L else out_p


# -----------------------------------------------------------------------------
# Pure-JAX reference mirroring the PyTorch module (training-mode BatchNorm)
# -----------------------------------------------------------------------------
def _cbr_ref(x, w, b, gamma, beta, *, dilation):
    conv = lax.conv_general_dilated(
        x, w, window_strides=(1,), padding=[(PAD, PAD)],
        rhs_dilation=(dilation,), dimension_numbers=("NCH", "OIH", "NCH"))
    conv = conv + b[None, :, None]
    mean = jnp.mean(conv, axis=(0, 2), keepdims=True)
    var = jnp.mean((conv - mean) ** 2, axis=(0, 2), keepdims=True)
    y = gamma[None, :, None] * (conv - mean) / jnp.sqrt(var + EPS) + beta[None, :, None]
    return jnp.maximum(y, 0.0)


def re_block_reference(x, p, *, dilation):
    y1 = _cbr_ref(x, p["w1"], p["b1"], p["gamma1"], p["beta1"], dilation=dilation)
    y2 = _cbr_ref(y1, p["w2"], p["b2"], p["gamma2"], p["beta2"], dilation=dilation)
    pooled = jnp.mean(y2, axis=2, keepdims=True)
    hid = jnp.maximum(jnp.einsum("rc,ncx->nrx", p["w_se1"][:, :, 0], pooled)
                      + p["b_se1"][None, :, None], 0.0)
    gate = jax.nn.sigmoid(jnp.einsum("cr,nrx->ncx", p["w_se2"][:, :, 0], hid)
                          + p["b_se2"][None, :, None])
    return x + y2 + gate


if __name__ == "__main__":
    # re_block(in_layer=8, out_layer=8, kernel_size=7, dilation=1):
    # dilation*(K-1) == 6 == 2*padding, so L_out == L and the residual is valid.
    N, C, L = 2, 8, 16
    K, dilation = 7, 1
    C_r = C // 8

    key = jax.random.PRNGKey(0)
    ks = jax.random.split(key, 16)

    def uinit(k, shape, fan_in):
        bound = 1.0 / (fan_in ** 0.5)
        return jax.random.uniform(k, shape, minval=-bound, maxval=bound,
                                  dtype=jnp.float32)

    x = jax.random.normal(ks[0], (N, C, L), dtype=jnp.float32)
    params = dict(
        w1=uinit(ks[1], (C, C, K), C * K),
        b1=uinit(ks[2], (C,), C * K),
        gamma1=1.0 + 0.1 * jax.random.normal(ks[3], (C,), dtype=jnp.float32),
        beta1=0.1 * jax.random.normal(ks[4], (C,), dtype=jnp.float32),
        w2=uinit(ks[5], (C, C, K), C * K),
        b2=uinit(ks[6], (C,), C * K),
        gamma2=1.0 + 0.1 * jax.random.normal(ks[7], (C,), dtype=jnp.float32),
        beta2=0.1 * jax.random.normal(ks[8], (C,), dtype=jnp.float32),
        w_se1=uinit(ks[9], (C_r, C, 1), C),
        b_se1=uinit(ks[10], (C_r,), C),
        w_se2=uinit(ks[11], (C, C_r, 1), C_r),
        b_se2=uinit(ks[12], (C,), C_r),
    )

    ref = jax.block_until_ready(re_block_reference(x, params, dilation=dilation))

    # Default fast path: bf16 MXU operands, f32 statistics / accumulation.
    out_bf16 = jax.block_until_ready(
        re_block_forward(x, params, kernel_size=K, dilation=dilation))
    assert out_bf16.shape == ref.shape == (N, C, L), (out_bf16.shape, ref.shape)
    assert jnp.allclose(out_bf16, ref, rtol=8e-2, atol=8e-2), \
        float(jnp.max(jnp.abs(out_bf16 - ref)))

    # Exact path: everything in f32, tight tolerance vs the BatchNorm reference.
    out_f32 = jax.block_until_ready(
        re_block_forward(x, params, kernel_size=K, dilation=dilation,
                         compute_dtype=jnp.float32))
    assert jnp.allclose(out_f32, ref, rtol=1e-4, atol=1e-4), \
        float(jnp.max(jnp.abs(out_f32 - ref)))

    print("KERNEL_OK")
</pallas_src>

<mosaic_0001>
module attributes {stable_mosaic.version = 11 : i64} {
  func.func @_conv1_stats_kernel(%arg0: i32, %arg1: i32, %arg2: memref<2x8x256xbf16, #tpu.memory_space<any>>, %arg3: memref<8x56xbf16, #tpu.memory_space<vmem>>, %arg4: memref<1x8x1xf32, #tpu.memory_space<vmem>>, %arg5: memref<1x8x1xf32, #tpu.memory_space<vmem>>, %arg6: memref<2x8x256xbf16, #tpu.memory_space<vmem>>, %arg7: memref<2x!tpu.dma_semaphore, #tpu.memory_space<semaphore_mem>>) attributes {dimension_semantics = [#tpu.dimension_semantics<parallel>, #tpu.dimension_semantics<arbitrary>], iteration_bounds = array<i64: 2, 1>, scalar_prefetch = 0 : i64, scratch_operands = 2 : i64, tpu.core_type = #tpu.core_type<tc>, window_params = [{}, {pipeline_mode = #tpu.pipeline_mode<synchronous>, transform_indices = @transform_1, window_bounds = array<i64: 8, 56>}, {transform_indices = @transform_2, window_bounds = array<i64: 1, 8, 1>}, {transform_indices = @transform_3, window_bounds = array<i64: 1, 8, 1>}]} {
    %c2_i32 = arith.constant 2 : i32
    %c0_i32 = arith.constant 0 : i32
    %0 = arith.cmpi eq, %c2_i32, %c0_i32 : i32
    %c1_i32 = arith.constant 1 : i32
    %1 = arith.select %0, %c1_i32, %c2_i32 : i32
    %2 = arith.remsi %arg1, %1 : i32
    %c0_i32_0 = arith.constant 0 : i32
    %3 = arith.cmpi ne, %2, %c0_i32_0 : i32
    %c0_i32_1 = arith.constant 0 : i32
    %4 = arith.cmpi slt, %2, %c0_i32_1 : i32
    %c0_i32_2 = arith.constant 0 : i32
    %5 = arith.cmpi slt, %1, %c0_i32_2 : i32
    %6 = arith.xori %4, %5 : i1
    %7 = arith.andi %6, %3 : i1
    %8 = arith.addi %2, %1 : i32
    %9 = arith.select %7, %8, %2 : i32
    %c0_i32_3 = arith.constant 0 : i32
    %10 = arith.cmpi eq, %arg1, %c0_i32_3 : i32
    %11 = arith.extui %10 : i1 to i32
    %c0_i32_4 = arith.constant 0 : i32
    %12 = arith.cmpi ne, %11, %c0_i32_4 : i32
    scf.if %12 {
      %c128_i32_38 = arith.constant 128 : i32
      %85 = arith.muli %arg1, %c128_i32_38 : i32
      %c0_i32_39 = arith.constant 0 : i32
      %86 = tpu.memref_slice %arg2[%arg0, %c0_i32_39, %85] : memref<2x8x256xbf16, #tpu.memory_space<any>> -> memref<1x8x256xbf16, #tpu.memory_space<any>>
      %87 = tpu.memref_squeeze %86 : memref<1x8x256xbf16, #tpu.memory_space<any>> -> memref<8x256xbf16, #tpu.memory_space<any>>
      %c0_i32_40 = arith.constant 0 : i32
      %c0_i32_41 = arith.constant 0 : i32
      %88 = tpu.memref_slice %arg6[%9, %c0_i32_40, %c0_i32_41] : memref<2x8x256xbf16, #tpu.memory_space<vmem>> -> memref<1x8x256xbf16, #tpu.memory_space<vmem>>
      %89 = tpu.memref_squeeze %88 : memref<1x8x256xbf16, #tpu.memory_space<vmem>> -> memref<8x256xbf16, #tpu.memory_space<vmem>>
      %90 = tpu.memref_slice %arg7[%9] : memref<2x!tpu.dma_semaphore, #tpu.memory_space<semaphore_mem>> -> memref<1x!tpu.dma_semaphore, #tpu.memory_space<semaphore_mem>>
      %91 = tpu.memref_squeeze %90 : memref<1x!tpu.dma_semaphore, #tpu.memory_space<semaphore_mem>> -> memref<!tpu.dma_semaphore, #tpu.memory_space<semaphore_mem>>
      tpu.enqueue_dma source(%87 : memref<8x256xbf16, #tpu.memory_space<any>>) target(%89 : memref<8x256xbf16, #tpu.memory_space<vmem>>) target_semaphore(%91 : memref<!tpu.dma_semaphore, #tpu.memory_space<semaphore_mem>>)
    } else {
    }
    %c1_i32_5 = arith.constant 1 : i32
    %13 = arith.addi %arg1, %c1_i32_5 : i32
    %c1_i32_6 = arith.constant 1 : i32
    %14 = arith.cmpi slt, %13, %c1_i32_6 : i32
    %15 = arith.extui %14 : i1 to i32
    %c0_i32_7 = arith.constant 0 : i32
    %16 = arith.cmpi ne, %15, %c0_i32_7 : i32
    scf.if %16 {
      %c1_i32_38 = arith.constant 1 : i32
      %85 = arith.addi %arg1, %c1_i32_38 : i32
      %c1_i32_39 = arith.constant 1 : i32
      %86 = arith.addi %arg1, %c1_i32_39 : i32
      %c2_i32_40 = arith.constant 2 : i32
      %c0_i32_41 = arith.constant 0 : i32
      %87 = arith.cmpi eq, %c2_i32_40, %c0_i32_41 : i32
      %c1_i32_42 = arith.constant 1 : i32
      %88 = arith.select %87, %c1_i32_42, %c2_i32_40 : i32
      %89 = arith.remsi %86, %88 : i32
      %c0_i32_43 = arith.constant 0 : i32
      %90 = arith.cmpi ne, %89, %c0_i32_43 : i32
      %c0_i32_44 = arith.constant 0 : i32
      %91 = arith.cmpi slt, %89, %c0_i32_44 : i32
      %c0_i32_45 = arith.constant 0 : i32
      %92 = arith.cmpi slt, %88, %c0_i32_45 : i32
      %93 = arith.xori %91, %92 : i1
      %94 = arith.andi %93, %90 : i1
      %95 = arith.addi %89, %88 : i32
      %96 = arith.select %94, %95, %89 : i32
      %c128_i32_46 = arith.constant 128 : i32
      %97 = arith.muli %85, %c128_i32_46 : i32
      %c0_i32_47 = arith.constant 0 : i32
      %98 = tpu.memref_slice %arg2[%arg0, %c0_i32_47, %97] : memref<2x8x256xbf16, #tpu.memory_space<any>> -> memref<1x8x256xbf16, #tpu.memory_space<any>>
      %99 = tpu.memref_squeeze %98 : memref<1x8x256xbf16, #tpu.memory_space<any>> -> memref<8x256xbf16, #tpu.memory_space<any>>
      %c0_i32_48 = arith.constant 0 : i32
      %c0_i32_49 = arith.constant 0 : i32
      %100 = tpu.memref_slice %arg6[%96, %c0_i32_48, %c0_i32_49] : memref<2x8x256xbf16, #tpu.memory_space<vmem>> -> memref<1x8x256xbf16, #tpu.memory_space<vmem>>
      %101 = tpu.memref_squeeze %100 : memref<1x8x256xbf16, #tpu.memory_space<vmem>> -> memref<8x256xbf16, #tpu.memory_space<vmem>>
      %102 = tpu.memref_slice %arg7[%96] : memref<2x!tpu.dma_semaphore, #tpu.memory_space<semaphore_mem>> -> memref<1x!tpu.dma_semaphore, #tpu.memory_space<semaphore_mem>>
      %103 = tpu.memref_squeeze %102 : memref<1x!tpu.dma_semaphore, #tpu.memory_space<semaphore_mem>> -> memref<!tpu.dma_semaphore, #tpu.memory_space<semaphore_mem>>
      tpu.enqueue_dma source(%99 : memref<8x256xbf16, #tpu.memory_space<any>>) target(%101 : memref<8x256xbf16, #tpu.memory_space<vmem>>) target_semaphore(%103 : memref<!tpu.dma_semaphore, #tpu.memory_space<semaphore_mem>>)
    } else {
    }
    %c128_i32 = arith.constant 128 : i32
    %17 = arith.muli %arg1, %c128_i32 : i32
    %c0_i32_8 = arith.constant 0 : i32
    %18 = tpu.memref_slice %arg2[%arg0, %c0_i32_8, %17] : memref<2x8x256xbf16, #tpu.memory_space<any>> -> memref<1x8x256xbf16, #tpu.memory_space<any>>
    %19 = tpu.memref_squeeze %18 : memref<1x8x256xbf16, #tpu.memory_space<any>> -> memref<8x256xbf16, #tpu.memory_space<any>>
    %c0_i32_9 = arith.constant 0 : i32
    %c0_i32_10 = arith.constant 0 : i32
    %20 = tpu.memref_slice %arg6[%9, %c0_i32_9, %c0_i32_10] : memref<2x8x256xbf16, #tpu.memory_space<vmem>> -> memref<1x8x256xbf16, #tpu.memory_space<vmem>>
    %21 = tpu.memref_squeeze %20 : memref<1x8x256xbf16, #tpu.memory_space<vmem>> -> memref<8x256xbf16, #tpu.memory_space<vmem>>
    %22 = tpu.memref_slice %arg7[%9] : memref<2x!tpu.dma_semaphore, #tpu.memory_space<semaphore_mem>> -> memref<1x!tpu.dma_semaphore, #tpu.memory_space<semaphore_mem>>
    %23 = tpu.memref_squeeze %22 : memref<1x!tpu.dma_semaphore, #tpu.memory_space<semaphore_mem>> -> memref<!tpu.dma_semaphore, #tpu.memory_space<semaphore_mem>>
    tpu.wait_dma2 semaphore(%23 : memref<!tpu.dma_semaphore, #tpu.memory_space<semaphore_mem>>) src(%19 : memref<8x256xbf16, #tpu.memory_space<any>>) dst(%21 : memref<8x256xbf16, #tpu.memory_space<vmem>>)
    %24 = arith.index_cast %9 : i32 to index
    %c0 = arith.constant 0 : index
    %c0_11 = arith.constant 0 : index
    %25 = vector.load %arg6[%24, %c0, %c0_11] : memref<2x8x256xbf16, #tpu.memory_space<vmem>>, vector<1x8x256xbf16>
    %26 = vector.shape_cast %25 : vector<1x8x256xbf16> to vector<8x256xbf16>
    %c0_i32_12 = arith.constant 0 : i32
    %27 = arith.cmpi eq, %arg1, %c0_i32_12 : i32
    %28 = arith.extui %27 : i1 to i32
    %c0_i32_13 = arith.constant 0 : i32
    %29 = arith.cmpi ne, %28, %c0_i32_13 : i32
    scf.if %29 {
      %cst_38 = arith.constant 0.000000e+00 : f32
      %85 = vector.broadcast %cst_38 : f32 to vector<8x1xf32>
      %c0_39 = arith.constant 0 : index
      %c0_40 = arith.constant 0 : index
      %c0_41 = arith.constant 0 : index
      %86 = vector.load %arg4[%c0_39, %c0_40, %c0_41] : memref<1x8x1xf32, #tpu.memory_space<vmem>>, vector<1x8x1xf32>
      %87 = vector.shape_cast %86 : vector<1x8x1xf32> to vector<8x1xf32>
      %88 = vector.shape_cast %85 : vector<8x1xf32> to vector<1x8x1xf32>
      tpu.vector_store %arg4[%c0_39, %c0_40, %c0_41], %88 {strides = array<i32>} : memref<1x8x1xf32, #tpu.memory_space<vmem>>, vector<1x8x1xf32>,
      %cst_42 = arith.constant 0.000000e+00 : f32
      %89 = vector.broadcast %cst_42 : f32 to vector<8x1xf32>
      %c0_43 = arith.constant 0 : index
      %c0_44 = arith.constant 0 : index
      %c0_45 = arith.constant 0 : index
      %90 = vector.load %arg5[%c0_43, %c0_44, %c0_45] : memref<1x8x1xf32, #tpu.memory_space<vmem>>, vector<1x8x1xf32>
      %91 = vector.shape_cast %90 : vector<1x8x1xf32> to vector<8x1xf32>
      %92 = vector.shape_cast %89 : vector<8x1xf32> to vector<1x8x1xf32>
      tpu.vector_store %arg5[%c0_43, %c0_44, %c0_45], %92 {strides = array<i32>} : memref<1x8x1xf32, #tpu.memory_space<vmem>>, vector<1x8x1xf32>,
    } else {
    }
    %c0_14 = arith.constant 0 : index
    %c0_15 = arith.constant 0 : index
    %30 = vector.load %arg3[%c0_14, %c0_15] : memref<8x56xbf16, #tpu.memory_space<vmem>>, vector<8x56xbf16>
    %31 = vector.extract_strided_slice %26 {offsets = [0, 3], sizes = [8, 128], strides = [1, 1]} : vector<8x256xbf16> to vector<8x128xbf16>
    %32 = vector.extract_strided_slice %26 {offsets = [0, 4], sizes = [8, 128], strides = [1, 1]} : vector<8x256xbf16> to vector<8x128xbf16>
    %33 = vector.extract_strided_slice %26 {offsets = [0, 5], sizes = [8, 128], strides = [1, 1]} : vector<8x256xbf16> to vector<8x128xbf16>
    %34 = vector.extract_strided_slice %26 {offsets = [0, 6], sizes = [8, 128], strides = [1, 1]} : vector<8x256xbf16> to vector<8x128xbf16>
    %35 = vector.extract_strided_slice %26 {offsets = [0, 7], sizes = [8, 128], strides = [1, 1]} : vector<8x256xbf16> to vector<8x128xbf16>
    %36 = vector.extract_strided_slice %26 {offsets = [0, 8], sizes = [8, 128], strides = [1, 1]} : vector<8x256xbf16> to vector<8x128xbf16>
    %37 = vector.extract_strided_slice %26 {offsets = [0, 9], sizes = [8, 128], strides = [1, 1]} : vector<8x256xbf16> to vector<8x128xbf16>
    %38 = vector.extract_strided_slice %30 {offsets = [0, 0], sizes = [8, 8], strides = [1, 1]} : vector<8x56xbf16> to vector<8x8xbf16>
    %cst = arith.constant dense<0.000000e+00> : vector<8x128xf32>
    %39 = tpu.matmul %38, %31, %cst {dimension_numbers = #tpu.dot_dimension_numbers<[1], [0], [0], [1], [0, 0, 1, 1], [], []>} : vector<8x8xbf16>, vector<8x128xbf16>, vector<8x128xf32> -> vector<8x128xf32>
    %40 = vector.extract_strided_slice %30 {offsets = [0, 8], sizes = [8, 8], strides = [1, 1]} : vector<8x56xbf16> to vector<8x8xbf16>
    %cst_16 = arith.constant dense<0.000000e+00> : vector<8x128xf32>
    %41 = tpu.matmul %40, %32, %cst_16 {dimension_numbers = #tpu.dot_dimension_numbers<[1], [0], [0], [1], [0, 0, 1, 1], [], []>} : vector<8x8xbf16>, vector<8x128xbf16>, vector<8x128xf32> -> vector<8x128xf32>
    %42 = arith.addf %39, %41 : vector<8x128xf32>
    %43 = vector.extract_strided_slice %30 {offsets = [0, 16], sizes = [8, 8], strides = [1, 1]} : vector<8x56xbf16> to vector<8x8xbf16>
    %cst_17 = arith.constant dense<0.000000e+00> : vector<8x128xf32>
    %44 = tpu.matmul %43, %33, %cst_17 {dimension_numbers = #tpu.dot_dimension_numbers<[1], [0], [0], [1], [0, 0, 1, 1], [], []>} : vector<8x8xbf16>, vector<8x128xbf16>, vector<8x128xf32> -> vector<8x128xf32>
    %45 = arith.addf %42, %44 : vector<8x128xf32>
    %46 = vector.extract_strided_slice %30 {offsets = [0, 24], sizes = [8, 8], strides = [1, 1]} : vector<8x56xbf16> to vector<8x8xbf16>
    %cst_18 = arith.constant dense<0.000000e+00> : vector<8x128xf32>
    %47 = tpu.matmul %46, %34, %cst_18 {dimension_numbers = #tpu.dot_dimension_numbers<[1], [0], [0], [1], [0, 0, 1, 1], [], []>} : vector<8x8xbf16>, vector<8x128xbf16>, vector<8x128xf32> -> vector<8x128xf32>
    %48 = arith.addf %45, %47 : vector<8x128xf32>
    %49 = vector.extract_strided_slice %30 {offsets = [0, 32], sizes = [8, 8], strides = [1, 1]} : vector<8x56xbf16> to vector<8x8xbf16>
    %cst_19 = arith.constant dense<0.000000e+00> : vector<8x128xf32>
    %50 = tpu.matmul %49, %35, %cst_19 {dimension_numbers = #tpu.dot_dimension_numbers<[1], [0], [0], [1], [0, 0, 1, 1], [], []>} : vector<8x8xbf16>, vector<8x128xbf16>, vector<8x128xf32> -> vector<8x128xf32>
    %51 = arith.addf %48, %50 : vector<8x128xf32>
    %52 = vector.extract_strided_slice %30 {offsets = [0, 40], sizes = [8, 8], strides = [1, 1]} : vector<8x56xbf16> to vector<8x8xbf16>
    %cst_20 = arith.constant dense<0.000000e+00> : vector<8x128xf32>
    %53 = tpu.matmul %52, %36, %cst_20 {dimension_numbers = #tpu.dot_dimension_numbers<[1], [0], [0], [1], [0, 0, 1, 1], [], []>} : vector<8x8xbf16>, vector<8x128xbf16>, vector<8x128xf32> -> vector<8x128xf32>
    %54 = arith.addf %51, %53 : vector<8x128xf32>
    %55 = vector.extract_strided_slice %30 {offsets = [0, 48], sizes = [8, 8], strides = [1, 1]} : vector<8x56xbf16> to vector<8x8xbf16>
    %cst_21 = arith.constant dense<0.000000e+00> : vector<8x128xf32>
    %56 = tpu.matmul %55, %37, %cst_21 {dimension_numbers = #tpu.dot_dimension_numbers<[1], [0], [0], [1], [0, 0, 1, 1], [], []>} : vector<8x8xbf16>, vector<8x128xbf16>, vector<8x128xf32> -> vector<8x128xf32>
    %57 = arith.addf %54, %56 : vector<8x128xf32>
    %58 = tpu.iota {dimensions = array<i32: 1>} : vector<1x128xi32>
    %c128_i32_22 = arith.constant 128 : i32
    %59 = arith.muli %arg1, %c128_i32_22 : i32
    %60 = vector.broadcast %59 : i32 to vector<1x128xi32>
    %61 = arith.addi %60, %58 : vector<1x128xi32>
    %c16_i32 = arith.constant 16 : i32
    %62 = vector.broadcast %c16_i32 : i32 to vector<1x128xi32>
    %63 = arith.cmpi slt, %61, %62 : vector<1x128xi32>
    %cst_23 = arith.constant 0.000000e+00 : f32
    %64 = vector.shape_cast %63 : vector<1x128xi1> to vector<1x128xi1>
    %65 = vector.broadcast %64 : vector<1x128xi1> to vector<8x128xi1>
    %66 = vector.broadcast %cst_23 : f32 to vector<8x128xf32>
    %67 = arith.select %65, %57, %66 : vector<8x128xi1>, vector<8x128xf32>
    %c0_24 = arith.constant 0 : index
    %c0_25 = arith.constant 0 : index
    %c0_26 = arith.constant 0 : index
    %68 = vector.load %arg4[%c0_24, %c0_25, %c0_26] : memref<1x8x1xf32, #tpu.memory_space<vmem>>, vector<1x8x1xf32>
    %69 = vector.shape_cast %68 : vector<1x8x1xf32> to vector<8x1xf32>
    %cst_27 = arith.constant dense<0.000000e+00> : vector<8xf32>
    %70 = vector.multi_reduction <add>, %67, %cst_27 [1] : vector<8x128xf32> to vector<8xf32>
    %71 = vector.shape_cast %70 : vector<8xf32> to vector<8x1xf32>
    %72 = arith.addf %69, %71 : vector<8x1xf32>
    %c0_28 = arith.constant 0 : index
    %c0_29 = arith.constant 0 : index
    %c0_30 = arith.constant 0 : index
    %73 = vector.load %arg4[%c0_28, %c0_29, %c0_30] : memref<1x8x1xf32, #tpu.memory_space<vmem>>, vector<1x8x1xf32>
    %74 = vector.shape_cast %73 : vector<1x8x1xf32> to vector<8x1xf32>
    %75 = vector.shape_cast %72 : vector<8x1xf32> to vector<1x8x1xf32>
    tpu.vector_store %arg4[%c0_28, %c0_29, %c0_30], %75 {strides = array<i32>} : memref<1x8x1xf32, #tpu.memory_space<vmem>>, vector<1x8x1xf32>,
    %c0_31 = arith.constant 0 : index
    %c0_32 = arith.constant 0 : index
    %c0_33 = arith.constant 0 : index
    %76 = vector.load %arg5[%c0_31, %c0_32, %c0_33] : memref<1x8x1xf32, #tpu.memory_space<vmem>>, vector<1x8x1xf32>
    %77 = vector.shape_cast %76 : vector<1x8x1xf32> to vector<8x1xf32>
    %78 = arith.mulf %67, %67 : vector<8x128xf32>
    %cst_34 = arith.constant dense<0.000000e+00> : vector<8xf32>
    %79 = vector.multi_reduction <add>, %78, %cst_34 [1] : vector<8x128xf32> to vector<8xf32>
    %80 = vector.shape_cast %79 : vector<8xf32> to vector<8x1xf32>
    %81 = arith.addf %77, %80 : vector<8x1xf32>
    %c0_35 = arith.constant 0 : index
    %c0_36 = arith.constant 0 : index
    %c0_37 = arith.constant 0 : index
    %82 = vector.load %arg5[%c0_35, %c0_36, %c0_37] : memref<1x8x1xf32, #tpu.memory_space<vmem>>, vector<1x8x1xf32>
    %83 = vector.shape_cast %82 : vector<1x8x1xf32> to vector<8x1xf32>
    %84 = vector.shape_cast %81 : vector<8x1xf32> to vector<1x8x1xf32>
    tpu.vector_store %arg5[%c0_35, %c0_36, %c0_37], %84 {strides = array<i32>} : memref<1x8x1xf32, #tpu.memory_space<vmem>>, vector<1x8x1xf32>,
    return
  }
  func.func @transform_1(%arg0: i32, %arg1: i32) -> (i32, i32) {
    %c0_i32 = arith.constant 0 : i32
    %c0_i32_0 = arith.constant 0 : i32
    %c0_i32_1 = arith.constant 0 : i32
    return %c0_i32, %c0_i32_0 : i32, i32
  }
  func.func @transform_2(%arg0: i32, %arg1: i32) -> (i32, i32, i32) {
    %c0_i32 = arith.constant 0 : i32
    %c0_i32_0 = arith.constant 0 : i32
    %c0_i32_1 = arith.constant 0 : i32
    return %arg0, %c0_i32, %c0_i32_0 : i32, i32, i32
  }
  func.func @transform_3(%arg0: i32, %arg1: i32) -> (i32, i32, i32) {
    %c0_i32 = arith.constant 0 : i32
    %c0_i32_0 = arith.constant 0 : i32
    %c0_i32_1 = arith.constant 0 : i32
    return %arg0, %c0_i32, %c0_i32_0 : i32, i32, i32
  }
}

module attributes {stable_mosaic.version = 11 : i64} {
  func.func @_pool_kernel(%arg0: i32, %arg1: i32, %arg2: memref<2x8x256xbf16, #tpu.memory_space<any>>, %arg3: memref<8x56xbf16, #tpu.memory_space<vmem>>, %arg4: memref<8x1xf32, #tpu.memory_space<vmem>>, %arg5: memref<8x56xbf16, #tpu.memory_space<vmem>>, %arg6: memref<8x1xf32, #tpu.memory_space<vmem>>, %arg7: memref<1x8x1xf32, #tpu.memory_space<vmem>>, %arg8: memref<2x8x256xbf16, #tpu.memory_space<vmem>>, %arg9: memref<2x!tpu.dma_semaphore, #tpu.memory_space<semaphore_mem>>) attributes {dimension_semantics = [#tpu.dimension_semantics<parallel>, #tpu.dimension_semantics<arbitrary>], iteration_bounds = array<i64: 2, 1>, scalar_prefetch = 0 : i64, scratch_operands = 2 : i64, tpu.core_type = #tpu.core_type<tc>, window_params = [{}, {pipeline_mode = #tpu.pipeline_mode<synchronous>, transform_indices = @transform_1, window_bounds = array<i64: 8, 56>}, {pipeline_mode = #tpu.pipeline_mode<synchronous>, transform_indices = @transform_2, window_bounds = array<i64: 8, 1>}, {pipeline_mode = #tpu.pipeline_mode<synchronous>, transform_indices = @transform_3, window_bounds = array<i64: 8, 56>}, {pipeline_mode = #tpu.pipeline_mode<synchronous>, transform_indices = @transform_4, window_bounds = array<i64: 8, 1>}, {transform_indices = @transform_5, window_bounds = array<i64: 1, 8, 1>}]} {
    %c2_i32 = arith.constant 2 : i32
    %c0_i32 = arith.constant 0 : i32
    %0 = arith.cmpi eq, %c2_i32, %c0_i32 : i32
    %c1_i32 = arith.constant 1 : i32
    %1 = arith.select %0, %c1_i32, %c2_i32 : i32
    %2 = arith.remsi %arg1, %1 : i32
    %c0_i32_0 = arith.constant 0 : i32
    %3 = arith.cmpi ne, %2, %c0_i32_0 : i32
    %c0_i32_1 = arith.constant 0 : i32
    %4 = arith.cmpi slt, %2, %c0_i32_1 : i32
    %c0_i32_2 = arith.constant 0 : i32
    %5 = arith.cmpi slt, %1, %c0_i32_2 : i32
    %6 = arith.xori %4, %5 : i1
    %7 = arith.andi %6, %3 : i1
    %8 = arith.addi %2, %1 : i32
    %9 = arith.select %7, %8, %2 : i32
    %c0_i32_3 = arith.constant 0 : i32
    %10 = arith.cmpi eq, %arg1, %c0_i32_3 : i32
    %11 = arith.extui %10 : i1 to i32
    %c0_i32_4 = arith.constant 0 : i32
    %12 = arith.cmpi ne, %11, %c0_i32_4 : i32
    scf.if %12 {
      %c128_i32_50 = arith.constant 128 : i32
      %129 = arith.muli %arg1, %c128_i32_50 : i32
      %c0_i32_51 = arith.constant 0 : i32
      %130 = tpu.memref_slice %arg2[%arg0, %c0_i32_51, %129] : memref<2x8x256xbf16, #tpu.memory_space<any>> -> memref<1x8x256xbf16, #tpu.memory_space<any>>
      %131 = tpu.memref_squeeze %130 : memref<1x8x256xbf16, #tpu.memory_space<any>> -> memref<8x256xbf16, #tpu.memory_space<any>>
      %c0_i32_52 = arith.constant 0 : i32
      %c0_i32_53 = arith.constant 0 : i32
      %132 = tpu.memref_slice %arg8[%9, %c0_i32_52, %c0_i32_53] : memref<2x8x256xbf16, #tpu.memory_space<vmem>> -> memref<1x8x256xbf16, #tpu.memory_space<vmem>>
      %133 = tpu.memref_squeeze %132 : memref<1x8x256xbf16, #tpu.memory_space<vmem>> -> memref<8x256xbf16, #tpu.memory_space<vmem>>
      %134 = tpu.memref_slice %arg9[%9] : memref<2x!tpu.dma_semaphore, #tpu.memory_space<semaphore_mem>> -> memref<1x!tpu.dma_semaphore, #tpu.memory_space<semaphore_mem>>
      %135 = tpu.memref_squeeze %134 : memref<1x!tpu.dma_semaphore, #tpu.memory_space<semaphore_mem>> -> memref<!tpu.dma_semaphore, #tpu.memory_space<semaphore_mem>>
      tpu.enqueue_dma source(%131 : memref<8x256xbf16, #tpu.memory_space<any>>) target(%133 : memref<8x256xbf16, #tpu.memory_space<vmem>>) target_semaphore(%135 : memref<!tpu.dma_semaphore, #tpu.memory_space<semaphore_mem>>)
    } else {
    }
    %c1_i32_5 = arith.constant 1 : i32
    %13 = arith.addi %arg1, %c1_i32_5 : i32
    %c1_i32_6 = arith.constant 1 : i32
    %14 = arith.cmpi slt, %13, %c1_i32_6 : i32
    %15 = arith.extui %14 : i1 to i32
    %c0_i32_7 = arith.constant 0 : i32
    %16 = arith.cmpi ne, %15, %c0_i32_7 : i32
    scf.if %16 {
      %c1_i32_50 = arith.constant 1 : i32
      %129 = arith.addi %arg1, %c1_i32_50 : i32
      %c1_i32_51 = arith.constant 1 : i32
      %130 = arith.addi %arg1, %c1_i32_51 : i32
      %c2_i32_52 = arith.constant 2 : i32
      %c0_i32_53 = arith.constant 0 : i32
      %131 = arith.cmpi eq, %c2_i32_52, %c0_i32_53 : i32
      %c1_i32_54 = arith.constant 1 : i32
      %132 = arith.select %131, %c1_i32_54, %c2_i32_52 : i32
      %133 = arith.remsi %130, %132 : i32
      %c0_i32_55 = arith.constant 0 : i32
      %134 = arith.cmpi ne, %133, %c0_i32_55 : i32
      %c0_i32_56 = arith.constant 0 : i32
      %135 = arith.cmpi slt, %133, %c0_i32_56 : i32
      %c0_i32_57 = arith.constant 0 : i32
      %136 = arith.cmpi slt, %132, %c0_i32_57 : i32
      %137 = arith.xori %135, %136 : i1
      %138 = arith.andi %137, %134 : i1
      %139 = arith.addi %133, %132 : i32
      %140 = arith.select %138, %139, %133 : i32
      %c128_i32_58 = arith.constant 128 : i32
      %141 = arith.muli %129, %c128_i32_58 : i32
      %c0_i32_59 = arith.constant 0 : i32
      %142 = tpu.memref_slice %arg2[%arg0, %c0_i32_59, %141] : memref<2x8x256xbf16, #tpu.memory_space<any>> -> memref<1x8x256xbf16, #tpu.memory_space<any>>
      %143 = tpu.memref_squeeze %142 : memref<1x8x256xbf16, #tpu.memory_space<any>> -> memref<8x256xbf16, #tpu.memory_space<any>>
      %c0_i32_60 = arith.constant 0 : i32
      %c0_i32_61 = arith.constant 0 : i32
      %144 = tpu.memref_slice %arg8[%140, %c0_i32_60, %c0_i32_61] : memref<2x8x256xbf16, #tpu.memory_space<vmem>> -> memref<1x8x256xbf16, #tpu.memory_space<vmem>>
      %145 = tpu.memref_squeeze %144 : memref<1x8x256xbf16, #tpu.memory_space<vmem>> -> memref<8x256xbf16, #tpu.memory_space<vmem>>
      %146 = tpu.memref_slice %arg9[%140] : memref<2x!tpu.dma_semaphore, #tpu.memory_space<semaphore_mem>> -> memref<1x!tpu.dma_semaphore, #tpu.memory_space<semaphore_mem>>
      %147 = tpu.memref_squeeze %146 : memref<1x!tpu.dma_semaphore, #tpu.memory_space<semaphore_mem>> -> memref<!tpu.dma_semaphore, #tpu.memory_space<semaphore_mem>>
      tpu.enqueue_dma source(%143 : memref<8x256xbf16, #tpu.memory_space<any>>) target(%145 : memref<8x256xbf16, #tpu.memory_space<vmem>>) target_semaphore(%147 : memref<!tpu.dma_semaphore, #tpu.memory_space<semaphore_mem>>)
    } else {
    }
    %c128_i32 = arith.constant 128 : i32
    %17 = arith.muli %arg1, %c128_i32 : i32
    %c0_i32_8 = arith.constant 0 : i32
    %18 = tpu.memref_slice %arg2[%arg0, %c0_i32_8, %17] : memref<2x8x256xbf16, #tpu.memory_space<any>> -> memref<1x8x256xbf16, #tpu.memory_space<any>>
    %19 = tpu.memref_squeeze %18 : memref<1x8x256xbf16, #tpu.memory_space<any>> -> memref<8x256xbf16, #tpu.memory_space<any>>
    %c0_i32_9 = arith.constant 0 : i32
    %c0_i32_10 = arith.constant 0 : i32
    %20 = tpu.memref_slice %arg8[%9, %c0_i32_9, %c0_i32_10] : memref<2x8x256xbf16, #tpu.memory_space<vmem>> -> memref<1x8x256xbf16, #tpu.memory_space<vmem>>
    %21 = tpu.memref_squeeze %20 : memref<1x8x256xbf16, #tpu.memory_space<vmem>> -> memref<8x256xbf16, #tpu.memory_space<vmem>>
    %22 = tpu.memref_slice %arg9[%9] : memref<2x!tpu.dma_semaphore, #tpu.memory_space<semaphore_mem>> -> memref<1x!tpu.dma_semaphore, #tpu.memory_space<semaphore_mem>>
    %23 = tpu.memref_squeeze %22 : memref<1x!tpu.dma_semaphore, #tpu.memory_space<semaphore_mem>> -> memref<!tpu.dma_semaphore, #tpu.memory_space<semaphore_mem>>
    tpu.wait_dma2 semaphore(%23 : memref<!tpu.dma_semaphore, #tpu.memory_space<semaphore_mem>>) src(%19 : memref<8x256xbf16, #tpu.memory_space<any>>) dst(%21 : memref<8x256xbf16, #tpu.memory_space<vmem>>)
    %24 = arith.index_cast %9 : i32 to index
    %c0 = arith.constant 0 : index
    %c0_11 = arith.constant 0 : index
    %25 = vector.load %arg8[%24, %c0, %c0_11] : memref<2x8x256xbf16, #tpu.memory_space<vmem>>, vector<1x8x256xbf16>
    %26 = vector.shape_cast %25 : vector<1x8x256xbf16> to vector<8x256xbf16>
    %c0_i32_12 = arith.constant 0 : i32
    %27 = arith.cmpi eq, %arg1, %c0_i32_12 : i32
    %28 = arith.extui %27 : i1 to i32
    %c0_i32_13 = arith.constant 0 : i32
    %29 = arith.cmpi ne, %28, %c0_i32_13 : i32
    scf.if %29 {
      %cst_50 = arith.constant 0.000000e+00 : f32
      %129 = vector.broadcast %cst_50 : f32 to vector<8x1xf32>
      %c0_51 = arith.constant 0 : index
      %c0_52 = arith.constant 0 : index
      %c0_53 = arith.constant 0 : index
      %130 = vector.load %arg7[%c0_51, %c0_52, %c0_53] : memref<1x8x1xf32, #tpu.memory_space<vmem>>, vector<1x8x1xf32>
      %131 = vector.shape_cast %130 : vector<1x8x1xf32> to vector<8x1xf32>
      %132 = vector.shape_cast %129 : vector<8x1xf32> to vector<1x8x1xf32>
      tpu.vector_store %arg7[%c0_51, %c0_52, %c0_53], %132 {strides = array<i32>} : memref<1x8x1xf32, #tpu.memory_space<vmem>>, vector<1x8x1xf32>,
    } else {
    }
    %c0_14 = arith.constant 0 : index
    %c0_15 = arith.constant 0 : index
    %30 = vector.load %arg3[%c0_14, %c0_15] : memref<8x56xbf16, #tpu.memory_space<vmem>>, vector<8x56xbf16>
    %c0_16 = arith.constant 0 : index
    %c0_17 = arith.constant 0 : index
    %31 = vector.load %arg4[%c0_16, %c0_17] : memref<8x1xf32, #tpu.memory_space<vmem>>, vector<8x1xf32>
    %32 = vector.extract_strided_slice %26 {offsets = [0, 0], sizes = [8, 134], strides = [1, 1]} : vector<8x256xbf16> to vector<8x134xbf16>
    %33 = vector.extract_strided_slice %26 {offsets = [0, 1], sizes = [8, 134], strides = [1, 1]} : vector<8x256xbf16> to vector<8x134xbf16>
    %34 = vector.extract_strided_slice %26 {offsets = [0, 2], sizes = [8, 134], strides = [1, 1]} : vector<8x256xbf16> to vector<8x134xbf16>
    %35 = vector.extract_strided_slice %26 {offsets = [0, 3], sizes = [8, 134], strides = [1, 1]} : vector<8x256xbf16> to vector<8x134xbf16>
    %36 = vector.extract_strided_slice %26 {offsets = [0, 4], sizes = [8, 134], strides = [1, 1]} : vector<8x256xbf16> to vector<8x134xbf16>
    %37 = vector.extract_strided_slice %26 {offsets = [0, 5], sizes = [8, 134], strides = [1, 1]} : vector<8x256xbf16> to vector<8x134xbf16>
    %38 = vector.extract_strided_slice %26 {offsets = [0, 6], sizes = [8, 134], strides = [1, 1]} : vector<8x256xbf16> to vector<8x134xbf16>
    %39 = vector.extract_strided_slice %30 {offsets = [0, 0], sizes = [8, 8], strides = [1, 1]} : vector<8x56xbf16> to vector<8x8xbf16>
    %cst = arith.constant dense<0.000000e+00> : vector<8x134xf32>
    %40 = tpu.matmul %39, %32, %cst {dimension_numbers = #tpu.dot_dimension_numbers<[1], [0], [0], [1], [0, 0, 1, 1], [], []>} : vector<8x8xbf16>, vector<8x134xbf16>, vector<8x134xf32> -> vector<8x134xf32>
    %41 = vector.extract_strided_slice %30 {offsets = [0, 8], sizes = [8, 8], strides = [1, 1]} : vector<8x56xbf16> to vector<8x8xbf16>
    %cst_18 = arith.constant dense<0.000000e+00> : vector<8x134xf32>
    %42 = tpu.matmul %41, %33, %cst_18 {dimension_numbers = #tpu.dot_dimension_numbers<[1], [0], [0], [1], [0, 0, 1, 1], [], []>} : vector<8x8xbf16>, vector<8x134xbf16>, vector<8x134xf32> -> vector<8x134xf32>
    %43 = arith.addf %40, %42 : vector<8x134xf32>
    %44 = vector.extract_strided_slice %30 {offsets = [0, 16], sizes = [8, 8], strides = [1, 1]} : vector<8x56xbf16> to vector<8x8xbf16>
    %cst_19 = arith.constant dense<0.000000e+00> : vector<8x134xf32>
    %45 = tpu.matmul %44, %34, %cst_19 {dimension_numbers = #tpu.dot_dimension_numbers<[1], [0], [0], [1], [0, 0, 1, 1], [], []>} : vector<8x8xbf16>, vector<8x134xbf16>, vector<8x134xf32> -> vector<8x134xf32>
    %46 = arith.addf %43, %45 : vector<8x134xf32>
    %47 = vector.extract_strided_slice %30 {offsets = [0, 24], sizes = [8, 8], strides = [1, 1]} : vector<8x56xbf16> to vector<8x8xbf16>
    %cst_20 = arith.constant dense<0.000000e+00> : vector<8x134xf32>
    %48 = tpu.matmul %47, %35, %cst_20 {dimension_numbers = #tpu.dot_dimension_numbers<[1], [0], [0], [1], [0, 0, 1, 1], [], []>} : vector<8x8xbf16>, vector<8x134xbf16>, vector<8x134xf32> -> vector<8x134xf32>
    %49 = arith.addf %46, %48 : vector<8x134xf32>
    %50 = vector.extract_strided_slice %30 {offsets = [0, 32], sizes = [8, 8], strides = [1, 1]} : vector<8x56xbf16> to vector<8x8xbf16>
    %cst_21 = arith.constant dense<0.000000e+00> : vector<8x134xf32>
    %51 = tpu.matmul %50, %36, %cst_21 {dimension_numbers = #tpu.dot_dimension_numbers<[1], [0], [0], [1], [0, 0, 1, 1], [], []>} : vector<8x8xbf16>, vector<8x134xbf16>, vector<8x134xf32> -> vector<8x134xf32>
    %52 = arith.addf %49, %51 : vector<8x134xf32>
    %53 = vector.extract_strided_slice %30 {offsets = [0, 40], sizes = [8, 8], strides = [1, 1]} : vector<8x56xbf16> to vector<8x8xbf16>
    %cst_22 = arith.constant dense<0.000000e+00> : vector<8x134xf32>
    %54 = tpu.matmul %53, %37, %cst_22 {dimension_numbers = #tpu.dot_dimension_numbers<[1], [0], [0], [1], [0, 0, 1, 1], [], []>} : vector<8x8xbf16>, vector<8x134xbf16>, vector<8x134xf32> -> vector<8x134xf32>
    %55 = arith.addf %52, %54 : vector<8x134xf32>
    %56 = vector.extract_strided_slice %30 {offsets = [0, 48], sizes = [8, 8], strides = [1, 1]} : vector<8x56xbf16> to vector<8x8xbf16>
    %cst_23 = arith.constant dense<0.000000e+00> : vector<8x134xf32>
    %57 = tpu.matmul %56, %38, %cst_23 {dimension_numbers = #tpu.dot_dimension_numbers<[1], [0], [0], [1], [0, 0, 1, 1], [], []>} : vector<8x8xbf16>, vector<8x134xbf16>, vector<8x134xf32> -> vector<8x134xf32>
    %58 = arith.addf %55, %57 : vector<8x134xf32>
    %59 = vector.broadcast %31 : vector<8x1xf32> to vector<8x134xf32>
    %60 = arith.addf %58, %59 : vector<8x134xf32>
    %cst_24 = arith.constant 0.000000e+00 : f32
    %61 = vector.broadcast %cst_24 : f32 to vector<8x134xf32>
    %62 = arith.maximumf %60, %61 : vector<8x134xf32>
    %63 = tpu.iota {dimensions = array<i32: 1>} : vector<1x134xi32>
    %c128_i32_25 = arith.constant 128 : i32
    %64 = arith.muli %arg1, %c128_i32_25 : i32
    %c3_i32 = arith.constant 3 : i32
    %65 = arith.subi %64, %c3_i32 : i32
    %66 = vector.broadcast %65 : i32 to vector<1x134xi32>
    %67 = arith.addi %66, %63 : vector<1x134xi32>
    %c0_i32_26 = arith.constant 0 : i32
    %68 = vector.broadcast %c0_i32_26 : i32 to vector<1x134xi32>
    %69 = arith.cmpi sge, %67, %68 : vector<1x134xi32>
    %c16_i32 = arith.constant 16 : i32
    %70 = vector.broadcast %c16_i32 : i32 to vector<1x134xi32>
    %71 = arith.cmpi slt, %67, %70 : vector<1x134xi32>
    %72 = arith.andi %69, %71 : vector<1x134xi1>
    %cst_27 = arith.constant 0.000000e+00 : f32
    %73 = vector.shape_cast %72 : vector<1x134xi1> to vector<1x134xi1>
    %74 = vector.broadcast %73 : vector<1x134xi1> to vector<8x134xi1>
    %75 = vector.broadcast %cst_27 : f32 to vector<8x134xf32>
    %76 = arith.select %74, %62, %75 : vector<8x134xi1>, vector<8x134xf32>
    %77 = arith.truncf %76 : vector<8x134xf32> to vector<8x134xbf16>
    %c0_28 = arith.constant 0 : index
    %c0_29 = arith.constant 0 : index
    %78 = vector.load %arg5[%c0_28, %c0_29] : memref<8x56xbf16, #tpu.memory_space<vmem>>, vector<8x56xbf16>
    %79 = vector.extract_strided_slice %77 {offsets = [0, 0], sizes = [8, 128], strides = [1, 1]} : vector<8x134xbf16> to vector<8x128xbf16>
    %80 = vector.extract_strided_slice %77 {offsets = [0, 1], sizes = [8, 128], strides = [1, 1]} : vector<8x134xbf16> to vector<8x128xbf16>
    %81 = vector.extract_strided_slice %77 {offsets = [0, 2], sizes = [8, 128], strides = [1, 1]} : vector<8x134xbf16> to vector<8x128xbf16>
    %82 = vector.extract_strided_slice %77 {offsets = [0, 3], sizes = [8, 128], strides = [1, 1]} : vector<8x134xbf16> to vector<8x128xbf16>
    %83 = vector.extract_strided_slice %77 {offsets = [0, 4], sizes = [8, 128], strides = [1, 1]} : vector<8x134xbf16> to vector<8x128xbf16>
    %84 = vector.extract_strided_slice %77 {offsets = [0, 5], sizes = [8, 128], strides = [1, 1]} : vector<8x134xbf16> to vector<8x128xbf16>
    %85 = vector.extract_strided_slice %77 {offsets = [0, 6], sizes = [8, 128], strides = [1, 1]} : vector<8x134xbf16> to vector<8x128xbf16>
    %86 = vector.extract_strided_slice %78 {offsets = [0, 0], sizes = [8, 8], strides = [1, 1]} : vector<8x56xbf16> to vector<8x8xbf16>
    %cst_30 = arith.constant dense<0.000000e+00> : vector<8x128xf32>
    %87 = tpu.matmul %86, %79, %cst_30 {dimension_numbers = #tpu.dot_dimension_numbers<[1], [0], [0], [1], [0, 0, 1, 1], [], []>} : vector<8x8xbf16>, vector<8x128xbf16>, vector<8x128xf32> -> vector<8x128xf32>
    %88 = vector.extract_strided_slice %78 {offsets = [0, 8], sizes = [8, 8], strides = [1, 1]} : vector<8x56xbf16> to vector<8x8xbf16>
    %cst_31 = arith.constant dense<0.000000e+00> : vector<8x128xf32>
    %89 = tpu.matmul %88, %80, %cst_31 {dimension_numbers = #tpu.dot_dimension_numbers<[1], [0], [0], [1], [0, 0, 1, 1], [], []>} : vector<8x8xbf16>, vector<8x128xbf16>, vector<8x128xf32> -> vector<8x128xf32>
    %90 = arith.addf %87, %89 : vector<8x128xf32>
    %91 = vector.extract_strided_slice %78 {offsets = [0, 16], sizes = [8, 8], strides = [1, 1]} : vector<8x56xbf16> to vector<8x8xbf16>
    %cst_32 = arith.constant dense<0.000000e+00> : vector<8x128xf32>
    %92 = tpu.matmul %91, %81, %cst_32 {dimension_numbers = #tpu.dot_dimension_numbers<[1], [0], [0], [1], [0, 0, 1, 1], [], []>} : vector<8x8xbf16>, vector<8x128xbf16>, vector<8x128xf32> -> vector<8x128xf32>
    %93 = arith.addf %90, %92 : vector<8x128xf32>
    %94 = vector.extract_strided_slice %78 {offsets = [0, 24], sizes = [8, 8], strides = [1, 1]} : vector<8x56xbf16> to vector<8x8xbf16>
    %cst_33 = arith.constant dense<0.000000e+00> : vector<8x128xf32>
    %95 = tpu.matmul %94, %82, %cst_33 {dimension_numbers = #tpu.dot_dimension_numbers<[1], [0], [0], [1], [0, 0, 1, 1], [], []>} : vector<8x8xbf16>, vector<8x128xbf16>, vector<8x128xf32> -> vector<8x128xf32>
    %96 = arith.addf %93, %95 : vector<8x128xf32>
    %97 = vector.extract_strided_slice %78 {offsets = [0, 32], sizes = [8, 8], strides = [1, 1]} : vector<8x56xbf16> to vector<8x8xbf16>
    %cst_34 = arith.constant dense<0.000000e+00> : vector<8x128xf32>
    %98 = tpu.matmul %97, %83, %cst_34 {dimension_numbers = #tpu.dot_dimension_numbers<[1], [0], [0], [1], [0, 0, 1, 1], [], []>} : vector<8x8xbf16>, vector<8x128xbf16>, vector<8x128xf32> -> vector<8x128xf32>
    %99 = arith.addf %96, %98 : vector<8x128xf32>
    %100 = vector.extract_strided_slice %78 {offsets = [0, 40], sizes = [8, 8], strides = [1, 1]} : vector<8x56xbf16> to vector<8x8xbf16>
    %cst_35 = arith.constant dense<0.000000e+00> : vector<8x128xf32>
    %101 = tpu.matmul %100, %84, %cst_35 {dimension_numbers = #tpu.dot_dimension_numbers<[1], [0], [0], [1], [0, 0, 1, 1], [], []>} : vector<8x8xbf16>, vector<8x128xbf16>, vector<8x128xf32> -> vector<8x128xf32>
    %102 = arith.addf %99, %101 : vector<8x128xf32>
    %103 = vector.extract_strided_slice %78 {offsets = [0, 48], sizes = [8, 8], strides = [1, 1]} : vector<8x56xbf16> to vector<8x8xbf16>
    %cst_36 = arith.constant dense<0.000000e+00> : vector<8x128xf32>
    %104 = tpu.matmul %103, %85, %cst_36 {dimension_numbers = #tpu.dot_dimension_numbers<[1], [0], [0], [1], [0, 0, 1, 1], [], []>} : vector<8x8xbf16>, vector<8x128xbf16>, vector<8x128xf32> -> vector<8x128xf32>
    %105 = arith.addf %102, %104 : vector<8x128xf32>
    %c0_37 = arith.constant 0 : index
    %c0_38 = arith.constant 0 : index
    %106 = vector.load %arg6[%c0_37, %c0_38] : memref<8x1xf32, #tpu.memory_space<vmem>>, vector<8x1xf32>
    %107 = vector.broadcast %106 : vector<8x1xf32> to vector<8x128xf32>
    %108 = arith.addf %105, %107 : vector<8x128xf32>
    %cst_39 = arith.constant 0.000000e+00 : f32
    %109 = vector.broadcast %cst_39 : f32 to vector<8x128xf32>
    %110 = arith.maximumf %108, %109 : vector<8x128xf32>
    %111 = tpu.iota {dimensions = array<i32: 1>} : vector<1x128xi32>
    %c128_i32_40 = arith.constant 128 : i32
    %112 = arith.muli %arg1, %c128_i32_40 : i32
    %113 = vector.broadcast %112 : i32 to vector<1x128xi32>
    %114 = arith.addi %113, %111 : vector<1x128xi32>
    %c16_i32_41 = arith.constant 16 : i32
    %115 = vector.broadcast %c16_i32_41 : i32 to vector<1x128xi32>
    %116 = arith.cmpi slt, %114, %115 : vector<1x128xi32>
    %cst_42 = arith.constant 0.000000e+00 : f32
    %117 = vector.shape_cast %116 : vector<1x128xi1> to vector<1x128xi1>
    %118 = vector.broadcast %117 : vector<1x128xi1> to vector<8x128xi1>
    %119 = vector.broadcast %cst_42 : f32 to vector<8x128xf32>
    %120 = arith.select %118, %110, %119 : vector<8x128xi1>, vector<8x128xf32>
    %c0_43 = arith.constant 0 : index
    %c0_44 = arith.constant 0 : index
    %c0_45 = arith.constant 0 : index
    %121 = vector.load %arg7[%c0_43, %c0_44, %c0_45] : memref<1x8x1xf32, #tpu.memory_space<vmem>>, vector<1x8x1xf32>
    %122 = vector.shape_cast %121 : vector<1x8x1xf32> to vector<8x1xf32>
    %cst_46 = arith.constant dense<0.000000e+00> : vector<8xf32>
    %123 = vector.multi_reduction <add>, %120, %cst_46 [1] : vector<8x128xf32> to vector<8xf32>
    %124 = vector.shape_cast %123 : vector<8xf32> to vector<8x1xf32>
    %125 = arith.addf %122, %124 : vector<8x1xf32>
    %c0_47 = arith.constant 0 : index
    %c0_48 = arith.constant 0 : index
    %c0_49 = arith.constant 0 : index
    %126 = vector.load %arg7[%c0_47, %c0_48, %c0_49] : memref<1x8x1xf32, #tpu.memory_space<vmem>>, vector<1x8x1xf32>
    %127 = vector.shape_cast %126 : vector<1x8x1xf32> to vector<8x1xf32>
    %128 = vector.shape_cast %125 : vector<8x1xf32> to vector<1x8x1xf32>
    tpu.vector_store %arg7[%c0_47, %c0_48, %c0_49], %128 {strides = array<i32>} : memref<1x8x1xf32, #tpu.memory_space<vmem>>, vector<1x8x1xf32>,
    return
  }
  func.func @transform_1(%arg0: i32, %arg1: i32) -> (i32, i32) {
    %c0_i32 = arith.constant 0 : i32
    %c0_i32_0 = arith.constant 0 : i32
    %c0_i32_1 = arith.constant 0 : i32
    return %c0_i32, %c0_i32_0 : i32, i32
  }
  func.func @transform_2(%arg0: i32, %arg1: i32) -> (i32, i32) {
    %c0_i32 = arith.constant 0 : i32
    %c0_i32_0 = arith.constant 0 : i32
    %c0_i32_1 = arith.constant 0 : i32
    return %c0_i32, %c0_i32_0 : i32, i32
  }
  func.func @transform_3(%arg0: i32, %arg1: i32) -> (i32, i32) {
    %c0_i32 = arith.constant 0 : i32
    %c0_i32_0 = arith.constant 0 : i32
    %c0_i32_1 = arith.constant 0 : i32
    return %c0_i32, %c0_i32_0 : i32, i32
  }
  func.func @transform_4(%arg0: i32, %arg1: i32) -> (i32, i32) {
    %c0_i32 = arith.constant 0 : i32
    %c0_i32_0 = arith.constant 0 : i32
    %c0_i32_1 = arith.constant 0 : i32
    return %c0_i32, %c0_i32_0 : i32, i32
  }
  func.func @transform_5(%arg0: i32, %arg1: i32) -> (i32, i32, i32) {
    %c0_i32 = arith.constant 0 : i32
    %c0_i32_0 = arith.constant 0 : i32
    %c0_i32_1 = arith.constant 0 : i32
    return %arg0, %c0_i32, %c0_i32_0 : i32, i32, i32
  }
}

module attributes {stable_mosaic.version = 11 : i64} {
  func.func @_conv2_stats_kernel(%arg0: i32, %arg1: i32, %arg2: memref<2x8x256xbf16, #tpu.memory_space<any>>, %arg3: memref<8x56xbf16, #tpu.memory_space<vmem>>, %arg4: memref<8x1xf32, #tpu.memory_space<vmem>>, %arg5: memref<8x56xbf16, #tpu.memory_space<vmem>>, %arg6: memref<1x8x1xf32, #tpu.memory_space<vmem>>, %arg7: memref<1x8x1xf32, #tpu.memory_space<vmem>>, %arg8: memref<2x8x256xbf16, #tpu.memory_space<vmem>>, %arg9: memref<2x!tpu.dma_semaphore, #tpu.memory_space<semaphore_mem>>) attributes {dimension_semantics = [#tpu.dimension_semantics<parallel>, #tpu.dimension_semantics<arbitrary>], iteration_bounds = array<i64: 2, 1>, scalar_prefetch = 0 : i64, scratch_operands = 2 : i64, tpu.core_type = #tpu.core_type<tc>, window_params = [{}, {pipeline_mode = #tpu.pipeline_mode<synchronous>, transform_indices = @transform_1, window_bounds = array<i64: 8, 56>}, {pipeline_mode = #tpu.pipeline_mode<synchronous>, transform_indices = @transform_2, window_bounds = array<i64: 8, 1>}, {pipeline_mode = #tpu.pipeline_mode<synchronous>, transform_indices = @transform_3, window_bounds = array<i64: 8, 56>}, {transform_indices = @transform_4, window_bounds = array<i64: 1, 8, 1>}, {transform_indices = @transform_5, window_bounds = array<i64: 1, 8, 1>}]} {
    %c2_i32 = arith.constant 2 : i32
    %c0_i32 = arith.constant 0 : i32
    %0 = arith.cmpi eq, %c2_i32, %c0_i32 : i32
    %c1_i32 = arith.constant 1 : i32
    %1 = arith.select %0, %c1_i32, %c2_i32 : i32
    %2 = arith.remsi %arg1, %1 : i32
    %c0_i32_0 = arith.constant 0 : i32
    %3 = arith.cmpi ne, %2, %c0_i32_0 : i32
    %c0_i32_1 = arith.constant 0 : i32
    %4 = arith.cmpi slt, %2, %c0_i32_1 : i32
    %c0_i32_2 = arith.constant 0 : i32
    %5 = arith.cmpi slt, %1, %c0_i32_2 : i32
    %6 = arith.xori %4, %5 : i1
    %7 = arith.andi %6, %3 : i1
    %8 = arith.addi %2, %1 : i32
    %9 = arith.select %7, %8, %2 : i32
    %c0_i32_3 = arith.constant 0 : i32
    %10 = arith.cmpi eq, %arg1, %c0_i32_3 : i32
    %11 = arith.extui %10 : i1 to i32
    %c0_i32_4 = arith.constant 0 : i32
    %12 = arith.cmpi ne, %11, %c0_i32_4 : i32
    scf.if %12 {
      %c128_i32_54 = arith.constant 128 : i32
      %133 = arith.muli %arg1, %c128_i32_54 : i32
      %c0_i32_55 = arith.constant 0 : i32
      %134 = tpu.memref_slice %arg2[%arg0, %c0_i32_55, %133] : memref<2x8x256xbf16, #tpu.memory_space<any>> -> memref<1x8x256xbf16, #tpu.memory_space<any>>
      %135 = tpu.memref_squeeze %134 : memref<1x8x256xbf16, #tpu.memory_space<any>> -> memref<8x256xbf16, #tpu.memory_space<any>>
      %c0_i32_56 = arith.constant 0 : i32
      %c0_i32_57 = arith.constant 0 : i32
      %136 = tpu.memref_slice %arg8[%9, %c0_i32_56, %c0_i32_57] : memref<2x8x256xbf16, #tpu.memory_space<vmem>> -> memref<1x8x256xbf16, #tpu.memory_space<vmem>>
      %137 = tpu.memref_squeeze %136 : memref<1x8x256xbf16, #tpu.memory_space<vmem>> -> memref<8x256xbf16, #tpu.memory_space<vmem>>
      %138 = tpu.memref_slice %arg9[%9] : memref<2x!tpu.dma_semaphore, #tpu.memory_space<semaphore_mem>> -> memref<1x!tpu.dma_semaphore, #tpu.memory_space<semaphore_mem>>
      %139 = tpu.memref_squeeze %138 : memref<1x!tpu.dma_semaphore, #tpu.memory_space<semaphore_mem>> -> memref<!tpu.dma_semaphore, #tpu.memory_space<semaphore_mem>>
      tpu.enqueue_dma source(%135 : memref<8x256xbf16, #tpu.memory_space<any>>) target(%137 : memref<8x256xbf16, #tpu.memory_space<vmem>>) target_semaphore(%139 : memref<!tpu.dma_semaphore, #tpu.memory_space<semaphore_mem>>)
    } else {
    }
    %c1_i32_5 = arith.constant 1 : i32
    %13 = arith.addi %arg1, %c1_i32_5 : i32
    %c1_i32_6 = arith.constant 1 : i32
    %14 = arith.cmpi slt, %13, %c1_i32_6 : i32
    %15 = arith.extui %14 : i1 to i32
    %c0_i32_7 = arith.constant 0 : i32
    %16 = arith.cmpi ne, %15, %c0_i32_7 : i32
    scf.if %16 {
      %c1_i32_54 = arith.constant 1 : i32
      %133 = arith.addi %arg1, %c1_i32_54 : i32
      %c1_i32_55 = arith.constant 1 : i32
      %134 = arith.addi %arg1, %c1_i32_55 : i32
      %c2_i32_56 = arith.constant 2 : i32
      %c0_i32_57 = arith.constant 0 : i32
      %135 = arith.cmpi eq, %c2_i32_56, %c0_i32_57 : i32
      %c1_i32_58 = arith.constant 1 : i32
      %136 = arith.select %135, %c1_i32_58, %c2_i32_56 : i32
      %137 = arith.remsi %134, %136 : i32
      %c0_i32_59 = arith.constant 0 : i32
      %138 = arith.cmpi ne, %137, %c0_i32_59 : i32
      %c0_i32_60 = arith.constant 0 : i32
      %139 = arith.cmpi slt, %137, %c0_i32_60 : i32
      %c0_i32_61 = arith.constant 0 : i32
      %140 = arith.cmpi slt, %136, %c0_i32_61 : i32
      %141 = arith.xori %139, %140 : i1
      %142 = arith.andi %141, %138 : i1
      %143 = arith.addi %137, %136 : i32
      %144 = arith.select %142, %143, %137 : i32
      %c128_i32_62 = arith.constant 128 : i32
      %145 = arith.muli %133, %c128_i32_62 : i32
      %c0_i32_63 = arith.constant 0 : i32
      %146 = tpu.memref_slice %arg2[%arg0, %c0_i32_63, %145] : memref<2x8x256xbf16, #tpu.memory_space<any>> -> memref<1x8x256xbf16, #tpu.memory_space<any>>
      %147 = tpu.memref_squeeze %146 : memref<1x8x256xbf16, #tpu.memory_space<any>> -> memref<8x256xbf16, #tpu.memory_space<any>>
      %c0_i32_64 = arith.constant 0 : i32
      %c0_i32_65 = arith.constant 0 : i32
      %148 = tpu.memref_slice %arg8[%144, %c0_i32_64, %c0_i32_65] : memref<2x8x256xbf16, #tpu.memory_space<vmem>> -> memref<1x8x256xbf16, #tpu.memory_space<vmem>>
      %149 = tpu.memref_squeeze %148 : memref<1x8x256xbf16, #tpu.memory_space<vmem>> -> memref<8x256xbf16, #tpu.memory_space<vmem>>
      %150 = tpu.memref_slice %arg9[%144] : memref<2x!tpu.dma_semaphore, #tpu.memory_space<semaphore_mem>> -> memref<1x!tpu.dma_semaphore, #tpu.memory_space<semaphore_mem>>
      %151 = tpu.memref_squeeze %150 : memref<1x!tpu.dma_semaphore, #tpu.memory_space<semaphore_mem>> -> memref<!tpu.dma_semaphore, #tpu.memory_space<semaphore_mem>>
      tpu.enqueue_dma source(%147 : memref<8x256xbf16, #tpu.memory_space<any>>) target(%149 : memref<8x256xbf16, #tpu.memory_space<vmem>>) target_semaphore(%151 : memref<!tpu.dma_semaphore, #tpu.memory_space<semaphore_mem>>)
    } else {
    }
    %c128_i32 = arith.constant 128 : i32
    %17 = arith.muli %arg1, %c128_i32 : i32
    %c0_i32_8 = arith.constant 0 : i32
    %18 = tpu.memref_slice %arg2[%arg0, %c0_i32_8, %17] : memref<2x8x256xbf16, #tpu.memory_space<any>> -> memref<1x8x256xbf16, #tpu.memory_space<any>>
    %19 = tpu.memref_squeeze %18 : memref<1x8x256xbf16, #tpu.memory_space<any>> -> memref<8x256xbf16, #tpu.memory_space<any>>
    %c0_i32_9 = arith.constant 0 : i32
    %c0_i32_10 = arith.constant 0 : i32
    %20 = tpu.memref_slice %arg8[%9, %c0_i32_9, %c0_i32_10] : memref<2x8x256xbf16, #tpu.memory_space<vmem>> -> memref<1x8x256xbf16, #tpu.memory_space<vmem>>
    %21 = tpu.memref_squeeze %20 : memref<1x8x256xbf16, #tpu.memory_space<vmem>> -> memref<8x256xbf16, #tpu.memory_space<vmem>>
    %22 = tpu.memref_slice %arg9[%9] : memref<2x!tpu.dma_semaphore, #tpu.memory_space<semaphore_mem>> -> memref<1x!tpu.dma_semaphore, #tpu.memory_space<semaphore_mem>>
    %23 = tpu.memref_squeeze %22 : memref<1x!tpu.dma_semaphore, #tpu.memory_space<semaphore_mem>> -> memref<!tpu.dma_semaphore, #tpu.memory_space<semaphore_mem>>
    tpu.wait_dma2 semaphore(%23 : memref<!tpu.dma_semaphore, #tpu.memory_space<semaphore_mem>>) src(%19 : memref<8x256xbf16, #tpu.memory_space<any>>) dst(%21 : memref<8x256xbf16, #tpu.memory_space<vmem>>)
    %24 = arith.index_cast %9 : i32 to index
    %c0 = arith.constant 0 : index
    %c0_11 = arith.constant 0 : index
    %25 = vector.load %arg8[%24, %c0, %c0_11] : memref<2x8x256xbf16, #tpu.memory_space<vmem>>, vector<1x8x256xbf16>
    %26 = vector.shape_cast %25 : vector<1x8x256xbf16> to vector<8x256xbf16>
    %c0_i32_12 = arith.constant 0 : i32
    %27 = arith.cmpi eq, %arg1, %c0_i32_12 : i32
    %28 = arith.extui %27 : i1 to i32
    %c0_i32_13 = arith.constant 0 : i32
    %29 = arith.cmpi ne, %28, %c0_i32_13 : i32
    scf.if %29 {
      %cst_54 = arith.constant 0.000000e+00 : f32
      %133 = vector.broadcast %cst_54 : f32 to vector<8x1xf32>
      %c0_55 = arith.constant 0 : index
      %c0_56 = arith.constant 0 : index
      %c0_57 = arith.constant 0 : index
      %134 = vector.load %arg6[%c0_55, %c0_56, %c0_57] : memref<1x8x1xf32, #tpu.memory_space<vmem>>, vector<1x8x1xf32>
      %135 = vector.shape_cast %134 : vector<1x8x1xf32> to vector<8x1xf32>
      %136 = vector.shape_cast %133 : vector<8x1xf32> to vector<1x8x1xf32>
      tpu.vector_store %arg6[%c0_55, %c0_56, %c0_57], %136 {strides = array<i32>} : memref<1x8x1xf32, #tpu.memory_space<vmem>>, vector<1x8x1xf32>,
      %cst_58 = arith.constant 0.000000e+00 : f32
      %137 = vector.broadcast %cst_58 : f32 to vector<8x1xf32>
      %c0_59 = arith.constant 0 : index
      %c0_60 = arith.constant 0 : index
      %c0_61 = arith.constant 0 : index
      %138 = vector.load %arg7[%c0_59, %c0_60, %c0_61] : memref<1x8x1xf32, #tpu.memory_space<vmem>>, vector<1x8x1xf32>
      %139 = vector.shape_cast %138 : vector<1x8x1xf32> to vector<8x1xf32>
      %140 = vector.shape_cast %137 : vector<8x1xf32> to vector<1x8x1xf32>
      tpu.vector_store %arg7[%c0_59, %c0_60, %c0_61], %140 {strides = array<i32>} : memref<1x8x1xf32, #tpu.memory_space<vmem>>, vector<1x8x1xf32>,
    } else {
    }
    %c0_14 = arith.constant 0 : index
    %c0_15 = arith.constant 0 : index
    %30 = vector.load %arg3[%c0_14, %c0_15] : memref<8x56xbf16, #tpu.memory_space<vmem>>, vector<8x56xbf16>
    %c0_16 = arith.constant 0 : index
    %c0_17 = arith.constant 0 : index
    %31 = vector.load %arg4[%c0_16, %c0_17] : memref<8x1xf32, #tpu.memory_space<vmem>>, vector<8x1xf32>
    %32 = vector.extract_strided_slice %26 {offsets = [0, 0], sizes = [8, 134], strides = [1, 1]} : vector<8x256xbf16> to vector<8x134xbf16>
    %33 = vector.extract_strided_slice %26 {offsets = [0, 1], sizes = [8, 134], strides = [1, 1]} : vector<8x256xbf16> to vector<8x134xbf16>
    %34 = vector.extract_strided_slice %26 {offsets = [0, 2], sizes = [8, 134], strides = [1, 1]} : vector<8x256xbf16> to vector<8x134xbf16>
    %35 = vector.extract_strided_slice %26 {offsets = [0, 3], sizes = [8, 134], strides = [1, 1]} : vector<8x256xbf16> to vector<8x134xbf16>
    %36 = vector.extract_strided_slice %26 {offsets = [0, 4], sizes = [8, 134], strides = [1, 1]} : vector<8x256xbf16> to vector<8x134xbf16>
    %37 = vector.extract_strided_slice %26 {offsets = [0, 5], sizes = [8, 134], strides = [1, 1]} : vector<8x256xbf16> to vector<8x134xbf16>
    %38 = vector.extract_strided_slice %26 {offsets = [0, 6], sizes = [8, 134], strides = [1, 1]} : vector<8x256xbf16> to vector<8x134xbf16>
    %39 = vector.extract_strided_slice %30 {offsets = [0, 0], sizes = [8, 8], strides = [1, 1]} : vector<8x56xbf16> to vector<8x8xbf16>
    %cst = arith.constant dense<0.000000e+00> : vector<8x134xf32>
    %40 = tpu.matmul %39, %32, %cst {dimension_numbers = #tpu.dot_dimension_numbers<[1], [0], [0], [1], [0, 0, 1, 1], [], []>} : vector<8x8xbf16>, vector<8x134xbf16>, vector<8x134xf32> -> vector<8x134xf32>
    %41 = vector.extract_strided_slice %30 {offsets = [0, 8], sizes = [8, 8], strides = [1, 1]} : vector<8x56xbf16> to vector<8x8xbf16>
    %cst_18 = arith.constant dense<0.000000e+00> : vector<8x134xf32>
    %42 = tpu.matmul %41, %33, %cst_18 {dimension_numbers = #tpu.dot_dimension_numbers<[1], [0], [0], [1], [0, 0, 1, 1], [], []>} : vector<8x8xbf16>, vector<8x134xbf16>, vector<8x134xf32> -> vector<8x134xf32>
    %43 = arith.addf %40, %42 : vector<8x134xf32>
    %44 = vector.extract_strided_slice %30 {offsets = [0, 16], sizes = [8, 8], strides = [1, 1]} : vector<8x56xbf16> to vector<8x8xbf16>
    %cst_19 = arith.constant dense<0.000000e+00> : vector<8x134xf32>
    %45 = tpu.matmul %44, %34, %cst_19 {dimension_numbers = #tpu.dot_dimension_numbers<[1], [0], [0], [1], [0, 0, 1, 1], [], []>} : vector<8x8xbf16>, vector<8x134xbf16>, vector<8x134xf32> -> vector<8x134xf32>
    %46 = arith.addf %43, %45 : vector<8x134xf32>
    %47 = vector.extract_strided_slice %30 {offsets = [0, 24], sizes = [8, 8], strides = [1, 1]} : vector<8x56xbf16> to vector<8x8xbf16>
    %cst_20 = arith.constant dense<0.000000e+00> : vector<8x134xf32>
    %48 = tpu.matmul %47, %35, %cst_20 {dimension_numbers = #tpu.dot_dimension_numbers<[1], [0], [0], [1], [0, 0, 1, 1], [], []>} : vector<8x8xbf16>, vector<8x134xbf16>, vector<8x134xf32> -> vector<8x134xf32>
    %49 = arith.addf %46, %48 : vector<8x134xf32>
    %50 = vector.extract_strided_slice %30 {offsets = [0, 32], sizes = [8, 8], strides = [1, 1]} : vector<8x56xbf16> to vector<8x8xbf16>
    %cst_21 = arith.constant dense<0.000000e+00> : vector<8x134xf32>
    %51 = tpu.matmul %50, %36, %cst_21 {dimension_numbers = #tpu.dot_dimension_numbers<[1], [0], [0], [1], [0, 0, 1, 1], [], []>} : vector<8x8xbf16>, vector<8x134xbf16>, vector<8x134xf32> -> vector<8x134xf32>
    %52 = arith.addf %49, %51 : vector<8x134xf32>
    %53 = vector.extract_strided_slice %30 {offsets = [0, 40], sizes = [8, 8], strides = [1, 1]} : vector<8x56xbf16> to vector<8x8xbf16>
    %cst_22 = arith.constant dense<0.000000e+00> : vector<8x134xf32>
    %54 = tpu.matmul %53, %37, %cst_22 {dimension_numbers = #tpu.dot_dimension_numbers<[1], [0], [0], [1], [0, 0, 1, 1], [], []>} : vector<8x8xbf16>, vector<8x134xbf16>, vector<8x134xf32> -> vector<8x134xf32>
    %55 = arith.addf %52, %54 : vector<8x134xf32>
    %56 = vector.extract_strided_slice %30 {offsets = [0, 48], sizes = [8, 8], strides = [1, 1]} : vector<8x56xbf16> to vector<8x8xbf16>
    %cst_23 = arith.constant dense<0.000000e+00> : vector<8x134xf32>
    %57 = tpu.matmul %56, %38, %cst_23 {dimension_numbers = #tpu.dot_dimension_numbers<[1], [0], [0], [1], [0, 0, 1, 1], [], []>} : vector<8x8xbf16>, vector<8x134xbf16>, vector<8x134xf32> -> vector<8x134xf32>
    %58 = arith.addf %55, %57 : vector<8x134xf32>
    %59 = vector.broadcast %31 : vector<8x1xf32> to vector<8x134xf32>
    %60 = arith.addf %58, %59 : vector<8x134xf32>
    %cst_24 = arith.constant 0.000000e+00 : f32
    %61 = vector.broadcast %cst_24 : f32 to vector<8x134xf32>
    %62 = arith.maximumf %60, %61 : vector<8x134xf32>
    %63 = tpu.iota {dimensions = array<i32: 1>} : vector<1x134xi32>
    %c128_i32_25 = arith.constant 128 : i32
    %64 = arith.muli %arg1, %c128_i32_25 : i32
    %c3_i32 = arith.constant 3 : i32
    %65 = arith.subi %64, %c3_i32 : i32
    %66 = vector.broadcast %65 : i32 to vector<1x134xi32>
    %67 = arith.addi %66, %63 : vector<1x134xi32>
    %c0_i32_26 = arith.constant 0 : i32
    %68 = vector.broadcast %c0_i32_26 : i32 to vector<1x134xi32>
    %69 = arith.cmpi sge, %67, %68 : vector<1x134xi32>
    %c16_i32 = arith.constant 16 : i32
    %70 = vector.broadcast %c16_i32 : i32 to vector<1x134xi32>
    %71 = arith.cmpi slt, %67, %70 : vector<1x134xi32>
    %72 = arith.andi %69, %71 : vector<1x134xi1>
    %cst_27 = arith.constant 0.000000e+00 : f32
    %73 = vector.shape_cast %72 : vector<1x134xi1> to vector<1x134xi1>
    %74 = vector.broadcast %73 : vector<1x134xi1> to vector<8x134xi1>
    %75 = vector.broadcast %cst_27 : f32 to vector<8x134xf32>
    %76 = arith.select %74, %62, %75 : vector<8x134xi1>, vector<8x134xf32>
    %77 = arith.truncf %76 : vector<8x134xf32> to vector<8x134xbf16>
    %c0_28 = arith.constant 0 : index
    %c0_29 = arith.constant 0 : index
    %78 = vector.load %arg5[%c0_28, %c0_29] : memref<8x56xbf16, #tpu.memory_space<vmem>>, vector<8x56xbf16>
    %79 = vector.extract_strided_slice %77 {offsets = [0, 0], sizes = [8, 128], strides = [1, 1]} : vector<8x134xbf16> to vector<8x128xbf16>
    %80 = vector.extract_strided_slice %77 {offsets = [0, 1], sizes = [8, 128], strides = [1, 1]} : vector<8x134xbf16> to vector<8x128xbf16>
    %81 = vector.extract_strided_slice %77 {offsets = [0, 2], sizes = [8, 128], strides = [1, 1]} : vector<8x134xbf16> to vector<8x128xbf16>
    %82 = vector.extract_strided_slice %77 {offsets = [0, 3], sizes = [8, 128], strides = [1, 1]} : vector<8x134xbf16> to vector<8x128xbf16>
    %83 = vector.extract_strided_slice %77 {offsets = [0, 4], sizes = [8, 128], strides = [1, 1]} : vector<8x134xbf16> to vector<8x128xbf16>
    %84 = vector.extract_strided_slice %77 {offsets = [0, 5], sizes = [8, 128], strides = [1, 1]} : vector<8x134xbf16> to vector<8x128xbf16>
    %85 = vector.extract_strided_slice %77 {offsets = [0, 6], sizes = [8, 128], strides = [1, 1]} : vector<8x134xbf16> to vector<8x128xbf16>
    %86 = vector.extract_strided_slice %78 {offsets = [0, 0], sizes = [8, 8], strides = [1, 1]} : vector<8x56xbf16> to vector<8x8xbf16>
    %cst_30 = arith.constant dense<0.000000e+00> : vector<8x128xf32>
    %87 = tpu.matmul %86, %79, %cst_30 {dimension_numbers = #tpu.dot_dimension_numbers<[1], [0], [0], [1], [0, 0, 1, 1], [], []>} : vector<8x8xbf16>, vector<8x128xbf16>, vector<8x128xf32> -> vector<8x128xf32>
    %88 = vector.extract_strided_slice %78 {offsets = [0, 8], sizes = [8, 8], strides = [1, 1]} : vector<8x56xbf16> to vector<8x8xbf16>
    %cst_31 = arith.constant dense<0.000000e+00> : vector<8x128xf32>
    %89 = tpu.matmul %88, %80, %cst_31 {dimension_numbers = #tpu.dot_dimension_numbers<[1], [0], [0], [1], [0, 0, 1, 1], [], []>} : vector<8x8xbf16>, vector<8x128xbf16>, vector<8x128xf32> -> vector<8x128xf32>
    %90 = arith.addf %87, %89 : vector<8x128xf32>
    %91 = vector.extract_strided_slice %78 {offsets = [0, 16], sizes = [8, 8], strides = [1, 1]} : vector<8x56xbf16> to vector<8x8xbf16>
    %cst_32 = arith.constant dense<0.000000e+00> : vector<8x128xf32>
    %92 = tpu.matmul %91, %81, %cst_32 {dimension_numbers = #tpu.dot_dimension_numbers<[1], [0], [0], [1], [0, 0, 1, 1], [], []>} : vector<8x8xbf16>, vector<8x128xbf16>, vector<8x128xf32> -> vector<8x128xf32>
    %93 = arith.addf %90, %92 : vector<8x128xf32>
    %94 = vector.extract_strided_slice %78 {offsets = [0, 24], sizes = [8, 8], strides = [1, 1]} : vector<8x56xbf16> to vector<8x8xbf16>
    %cst_33 = arith.constant dense<0.000000e+00> : vector<8x128xf32>
    %95 = tpu.matmul %94, %82, %cst_33 {dimension_numbers = #tpu.dot_dimension_numbers<[1], [0], [0], [1], [0, 0, 1, 1], [], []>} : vector<8x8xbf16>, vector<8x128xbf16>, vector<8x128xf32> -> vector<8x128xf32>
    %96 = arith.addf %93, %95 : vector<8x128xf32>
    %97 = vector.extract_strided_slice %78 {offsets = [0, 32], sizes = [8, 8], strides = [1, 1]} : vector<8x56xbf16> to vector<8x8xbf16>
    %cst_34 = arith.constant dense<0.000000e+00> : vector<8x128xf32>
    %98 = tpu.matmul %97, %83, %cst_34 {dimension_numbers = #tpu.dot_dimension_numbers<[1], [0], [0], [1], [0, 0, 1, 1], [], []>} : vector<8x8xbf16>, vector<8x128xbf16>, vector<8x128xf32> -> vector<8x128xf32>
    %99 = arith.addf %96, %98 : vector<8x128xf32>
    %100 = vector.extract_strided_slice %78 {offsets = [0, 40], sizes = [8, 8], strides = [1, 1]} : vector<8x56xbf16> to vector<8x8xbf16>
    %cst_35 = arith.constant dense<0.000000e+00> : vector<8x128xf32>
    %101 = tpu.matmul %100, %84, %cst_35 {dimension_numbers = #tpu.dot_dimension_numbers<[1], [0], [0], [1], [0, 0, 1, 1], [], []>} : vector<8x8xbf16>, vector<8x128xbf16>, vector<8x128xf32> -> vector<8x128xf32>
    %102 = arith.addf %99, %101 : vector<8x128xf32>
    %103 = vector.extract_strided_slice %78 {offsets = [0, 48], sizes = [8, 8], strides = [1, 1]} : vector<8x56xbf16> to vector<8x8xbf16>
    %cst_36 = arith.constant dense<0.000000e+00> : vector<8x128xf32>
    %104 = tpu.matmul %103, %85, %cst_36 {dimension_numbers = #tpu.dot_dimension_numbers<[1], [0], [0], [1], [0, 0, 1, 1], [], []>} : vector<8x8xbf16>, vector<8x128xbf16>, vector<8x128xf32> -> vector<8x128xf32>
    %105 = arith.addf %102, %104 : vector<8x128xf32>
    %106 = tpu.iota {dimensions = array<i32: 1>} : vector<1x128xi32>
    %c128_i32_37 = arith.constant 128 : i32
    %107 = arith.muli %arg1, %c128_i32_37 : i32
    %108 = vector.broadcast %107 : i32 to vector<1x128xi32>
    %109 = arith.addi %108, %106 : vector<1x128xi32>
    %c16_i32_38 = arith.constant 16 : i32
    %110 = vector.broadcast %c16_i32_38 : i32 to vector<1x128xi32>
    %111 = arith.cmpi slt, %109, %110 : vector<1x128xi32>
    %cst_39 = arith.constant 0.000000e+00 : f32
    %112 = vector.shape_cast %111 : vector<1x128xi1> to vector<1x128xi1>
    %113 = vector.broadcast %112 : vector<1x128xi1> to vector<8x128xi1>
    %114 = vector.broadcast %cst_39 : f32 to vector<8x128xf32>
    %115 = arith.select %113, %105, %114 : vector<8x128xi1>, vector<8x128xf32>
    %c0_40 = arith.constant 0 : index
    %c0_41 = arith.constant 0 : index
    %c0_42 = arith.constant 0 : index
    %116 = vector.load %arg6[%c0_40, %c0_41, %c0_42] : memref<1x8x1xf32, #tpu.memory_space<vmem>>, vector<1x8x1xf32>
    %117 = vector.shape_cast %116 : vector<1x8x1xf32> to vector<8x1xf32>
    %cst_43 = arith.constant dense<0.000000e+00> : vector<8xf32>
    %118 = vector.multi_reduction <add>, %115, %cst_43 [1] : vector<8x128xf32> to vector<8xf32>
    %119 = vector.shape_cast %118 : vector<8xf32> to vector<8x1xf32>
    %120 = arith.addf %117, %119 : vector<8x1xf32>
    %c0_44 = arith.constant 0 : index
    %c0_45 = arith.constant 0 : index
    %c0_46 = arith.constant 0 : index
    %121 = vector.load %arg6[%c0_44, %c0_45, %c0_46] : memref<1x8x1xf32, #tpu.memory_space<vmem>>, vector<1x8x1xf32>
    %122 = vector.shape_cast %121 : vector<1x8x1xf32> to vector<8x1xf32>
    %123 = vector.shape_cast %120 : vector<8x1xf32> to vector<1x8x1xf32>
    tpu.vector_store %arg6[%c0_44, %c0_45, %c0_46], %123 {strides = array<i32>} : memref<1x8x1xf32, #tpu.memory_space<vmem>>, vector<1x8x1xf32>,
    %c0_47 = arith.constant 0 : index
    %c0_48 = arith.constant 0 : index
    %c0_49 = arith.constant 0 : index
    %124 = vector.load %arg7[%c0_47, %c0_48, %c0_49] : memref<1x8x1xf32, #tpu.memory_space<vmem>>, vector<1x8x1xf32>
    %125 = vector.shape_cast %124 : vector<1x8x1xf32> to vector<8x1xf32>
    %126 = arith.mulf %115, %115 : vector<8x128xf32>
    %cst_50 = arith.constant dense<0.000000e+00> : vector<8xf32>
    %127 = vector.multi_reduction <add>, %126, %cst_50 [1] : vector<8x128xf32> to vector<8xf32>
    %128 = vector.shape_cast %127 : vector<8xf32> to vector<8x1xf32>
    %129 = arith.addf %125, %128 : vector<8x1xf32>
    %c0_51 = arith.constant 0 : index
    %c0_52 = arith.constant 0 : index
    %c0_53 = arith.constant 0 : index
    %130 = vector.load %arg7[%c0_51, %c0_52, %c0_53] : memref<1x8x1xf32, #tpu.memory_space<vmem>>, vector<1x8x1xf32>
    %131 = vector.shape_cast %130 : vector<1x8x1xf32> to vector<8x1xf32>
    %132 = vector.shape_cast %129 : vector<8x1xf32> to vector<1x8x1xf32>
    tpu.vector_store %arg7[%c0_51, %c0_52, %c0_53], %132 {strides = array<i32>} : memref<1x8x1xf32, #tpu.memory_space<vmem>>, vector<1x8x1xf32>,
    return
  }
  func.func @transform_1(%arg0: i32, %arg1: i32) -> (i32, i32) {
    %c0_i32 = arith.constant 0 : i32
    %c0_i32_0 = arith.constant 0 : i32
    %c0_i32_1 = arith.constant 0 : i32
    return %c0_i32, %c0_i32_0 : i32, i32
  }
  func.func @transform_2(%arg0: i32, %arg1: i32) -> (i32, i32) {
    %c0_i32 = arith.constant 0 : i32
    %c0_i32_0 = arith.constant 0 : i32
    %c0_i32_1 = arith.constant 0 : i32
    return %c0_i32, %c0_i32_0 : i32, i32
  }
  func.func @transform_3(%arg0: i32, %arg1: i32) -> (i32, i32) {
    %c0_i32 = arith.constant 0 : i32
    %c0_i32_0 = arith.constant 0 : i32
    %c0_i32_1 = arith.constant 0 : i32
    return %c0_i32, %c0_i32_0 : i32, i32
  }
  func.func @transform_4(%arg0: i32, %arg1: i32) -> (i32, i32, i32) {
    %c0_i32 = arith.constant 0 : i32
    %c0_i32_0 = arith.constant 0 : i32
    %c0_i32_1 = arith.constant 0 : i32
    return %arg0, %c0_i32, %c0_i32_0 : i32, i32, i32
  }
  func.func @transform_5(%arg0: i32, %arg1: i32) -> (i32, i32, i32) {
    %c0_i32 = arith.constant 0 : i32
    %c0_i32_0 = arith.constant 0 : i32
    %c0_i32_1 = arith.constant 0 : i32
    return %arg0, %c0_i32, %c0_i32_0 : i32, i32, i32
  }
}

module attributes {stable_mosaic.version = 11 : i64} {
  func.func @_residual_out_kernel(%arg0: i32, %arg1: i32, %arg2: memref<2x8x256xbf16, #tpu.memory_space<any>>, %arg3: memref<1x8x128xf32, #tpu.memory_space<vmem>>, %arg4: memref<8x56xbf16, #tpu.memory_space<vmem>>, %arg5: memref<8x1xf32, #tpu.memory_space<vmem>>, %arg6: memref<8x56xbf16, #tpu.memory_space<vmem>>, %arg7: memref<8x1xf32, #tpu.memory_space<vmem>>, %arg8: memref<1x8x1xf32, #tpu.memory_space<vmem>>, %arg9: memref<1x8x128xf32, #tpu.memory_space<vmem>>, %arg10: memref<2x8x256xbf16, #tpu.memory_space<vmem>>, %arg11: memref<2x!tpu.dma_semaphore, #tpu.memory_space<semaphore_mem>>) attributes {dimension_semantics = [#tpu.dimension_semantics<parallel>, #tpu.dimension_semantics<arbitrary>], iteration_bounds = array<i64: 2, 1>, scalar_prefetch = 0 : i64, scratch_operands = 2 : i64, tpu.core_type = #tpu.core_type<tc>, window_params = [{}, {transform_indices = @transform_1, window_bounds = array<i64: 1, 8, 128>}, {pipeline_mode = #tpu.pipeline_mode<synchronous>, transform_indices = @transform_2, window_bounds = array<i64: 8, 56>}, {pipeline_mode = #tpu.pipeline_mode<synchronous>, transform_indices = @transform_3, window_bounds = array<i64: 8, 1>}, {pipeline_mode = #tpu.pipeline_mode<synchronous>, transform_indices = @transform_4, window_bounds = array<i64: 8, 56>}, {pipeline_mode = #tpu.pipeline_mode<synchronous>, transform_indices = @transform_5, window_bounds = array<i64: 8, 1>}, {transform_indices = @transform_6, window_bounds = array<i64: 1, 8, 1>}, {transform_indices = @transform_7, window_bounds = array<i64: 1, 8, 128>}]} {
    %c2_i32 = arith.constant 2 : i32
    %c0_i32 = arith.constant 0 : i32
    %0 = arith.cmpi eq, %c2_i32, %c0_i32 : i32
    %c1_i32 = arith.constant 1 : i32
    %1 = arith.select %0, %c1_i32, %c2_i32 : i32
    %2 = arith.remsi %arg1, %1 : i32
    %c0_i32_0 = arith.constant 0 : i32
    %3 = arith.cmpi ne, %2, %c0_i32_0 : i32
    %c0_i32_1 = arith.constant 0 : i32
    %4 = arith.cmpi slt, %2, %c0_i32_1 : i32
    %c0_i32_2 = arith.constant 0 : i32
    %5 = arith.cmpi slt, %1, %c0_i32_2 : i32
    %6 = arith.xori %4, %5 : i1
    %7 = arith.andi %6, %3 : i1
    %8 = arith.addi %2, %1 : i32
    %9 = arith.select %7, %8, %2 : i32
    %c0_i32_3 = arith.constant 0 : i32
    %10 = arith.cmpi eq, %arg1, %c0_i32_3 : i32
    %11 = arith.extui %10 : i1 to i32
    %c0_i32_4 = arith.constant 0 : i32
    %12 = arith.cmpi ne, %11, %c0_i32_4 : i32
    scf.if %12 {
      %c128_i32_47 = arith.constant 128 : i32
      %118 = arith.muli %arg1, %c128_i32_47 : i32
      %c0_i32_48 = arith.constant 0 : i32
      %119 = tpu.memref_slice %arg2[%arg0, %c0_i32_48, %118] : memref<2x8x256xbf16, #tpu.memory_space<any>> -> memref<1x8x256xbf16, #tpu.memory_space<any>>
      %120 = tpu.memref_squeeze %119 : memref<1x8x256xbf16, #tpu.memory_space<any>> -> memref<8x256xbf16, #tpu.memory_space<any>>
      %c0_i32_49 = arith.constant 0 : i32
      %c0_i32_50 = arith.constant 0 : i32
      %121 = tpu.memref_slice %arg10[%9, %c0_i32_49, %c0_i32_50] : memref<2x8x256xbf16, #tpu.memory_space<vmem>> -> memref<1x8x256xbf16, #tpu.memory_space<vmem>>
      %122 = tpu.memref_squeeze %121 : memref<1x8x256xbf16, #tpu.memory_space<vmem>> -> memref<8x256xbf16, #tpu.memory_space<vmem>>
      %123 = tpu.memref_slice %arg11[%9] : memref<2x!tpu.dma_semaphore, #tpu.memory_space<semaphore_mem>> -> memref<1x!tpu.dma_semaphore, #tpu.memory_space<semaphore_mem>>
      %124 = tpu.memref_squeeze %123 : memref<1x!tpu.dma_semaphore, #tpu.memory_space<semaphore_mem>> -> memref<!tpu.dma_semaphore, #tpu.memory_space<semaphore_mem>>
      tpu.enqueue_dma source(%120 : memref<8x256xbf16, #tpu.memory_space<any>>) target(%122 : memref<8x256xbf16, #tpu.memory_space<vmem>>) target_semaphore(%124 : memref<!tpu.dma_semaphore, #tpu.memory_space<semaphore_mem>>)
    } else {
    }
    %c1_i32_5 = arith.constant 1 : i32
    %13 = arith.addi %arg1, %c1_i32_5 : i32
    %c1_i32_6 = arith.constant 1 : i32
    %14 = arith.cmpi slt, %13, %c1_i32_6 : i32
    %15 = arith.extui %14 : i1 to i32
    %c0_i32_7 = arith.constant 0 : i32
    %16 = arith.cmpi ne, %15, %c0_i32_7 : i32
    scf.if %16 {
      %c1_i32_47 = arith.constant 1 : i32
      %118 = arith.addi %arg1, %c1_i32_47 : i32
      %c1_i32_48 = arith.constant 1 : i32
      %119 = arith.addi %arg1, %c1_i32_48 : i32
      %c2_i32_49 = arith.constant 2 : i32
      %c0_i32_50 = arith.constant 0 : i32
      %120 = arith.cmpi eq, %c2_i32_49, %c0_i32_50 : i32
      %c1_i32_51 = arith.constant 1 : i32
      %121 = arith.select %120, %c1_i32_51, %c2_i32_49 : i32
      %122 = arith.remsi %119, %121 : i32
      %c0_i32_52 = arith.constant 0 : i32
      %123 = arith.cmpi ne, %122, %c0_i32_52 : i32
      %c0_i32_53 = arith.constant 0 : i32
      %124 = arith.cmpi slt, %122, %c0_i32_53 : i32
      %c0_i32_54 = arith.constant 0 : i32
      %125 = arith.cmpi slt, %121, %c0_i32_54 : i32
      %126 = arith.xori %124, %125 : i1
      %127 = arith.andi %126, %123 : i1
      %128 = arith.addi %122, %121 : i32
      %129 = arith.select %127, %128, %122 : i32
      %c128_i32_55 = arith.constant 128 : i32
      %130 = arith.muli %118, %c128_i32_55 : i32
      %c0_i32_56 = arith.constant 0 : i32
      %131 = tpu.memref_slice %arg2[%arg0, %c0_i32_56, %130] : memref<2x8x256xbf16, #tpu.memory_space<any>> -> memref<1x8x256xbf16, #tpu.memory_space<any>>
      %132 = tpu.memref_squeeze %131 : memref<1x8x256xbf16, #tpu.memory_space<any>> -> memref<8x256xbf16, #tpu.memory_space<any>>
      %c0_i32_57 = arith.constant 0 : i32
      %c0_i32_58 = arith.constant 0 : i32
      %133 = tpu.memref_slice %arg10[%129, %c0_i32_57, %c0_i32_58] : memref<2x8x256xbf16, #tpu.memory_space<vmem>> -> memref<1x8x256xbf16, #tpu.memory_space<vmem>>
      %134 = tpu.memref_squeeze %133 : memref<1x8x256xbf16, #tpu.memory_space<vmem>> -> memref<8x256xbf16, #tpu.memory_space<vmem>>
      %135 = tpu.memref_slice %arg11[%129] : memref<2x!tpu.dma_semaphore, #tpu.memory_space<semaphore_mem>> -> memref<1x!tpu.dma_semaphore, #tpu.memory_space<semaphore_mem>>
      %136 = tpu.memref_squeeze %135 : memref<1x!tpu.dma_semaphore, #tpu.memory_space<semaphore_mem>> -> memref<!tpu.dma_semaphore, #tpu.memory_space<semaphore_mem>>
      tpu.enqueue_dma source(%132 : memref<8x256xbf16, #tpu.memory_space<any>>) target(%134 : memref<8x256xbf16, #tpu.memory_space<vmem>>) target_semaphore(%136 : memref<!tpu.dma_semaphore, #tpu.memory_space<semaphore_mem>>)
    } else {
    }
    %c128_i32 = arith.constant 128 : i32
    %17 = arith.muli %arg1, %c128_i32 : i32
    %c0_i32_8 = arith.constant 0 : i32
    %18 = tpu.memref_slice %arg2[%arg0, %c0_i32_8, %17] : memref<2x8x256xbf16, #tpu.memory_space<any>> -> memref<1x8x256xbf16, #tpu.memory_space<any>>
    %19 = tpu.memref_squeeze %18 : memref<1x8x256xbf16, #tpu.memory_space<any>> -> memref<8x256xbf16, #tpu.memory_space<any>>
    %c0_i32_9 = arith.constant 0 : i32
    %c0_i32_10 = arith.constant 0 : i32
    %20 = tpu.memref_slice %arg10[%9, %c0_i32_9, %c0_i32_10] : memref<2x8x256xbf16, #tpu.memory_space<vmem>> -> memref<1x8x256xbf16, #tpu.memory_space<vmem>>
    %21 = tpu.memref_squeeze %20 : memref<1x8x256xbf16, #tpu.memory_space<vmem>> -> memref<8x256xbf16, #tpu.memory_space<vmem>>
    %22 = tpu.memref_slice %arg11[%9] : memref<2x!tpu.dma_semaphore, #tpu.memory_space<semaphore_mem>> -> memref<1x!tpu.dma_semaphore, #tpu.memory_space<semaphore_mem>>
    %23 = tpu.memref_squeeze %22 : memref<1x!tpu.dma_semaphore, #tpu.memory_space<semaphore_mem>> -> memref<!tpu.dma_semaphore, #tpu.memory_space<semaphore_mem>>
    tpu.wait_dma2 semaphore(%23 : memref<!tpu.dma_semaphore, #tpu.memory_space<semaphore_mem>>) src(%19 : memref<8x256xbf16, #tpu.memory_space<any>>) dst(%21 : memref<8x256xbf16, #tpu.memory_space<vmem>>)
    %24 = arith.index_cast %9 : i32 to index
    %c0 = arith.constant 0 : index
    %c0_11 = arith.constant 0 : index
    %25 = vector.load %arg10[%24, %c0, %c0_11] : memref<2x8x256xbf16, #tpu.memory_space<vmem>>, vector<1x8x256xbf16>
    %26 = vector.shape_cast %25 : vector<1x8x256xbf16> to vector<8x256xbf16>
    %c0_12 = arith.constant 0 : index
    %c0_13 = arith.constant 0 : index
    %27 = vector.load %arg4[%c0_12, %c0_13] : memref<8x56xbf16, #tpu.memory_space<vmem>>, vector<8x56xbf16>
    %c0_14 = arith.constant 0 : index
    %c0_15 = arith.constant 0 : index
    %28 = vector.load %arg5[%c0_14, %c0_15] : memref<8x1xf32, #tpu.memory_space<vmem>>, vector<8x1xf32>
    %29 = vector.extract_strided_slice %26 {offsets = [0, 0], sizes = [8, 134], strides = [1, 1]} : vector<8x256xbf16> to vector<8x134xbf16>
    %30 = vector.extract_strided_slice %26 {offsets = [0, 1], sizes = [8, 134], strides = [1, 1]} : vector<8x256xbf16> to vector<8x134xbf16>
    %31 = vector.extract_strided_slice %26 {offsets = [0, 2], sizes = [8, 134], strides = [1, 1]} : vector<8x256xbf16> to vector<8x134xbf16>
    %32 = vector.extract_strided_slice %26 {offsets = [0, 3], sizes = [8, 134], strides = [1, 1]} : vector<8x256xbf16> to vector<8x134xbf16>
    %33 = vector.extract_strided_slice %26 {offsets = [0, 4], sizes = [8, 134], strides = [1, 1]} : vector<8x256xbf16> to vector<8x134xbf16>
    %34 = vector.extract_strided_slice %26 {offsets = [0, 5], sizes = [8, 134], strides = [1, 1]} : vector<8x256xbf16> to vector<8x134xbf16>
    %35 = vector.extract_strided_slice %26 {offsets = [0, 6], sizes = [8, 134], strides = [1, 1]} : vector<8x256xbf16> to vector<8x134xbf16>
    %36 = vector.extract_strided_slice %27 {offsets = [0, 0], sizes = [8, 8], strides = [1, 1]} : vector<8x56xbf16> to vector<8x8xbf16>
    %cst = arith.constant dense<0.000000e+00> : vector<8x134xf32>
    %37 = tpu.matmul %36, %29, %cst {dimension_numbers = #tpu.dot_dimension_numbers<[1], [0], [0], [1], [0, 0, 1, 1], [], []>} : vector<8x8xbf16>, vector<8x134xbf16>, vector<8x134xf32> -> vector<8x134xf32>
    %38 = vector.extract_strided_slice %27 {offsets = [0, 8], sizes = [8, 8], strides = [1, 1]} : vector<8x56xbf16> to vector<8x8xbf16>
    %cst_16 = arith.constant dense<0.000000e+00> : vector<8x134xf32>
    %39 = tpu.matmul %38, %30, %cst_16 {dimension_numbers = #tpu.dot_dimension_numbers<[1], [0], [0], [1], [0, 0, 1, 1], [], []>} : vector<8x8xbf16>, vector<8x134xbf16>, vector<8x134xf32> -> vector<8x134xf32>
    %40 = arith.addf %37, %39 : vector<8x134xf32>
    %41 = vector.extract_strided_slice %27 {offsets = [0, 16], sizes = [8, 8], strides = [1, 1]} : vector<8x56xbf16> to vector<8x8xbf16>
    %cst_17 = arith.constant dense<0.000000e+00> : vector<8x134xf32>
    %42 = tpu.matmul %41, %31, %cst_17 {dimension_numbers = #tpu.dot_dimension_numbers<[1], [0], [0], [1], [0, 0, 1, 1], [], []>} : vector<8x8xbf16>, vector<8x134xbf16>, vector<8x134xf32> -> vector<8x134xf32>
    %43 = arith.addf %40, %42 : vector<8x134xf32>
    %44 = vector.extract_strided_slice %27 {offsets = [0, 24], sizes = [8, 8], strides = [1, 1]} : vector<8x56xbf16> to vector<8x8xbf16>
    %cst_18 = arith.constant dense<0.000000e+00> : vector<8x134xf32>
    %45 = tpu.matmul %44, %32, %cst_18 {dimension_numbers = #tpu.dot_dimension_numbers<[1], [0], [0], [1], [0, 0, 1, 1], [], []>} : vector<8x8xbf16>, vector<8x134xbf16>, vector<8x134xf32> -> vector<8x134xf32>
    %46 = arith.addf %43, %45 : vector<8x134xf32>
    %47 = vector.extract_strided_slice %27 {offsets = [0, 32], sizes = [8, 8], strides = [1, 1]} : vector<8x56xbf16> to vector<8x8xbf16>
    %cst_19 = arith.constant dense<0.000000e+00> : vector<8x134xf32>
    %48 = tpu.matmul %47, %33, %cst_19 {dimension_numbers = #tpu.dot_dimension_numbers<[1], [0], [0], [1], [0, 0, 1, 1], [], []>} : vector<8x8xbf16>, vector<8x134xbf16>, vector<8x134xf32> -> vector<8x134xf32>
    %49 = arith.addf %46, %48 : vector<8x134xf32>
    %50 = vector.extract_strided_slice %27 {offsets = [0, 40], sizes = [8, 8], strides = [1, 1]} : vector<8x56xbf16> to vector<8x8xbf16>
    %cst_20 = arith.constant dense<0.000000e+00> : vector<8x134xf32>
    %51 = tpu.matmul %50, %34, %cst_20 {dimension_numbers = #tpu.dot_dimension_numbers<[1], [0], [0], [1], [0, 0, 1, 1], [], []>} : vector<8x8xbf16>, vector<8x134xbf16>, vector<8x134xf32> -> vector<8x134xf32>
    %52 = arith.addf %49, %51 : vector<8x134xf32>
    %53 = vector.extract_strided_slice %27 {offsets = [0, 48], sizes = [8, 8], strides = [1, 1]} : vector<8x56xbf16> to vector<8x8xbf16>
    %cst_21 = arith.constant dense<0.000000e+00> : vector<8x134xf32>
    %54 = tpu.matmul %53, %35, %cst_21 {dimension_numbers = #tpu.dot_dimension_numbers<[1], [0], [0], [1], [0, 0, 1, 1], [], []>} : vector<8x8xbf16>, vector<8x134xbf16>, vector<8x134xf32> -> vector<8x134xf32>
    %55 = arith.addf %52, %54 : vector<8x134xf32>
    %56 = vector.broadcast %28 : vector<8x1xf32> to vector<8x134xf32>
    %57 = arith.addf %55, %56 : vector<8x134xf32>
    %cst_22 = arith.constant 0.000000e+00 : f32
    %58 = vector.broadcast %cst_22 : f32 to vector<8x134xf32>
    %59 = arith.maximumf %57, %58 : vector<8x134xf32>
    %60 = tpu.iota {dimensions = array<i32: 1>} : vector<1x134xi32>
    %c128_i32_23 = arith.constant 128 : i32
    %61 = arith.muli %arg1, %c128_i32_23 : i32
    %c3_i32 = arith.constant 3 : i32
    %62 = arith.subi %61, %c3_i32 : i32
    %63 = vector.broadcast %62 : i32 to vector<1x134xi32>
    %64 = arith.addi %63, %60 : vector<1x134xi32>
    %c0_i32_24 = arith.constant 0 : i32
    %65 = vector.broadcast %c0_i32_24 : i32 to vector<1x134xi32>
    %66 = arith.cmpi sge, %64, %65 : vector<1x134xi32>
    %c16_i32 = arith.constant 16 : i32
    %67 = vector.broadcast %c16_i32 : i32 to vector<1x134xi32>
    %68 = arith.cmpi slt, %64, %67 : vector<1x134xi32>
    %69 = arith.andi %66, %68 : vector<1x134xi1>
    %cst_25 = arith.constant 0.000000e+00 : f32
    %70 = vector.shape_cast %69 : vector<1x134xi1> to vector<1x134xi1>
    %71 = vector.broadcast %70 : vector<1x134xi1> to vector<8x134xi1>
    %72 = vector.broadcast %cst_25 : f32 to vector<8x134xf32>
    %73 = arith.select %71, %59, %72 : vector<8x134xi1>, vector<8x134xf32>
    %74 = arith.truncf %73 : vector<8x134xf32> to vector<8x134xbf16>
    %c0_26 = arith.constant 0 : index
    %c0_27 = arith.constant 0 : index
    %75 = vector.load %arg6[%c0_26, %c0_27] : memref<8x56xbf16, #tpu.memory_space<vmem>>, vector<8x56xbf16>
    %76 = vector.extract_strided_slice %74 {offsets = [0, 0], sizes = [8, 128], strides = [1, 1]} : vector<8x134xbf16> to vector<8x128xbf16>
    %77 = vector.extract_strided_slice %74 {offsets = [0, 1], sizes = [8, 128], strides = [1, 1]} : vector<8x134xbf16> to vector<8x128xbf16>
    %78 = vector.extract_strided_slice %74 {offsets = [0, 2], sizes = [8, 128], strides = [1, 1]} : vector<8x134xbf16> to vector<8x128xbf16>
    %79 = vector.extract_strided_slice %74 {offsets = [0, 3], sizes = [8, 128], strides = [1, 1]} : vector<8x134xbf16> to vector<8x128xbf16>
    %80 = vector.extract_strided_slice %74 {offsets = [0, 4], sizes = [8, 128], strides = [1, 1]} : vector<8x134xbf16> to vector<8x128xbf16>
    %81 = vector.extract_strided_slice %74 {offsets = [0, 5], sizes = [8, 128], strides = [1, 1]} : vector<8x134xbf16> to vector<8x128xbf16>
    %82 = vector.extract_strided_slice %74 {offsets = [0, 6], sizes = [8, 128], strides = [1, 1]} : vector<8x134xbf16> to vector<8x128xbf16>
    %83 = vector.extract_strided_slice %75 {offsets = [0, 0], sizes = [8, 8], strides = [1, 1]} : vector<8x56xbf16> to vector<8x8xbf16>
    %cst_28 = arith.constant dense<0.000000e+00> : vector<8x128xf32>
    %84 = tpu.matmul %83, %76, %cst_28 {dimension_numbers = #tpu.dot_dimension_numbers<[1], [0], [0], [1], [0, 0, 1, 1], [], []>} : vector<8x8xbf16>, vector<8x128xbf16>, vector<8x128xf32> -> vector<8x128xf32>
    %85 = vector.extract_strided_slice %75 {offsets = [0, 8], sizes = [8, 8], strides = [1, 1]} : vector<8x56xbf16> to vector<8x8xbf16>
    %cst_29 = arith.constant dense<0.000000e+00> : vector<8x128xf32>
    %86 = tpu.matmul %85, %77, %cst_29 {dimension_numbers = #tpu.dot_dimension_numbers<[1], [0], [0], [1], [0, 0, 1, 1], [], []>} : vector<8x8xbf16>, vector<8x128xbf16>, vector<8x128xf32> -> vector<8x128xf32>
    %87 = arith.addf %84, %86 : vector<8x128xf32>
    %88 = vector.extract_strided_slice %75 {offsets = [0, 16], sizes = [8, 8], strides = [1, 1]} : vector<8x56xbf16> to vector<8x8xbf16>
    %cst_30 = arith.constant dense<0.000000e+00> : vector<8x128xf32>
    %89 = tpu.matmul %88, %78, %cst_30 {dimension_numbers = #tpu.dot_dimension_numbers<[1], [0], [0], [1], [0, 0, 1, 1], [], []>} : vector<8x8xbf16>, vector<8x128xbf16>, vector<8x128xf32> -> vector<8x128xf32>
    %90 = arith.addf %87, %89 : vector<8x128xf32>
    %91 = vector.extract_strided_slice %75 {offsets = [0, 24], sizes = [8, 8], strides = [1, 1]} : vector<8x56xbf16> to vector<8x8xbf16>
    %cst_31 = arith.constant dense<0.000000e+00> : vector<8x128xf32>
    %92 = tpu.matmul %91, %79, %cst_31 {dimension_numbers = #tpu.dot_dimension_numbers<[1], [0], [0], [1], [0, 0, 1, 1], [], []>} : vector<8x8xbf16>, vector<8x128xbf16>, vector<8x128xf32> -> vector<8x128xf32>
    %93 = arith.addf %90, %92 : vector<8x128xf32>
    %94 = vector.extract_strided_slice %75 {offsets = [0, 32], sizes = [8, 8], strides = [1, 1]} : vector<8x56xbf16> to vector<8x8xbf16>
    %cst_32 = arith.constant dense<0.000000e+00> : vector<8x128xf32>
    %95 = tpu.matmul %94, %80, %cst_32 {dimension_numbers = #tpu.dot_dimension_numbers<[1], [0], [0], [1], [0, 0, 1, 1], [], []>} : vector<8x8xbf16>, vector<8x128xbf16>, vector<8x128xf32> -> vector<8x128xf32>
    %96 = arith.addf %93, %95 : vector<8x128xf32>
    %97 = vector.extract_strided_slice %75 {offsets = [0, 40], sizes = [8, 8], strides = [1, 1]} : vector<8x56xbf16> to vector<8x8xbf16>
    %cst_33 = arith.constant dense<0.000000e+00> : vector<8x128xf32>
    %98 = tpu.matmul %97, %81, %cst_33 {dimension_numbers = #tpu.dot_dimension_numbers<[1], [0], [0], [1], [0, 0, 1, 1], [], []>} : vector<8x8xbf16>, vector<8x128xbf16>, vector<8x128xf32> -> vector<8x128xf32>
    %99 = arith.addf %96, %98 : vector<8x128xf32>
    %100 = vector.extract_strided_slice %75 {offsets = [0, 48], sizes = [8, 8], strides = [1, 1]} : vector<8x56xbf16> to vector<8x8xbf16>
    %cst_34 = arith.constant dense<0.000000e+00> : vector<8x128xf32>
    %101 = tpu.matmul %100, %82, %cst_34 {dimension_numbers = #tpu.dot_dimension_numbers<[1], [0], [0], [1], [0, 0, 1, 1], [], []>} : vector<8x8xbf16>, vector<8x128xbf16>, vector<8x128xf32> -> vector<8x128xf32>
    %102 = arith.addf %99, %101 : vector<8x128xf32>
    %c0_35 = arith.constant 0 : index
    %c0_36 = arith.constant 0 : index
    %103 = vector.load %arg7[%c0_35, %c0_36] : memref<8x1xf32, #tpu.memory_space<vmem>>, vector<8x1xf32>
    %104 = vector.broadcast %103 : vector<8x1xf32> to vector<8x128xf32>
    %105 = arith.addf %102, %104 : vector<8x128xf32>
    %cst_37 = arith.constant 0.000000e+00 : f32
    %106 = vector.broadcast %cst_37 : f32 to vector<8x128xf32>
    %107 = arith.maximumf %105, %106 : vector<8x128xf32>
    %c0_38 = arith.constant 0 : index
    %c0_39 = arith.constant 0 : index
    %c0_40 = arith.constant 0 : index
    %108 = vector.load %arg3[%c0_38, %c0_39, %c0_40] : memref<1x8x128xf32, #tpu.memory_space<vmem>>, vector<1x8x128xf32>
    %109 = vector.shape_cast %108 : vector<1x8x128xf32> to vector<8x128xf32>
    %110 = arith.addf %109, %107 : vector<8x128xf32>
    %c0_41 = arith.constant 0 : index
    %c0_42 = arith.constant 0 : index
    %c0_43 = arith.constant 0 : index
    %111 = vector.load %arg8[%c0_41, %c0_42, %c0_43] : memref<1x8x1xf32, #tpu.memory_space<vmem>>, vector<1x8x1xf32>
    %112 = vector.shape_cast %111 : vector<1x8x1xf32> to vector<8x1xf32>
    %113 = vector.broadcast %112 : vector<8x1xf32> to vector<8x128xf32>
    %114 = arith.addf %110, %113 : vector<8x128xf32>
    %c0_44 = arith.constant 0 : index
    %c0_45 = arith.constant 0 : index
    %c0_46 = arith.constant 0 : index
    %115 = vector.load %arg9[%c0_44, %c0_45, %c0_46] : memref<1x8x128xf32, #tpu.memory_space<vmem>>, vector<1x8x128xf32>
    %116 = vector.shape_cast %115 : vector<1x8x128xf32> to vector<8x128xf32>
    %117 = vector.shape_cast %114 : vector<8x128xf32> to vector<1x8x128xf32>
    tpu.vector_store %arg9[%c0_44, %c0_45, %c0_46], %117 {strides = array<i32>} : memref<1x8x128xf32, #tpu.memory_space<vmem>>, vector<1x8x128xf32>,
    return
  }
  func.func @transform_1(%arg0: i32, %arg1: i32) -> (i32, i32, i32) {
    %c0_i32 = arith.constant 0 : i32
    %c0_i32_0 = arith.constant 0 : i32
    return %arg0, %c0_i32, %arg1 : i32, i32, i32
  }
  func.func @transform_2(%arg0: i32, %arg1: i32) -> (i32, i32) {
    %c0_i32 = arith.constant 0 : i32
    %c0_i32_0 = arith.constant 0 : i32
    %c0_i32_1 = arith.constant 0 : i32
    return %c0_i32, %c0_i32_0 : i32, i32
  }
  func.func @transform_3(%arg0: i32, %arg1: i32) -> (i32, i32) {
    %c0_i32 = arith.constant 0 : i32
    %c0_i32_0 = arith.constant 0 : i32
    %c0_i32_1 = arith.constant 0 : i32
    return %c0_i32, %c0_i32_0 : i32, i32
  }
  func.func @transform_4(%arg0: i32, %arg1: i32) -> (i32, i32) {
    %c0_i32 = arith.constant 0 : i32
    %c0_i32_0 = arith.constant 0 : i32
    %c0_i32_1 = arith.constant 0 : i32
    return %c0_i32, %c0_i32_0 : i32, i32
  }
  func.func @transform_5(%arg0: i32, %arg1: i32) -> (i32, i32) {
    %c0_i32 = arith.constant 0 : i32
    %c0_i32_0 = arith.constant 0 : i32
    %c0_i32_1 = arith.constant 0 : i32
    return %c0_i32, %c0_i32_0 : i32, i32
  }
  func.func @transform_6(%arg0: i32, %arg1: i32) -> (i32, i32, i32) {
    %c0_i32 = arith.constant 0 : i32
    %c0_i32_0 = arith.constant 0 : i32
    %c0_i32_1 = arith.constant 0 : i32
    return %arg0, %c0_i32, %c0_i32_0 : i32, i32, i32
  }
  func.func @transform_7(%arg0: i32, %arg1: i32) -> (i32, i32, i32) {
    %c0_i32 = arith.constant 0 : i32
    %c0_i32_0 = arith.constant 0 : i32
    return %arg0, %c0_i32, %arg1 : i32, i32, i32
  }
}

</mosaic_0001>

<bundles_post_ra>
// kernel: re_block_forward.4
= control target key start
LH: loop header
LB: loop body
LE: loop exit
PB: predicated region body
PF: predicated region fallthrough
CT: control target
= control target key end

     0   :  { %s1026_s12 = smov 0   ;;  %s1028_s13 = smov 0   ;;  %s1116_s0 = inlined_call_operand.vmem [shape: bf16[2,8,256], index: 0, kind: input, shape index: {}]   ;;  %s1117_s1 = inlined_call_operand.vmem [shape: bf16[8,56], index: 1, kind: input, shape index: {}]   ;;  %s1118_s2 = inlined_call_operand.vmem [shape: f32[2,8,1], index: 2, kind: output, shape index: {0}]   ;;  %s1119_s3 = inlined_call_operand.vmem [shape: f32[2,8,1], index: 3, kind: output, shape index: {1}]  }
   0x1   :  { %s1030_s14 = smov 0  }
   0x2 LB: > { %s26_s15 = sadd.s32 1, %s986_s13  ;;  %p845_p0 = scmp.ge.s32.totalorder %s990_s14, 1  ;;  %s990_s14 = sphi %s1030_s14, %s14_s14   ;;  %s986_s13 = sphi %s1028_s13, %s1121_s13   ;;  %s982_s12 = sphi %s1026_s12, %s1120_s12  }
   0x3   : > { %p28_p1 = scmp.ge.s32.totalorder %s26_s15, 2  ;;  %p118_p2 = scmp.lt.s32.totalorder %s990_s14, 3 }
   0x5   : > { %s1123_s15 = smov (%p28_p1, %s26_s15), 0  ;;  %p119_p3 = pnand %p845_p0, %p118_p2 }
   0x6   : > { %p138_p4 = scmp.lt.s32.totalorder (!%p119_p3), %s982_s12, 1  ;;  %s868_s16 = sshll.u32 (!%p119_p3), %s982_s12, 3 }
   0x7   : > { %122 = sbr.rel (%p119_p3) target bundleno = 511 (0x1ff), region = 24  ;;  %s169_s19 = scalar_lea.vmem (!%p119_p3), %s1116_s0, %s868_s16 }
   0xc   : > { %s1125_s12 = smov (!%p138_p4, %s982_s12), 1  ;;  %v207_v0 = vld [vmem:[%s169_s19] sm:$0xff] }
   0xd   : > { %s846_s20 = sshll.u32 %s1125_s12, 3 }
   0xe   : > { %s1050_s23 = scalar_lea.vmem %s1118_s2, %s846_s20  ;;  %s1055_s26 = scalar_lea.vmem %s1119_s3, %s846_s20 }
   0xf   : > { %216 = vsyncadd [#allocation3], 128 }
  0x10   : > { %978 = dma.done.wait [#allocation3], 128 }
  0x11   : > { %979 = vsyncadd [#allocation3], 4294967168  ;;  %vm301_vm0 = vcmask 7168   ;;  %v855_v1 = vcombine.low %v207_v0, %v207_v0  ;;  %v992_v2 = vmov 0.0   ;;  %s993_s27 = smov 125   ;;  %s994_s28 = smov 124   ;;  %v856_v3 = vcombine.high %v207_v0, %v207_v0 }
  0x12   : > { %302 = vst.msk [vmem:[%s1050_s23] sm:$0xff] %vm301_vm0, %v992_v2  ;;  %303 = vst.msk [vmem:[%s1055_s26] sm:$0xff] %vm301_vm0, %v992_v2  ;;  %885 = vmatprep.subr.bf16.mxu0 %v992_v2  ;;  %891 = vmatprep.subr.bf16.mxu1 %v992_v2  ;;  %vm995_vm1 = vmmov 0   ;;  %s996_s29 = smov 123   ;;  %v304_v4 = vld [vmem:[%s1117_s1] sm:$0xf]  ;;  %v696_v61 = vlaneseq }
  0x13   : > { %369 = vrot.lane.b32.xlu1 %v855_v1, %s993_s27  ;;  %315 = vrot.lane.b32.xlu0 %v855_v1, %s994_s28  ;;  %v854_v5 = vcombine.low %v304_v4, %v304_v4  ;;  %s997_s5 = smov 120   ;;  %s998_s6 = smov 112   ;;  %vm319_vm2 = vcmask 1014784   ;;  %vm325_vm3 = vcmask 1043456   ;;  %vm373_vm4 = vcmask 1022976  }
  0x14   : > { %887 = vmatprep.mubr.msk.bf16.mxu0 %vm995_vm1, %v992_v2  ;;  %893 = vmatprep.mubr.msk.bf16.mxu1 %vm995_vm1, %v992_v2  ;;  %s999_s7 = smov 122   ;;  %s1000_s8 = smov 121   ;;  %vm321_vm5 = vcmask 64512   ;;  %vm427_vm6 = vcmask 1006592   ;;  %vm482_vm7 = vcmask 998400   ;;  %vm537_vm8 = vcmask 990208  }
  0x15   : > { %s1001_s9 = smov 104   ;;  %s1002_s10 = smov 96   ;;  %vm592_vm9 = vcmask 982016   ;;  %vm647_vm10 = vcmask 973824   ;;  %v697_v0 = vand.u32 127, %v696_v61 }
  0x16   : > { %s1003_s11 = smov 119   ;;  %s1004_s12 = smov 88  }
  0x17   : > { %423 = vrot.lane.b32.xlu1 %v855_v1, %s996_s29  ;;  %317 = vrot.lane.b32.xlu0 %v856_v3, %s994_s28  ;;  %s1005_s16 = smov 80   ;;  %vm700_vm11 = vcmp.lt.s32.totalorder %v697_v0, 16 }
  0x1b   : > { %371 = vrot.lane.b32.xlu0 %v856_v3, %s993_s27  ;;  %308 = vrot.lane.b32.xlu1 %v854_v5, %s997_s5 }
  0x1f   : > { %425 = vrot.lane.b32.xlu0 %v856_v3, %s996_s29  ;;  %421 = vrot.lane.b32.xlu1 %v854_v5, %s998_s6 }
  0x23   : > { %478 = vrot.lane.b32.xlu0 %v855_v1, %s999_s7  ;;  %480 = vrot.lane.b32.xlu1 %v856_v3, %s999_s7 }
  0x27   : > { %533 = vrot.lane.b32.xlu0 %v855_v1, %s1000_s8  ;;  %535 = vrot.lane.b32.xlu1 %v856_v3, %s1000_s8 }
  0x2b   : > { %476 = vrot.lane.b32.xlu0 %v854_v5, %s1001_s9  ;;  %531 = vrot.lane.b32.xlu1 %v854_v5, %s1002_s10 }
  0x2f   : > { %588 = vrot.lane.b32.xlu0 %v855_v1, %s997_s5  ;;  %590 = vrot.lane.b32.xlu1 %v856_v3, %s997_s5 }
  0x33   : > { %643 = vrot.lane.b32.xlu0 %v855_v1, %s1003_s11  ;;  %645 = vrot.lane.b32.xlu1 %v856_v3, %s1003_s11 }
  0x37   : > { %586 = vrot.lane.b32.xlu0 %v854_v5, %s1004_s12  ;;  %641 = vrot.lane.b32.xlu1 %v854_v5, %s1005_s16 }
  0x85   : > { %v370_v6 = vpop.permute.xlu1 %369  ;;  %v316_v7 = vpop.permute.xlu0 %315 }
  0x89   : > { %v424_v8 = vpop.permute.xlu1 %423  ;;  %v318_v9 = vpop.permute.xlu0 %317 }
  0x8a   : > { %v320_v10 = vsel %vm319_vm2, %v316_v7, %v318_v9 }
  0x8b   : > { %v327_v11 = vsel %vm325_vm3, %v320_v10, 0 }
  0x8c   : > { %886 = vmatpush3.bf16.msra.mxu0 %v327_v11 }
  0x8d   : > { %v372_v12 = vpop.permute.xlu0 %371  ;;  %v309_v13 = vpop.permute.xlu1 %308  ;;  %897 = vmatprep.subr.bf16.mxu0 %v992_v2 }
  0x8e   : > { %v374_v14 = vsel %vm373_vm4, %v370_v6, %v372_v12 }
  0x8f   : > { %888 = vmatmul.mubr.msk.bf16.vlgmr.msra.gmra.mxu0 %vm321_vm5, %v309_v13  ;;  %v379_v15 = vsel %vm325_vm3, %v374_v14, 0  ;;  %v704_v14 = vld [vmem:[%s1050_s23] sm:$0xff] }
  0x90   : > { %892 = vmatpush3.bf16.msra.mxu1 %v379_v15  ;;  %899 = vmatprep.mubr.msk.bf16.mxu0 %vm995_vm1, %v992_v2 }
  0x91   : > { %v426_v16 = vpop.permute.xlu0 %425  ;;  %v422_v17 = vpop.permute.xlu1 %421  ;;  %903 = vmatprep.subr.bf16.mxu1 %v992_v2 }
  0x92   : > { %v428_v18 = vsel %vm427_vm6, %v424_v8, %v426_v16  ;;  %v710_v16 = vld [vmem:[%s1055_s26] sm:$0xff] }
  0x93   : > { %v433_v19 = vsel %vm325_vm3, %v428_v18, 0  ;;  %894 = vmatmul.mubr.msk.bf16.vlgmr.msra.gmra.mxu1 %vm321_vm5, %v304_v4 }
  0x94   : > { %898 = vmatpush3.bf16.msra.mxu0 %v433_v19  ;;  %905 = vmatprep.mubr.msk.bf16.mxu1 %vm995_vm1, %v992_v2 }
  0x95   : > { %v479_v20 = vpop.permute.xlu0 %478  ;;  %v481_v21 = vpop.permute.xlu1 %480  ;;  %909 = vmatprep.subr.bf16.mxu0 %v992_v2 }
  0x96   : > { %v483_v22 = vsel %vm482_vm7, %v479_v20, %v481_v21 }
  0x97   : > { %v488_v23 = vsel %vm325_vm3, %v483_v22, 0  ;;  %900 = vmatmul.mubr.msk.bf16.vlgmr.msra.gmra.mxu0 %vm321_vm5, %v422_v17 }
  0x98   : > { %904 = vmatpush3.bf16.msra.mxu1 %v488_v23  ;;  %911 = vmatprep.mubr.msk.bf16.mxu0 %vm995_vm1, %v992_v2 }
  0x99   : > { %v534_v24 = vpop.permute.xlu0 %533  ;;  %v536_v25 = vpop.permute.xlu1 %535  ;;  %915 = vmatprep.subr.bf16.mxu1 %v992_v2 }
  0x9a   : > { %v538_v26 = vsel %vm537_vm8, %v534_v24, %v536_v25 }
  0x9b   : > { %v543_v27 = vsel %vm325_vm3, %v538_v26, 0 }
  0x9c   : > { %910 = vmatpush3.bf16.msra.mxu0 %v543_v27 }
  0x9d   : > { %v477_v28 = vpop.permute.xlu0 %476  ;;  %v532_v29 = vpop.permute.xlu1 %531  ;;  %921 = vmatprep.subr.bf16.mxu0 %v992_v2 }
  0x9e   : > { %906 = vmatmul.mubr.msk.bf16.vlgmr.msra.gmra.mxu1 %vm321_vm5, %v477_v28 }
  0x9f   : > { %912 = vmatmul.mubr.msk.bf16.vlgmr.msra.gmra.mxu0 %vm321_vm5, %v532_v29  ;;  %917 = vmatprep.mubr.msk.bf16.mxu1 %vm995_vm1, %v992_v2 }
  0xa0   : > { %923 = vmatprep.mubr.msk.bf16.mxu0 %vm995_vm1, %v992_v2 }
  0xa1   : > { %v589_v30 = vpop.permute.xlu0 %588  ;;  %v591_v31 = vpop.permute.xlu1 %590 }
  0xa2   : > { %v593_v32 = vsel %vm592_vm9, %v589_v30, %v591_v31 }
  0xa3   : > { %v598_v33 = vsel %vm325_vm3, %v593_v32, 0 }
  0xa4   : > { %916 = vmatpush3.bf16.msra.mxu1 %v598_v33 }
  0xa5   : > { %v644_v34 = vpop.permute.xlu0 %643  ;;  %v646_v35 = vpop.permute.xlu1 %645 }
  0xa6   : > { %v648_v36 = vsel %vm647_vm10, %v644_v34, %v646_v35 }
  0xa7   : > { %v653_v37 = vsel %vm325_vm3, %v648_v36, 0 }
  0xa8   : > { %922 = vmatpush3.bf16.msra.mxu0 %v653_v37 }
  0xa9   : > { %v587_v38 = vpop.permute.xlu0 %586  ;;  %v642_v39 = vpop.permute.xlu1 %641 }
  0xaa   : > { %918 = vmatmul.mubr.msk.bf16.vlgmr.msra.gmra.mxu1 %vm321_vm5, %v587_v38 }
  0xab   : > { %924 = vmatmul.mubr.msk.bf16.vlgmr.msra.gmra.mxu0 %vm321_vm5, %v642_v39 }
 0x14f   : > { %v363_v40 = vpop.f32.mrf.mxu0 }
 0x151   : > { %v889_v41 = vpop.f32.mrf.mxu0 }
 0x153   : > { %v366_v42 = vpop.f32.mrf.mxu0  ;;  %v415_v43 = vpop.f32.mrf.mxu1 }
 0x154   : > { %v416_v55 = vadd.f32 %v415_v43, %v363_v40 }
 0x155   : > { %v890_v44 = vpop.f32.mrf.mxu0  ;;  %v895_v45 = vpop.f32.mrf.mxu1 }
 0x157   : > { %v469_v46 = vpop.f32.mrf.mxu0  ;;  %v418_v47 = vpop.f32.mrf.mxu1 }
 0x158   : > { %v475_v58 = vadd.f32 %v469_v46, %v416_v55 }
 0x159   : > { %v901_v48 = vpop.f32.mrf.mxu0  ;;  %v896_v49 = vpop.f32.mrf.mxu1 }
 0x15b   : > { %v472_v50 = vpop.f32.mrf.mxu0 }
 0x15d   : > { %v902_v51 = vpop.f32.mrf.mxu0 }
 0x15e   : > { %v524_v52 = vpop.f32.mrf.mxu1 }
 0x15f   : > { %v579_v53 = vpop.f32.mrf.mxu0  ;;  %v530_v62 = vadd.f32 %v524_v52, %v475_v58 }
 0x160   : > { %v907_v54 = vpop.f32.mrf.mxu1 }
 0x161   : > { %v913_v56 = vpop.f32.mrf.mxu0  ;;  %v585_v1 = vadd.f32 %v579_v53, %v530_v62 }
 0x162   : > { %v527_v57 = vpop.f32.mrf.mxu1 }
 0x163   : > { %v582_v59 = vpop.f32.mrf.mxu0 }
 0x164   : > { %v908_v60 = vpop.f32.mrf.mxu1 }
 0x165   : > { %v914_v63 = vpop.f32.mrf.mxu0 }
 0x16a   : > { %v634_v2 = vpop.f32.mrf.mxu1 }
 0x16b   : > { %v640_v3 = vadd.f32 %v634_v2, %v585_v1  ;;  %v689_v4 = vpop.f32.mrf.mxu0 }
 0x16c   : > { %v919_v5 = vpop.f32.mrf.mxu1 }
 0x16d   : > { %v695_v6 = vadd.f32 %v689_v4, %v640_v3  ;;  %v925_v7 = vpop.f32.mrf.mxu0 }
 0x16e   : > { %v637_v8 = vpop.f32.mrf.mxu1 }
 0x16f   : > { %v692_v9 = vpop.f32.mrf.mxu0  ;;  %v703_v10 = vsel %vm700_vm11, %v695_v6, 0.0 }
 0x170   : > { %v920_v11 = vpop.f32.mrf.mxu1  ;;  %705 = vadd.xlane.f32.xlu0 %v703_v10  ;;  %v711_v12 = vmul.f32 %v703_v10, %v703_v10 }
 0x171   : > { %v926_v13 = vpop.f32.mrf.mxu0 }
 0x172   : > { %712 = vadd.xlane.f32.xlu1 %v711_v12 }
 0x1f9   : > { %v706_v15 = vpop.xlane.xlu0 %705 }
 0x1fa   : > { %v707_v17 = vadd.f32 %v706_v15, %v704_v14 }
 0x1fb   : > { %v713_v18 = vpop.xlane.xlu1 %712 }
 0x1fc   : > { %709 = vst.msk [vmem:[%s1050_s23] sm:$0xff] %vm301_vm0, %v707_v17  ;;  %v714_v19 = vadd.f32 %v713_v18, %v710_v16 }
 0x1fe   : > { %715 = vst.msk [vmem:[%s1055_s26] sm:$0xff] %vm301_vm0, %v714_v19 }
 0x1ff PF: > { %s14_s14 = sadd.s32 1, %s990_s14   ;;  %s1120_s12 = smov %s986_s13 }
 0x200   : > { %p11_p5 = scmp.ge.s32.totalorder %s14_s14, 4   ;;  %s1121_s13 = smov %s1123_s15 }
 0x202   :  { %13 = sbr.rel (!%p11_p5) target bundleno = 2 (0x2), region = 168 }
 0x207   :  { %749 = vsyncmov [#allocation3] }
 0x20a   :  { %s750_s17 = vpop.sfrf %749 }
 0x20b   :  { %p866_p6 = scmp.ne.s32.totalorder %s750_s17, 0 }
 0x20d   :  { %754 = shalt.err (%p866_p6)  }
 0x20e   :  { %756 = vsyncmov [#allocation3 + $0x1] }
 0x211   :  { %s757_s18 = vpop.sfrf %756 }
 0x212   :  { %p867_p7 = scmp.ne.s32.totalorder %s757_s18, 0 }
 0x214   :  { %761 = shalt.err (%p867_p7)  }

// kernel: re_block_forward.6
= control target key start
LH: loop header
LB: loop body
LE: loop exit
PB: predicated region body
PF: predicated region fallthrough
CT: control target
= control target key end

     0   :  { %s1500_s18 = smov 0   ;;  %s1502_s19 = smov 0   ;;  %s1683_s0 = inlined_call_operand.vmem [shape: bf16[2,8,256], index: 0, kind: input, shape index: {}]   ;;  %s1684_s1 = inlined_call_operand.vmem [shape: bf16[8,56], index: 1, kind: input, shape index: {}]   ;;  %s1685_s2 = inlined_call_operand.vmem [shape: f32[8,1], index: 2, kind: input, shape index: {}]   ;;  %s1686_s3 = inlined_call_operand.vmem [shape: bf16[8,56], index: 3, kind: input, shape index: {}]   ;;  %s1687_s4 = inlined_call_operand.vmem [shape: f32[8,1], index: 4, kind: input, shape index: {}]   ;;  %s1688_s5 = inlined_call_operand.vmem [shape: f32[2,8,1], index: 5, kind: output, shape index: {}]  }
   0x1   :  { %s1504_s20 = smov 0  }
   0x2 LB: > { %s27_s21 = sadd.s32 1, %s1448_s19  ;;  %p1289_p0 = scmp.ge.s32.totalorder %s1452_s20, 1  ;;  %s1452_s20 = sphi %s1504_s20, %s15_s20   ;;  %s1448_s19 = sphi %s1502_s19, %s1690_s19   ;;  %s1444_s18 = sphi %s1500_s18, %s1689_s18  }
   0x3   : > { %p29_p1 = scmp.ge.s32.totalorder %s27_s21, 2  ;;  %p165_p2 = scmp.lt.s32.totalorder %s1452_s20, 3 }
   0x5   : > { %s1692_s21 = smov (%p29_p1, %s27_s21), 0  ;;  %p166_p3 = pnand %p1289_p0, %p165_p2 }
   0x6   : > { %p185_p4 = scmp.lt.s32.totalorder (!%p166_p3), %s1444_s18, 1  ;;  %s1326_s22 = sshll.u32 (!%p166_p3), %s1444_s18, 3 }
   0x7   : > { %169 = sbr.rel (%p166_p3) target bundleno = 855 (0x357), region = 36  ;;  %s212_s25 = scalar_lea.vmem (!%p166_p3), %s1683_s0, %s1326_s22 }
   0xc   : > { %s1694_s18 = smov (!%p185_p4, %s1444_s18), 1  ;;  %v250_v0 = vld [vmem:[%s212_s25] sm:$0xff] }
   0xd   : > { %s1290_s26 = sshll.u32 %s1694_s18, 3 }
   0xe   : > { %s1524_s29 = scalar_lea.vmem %s1688_s5, %s1290_s26 }
   0xf   : > { %259 = vsyncadd [#allocation3], 128 }
  0x10   : > { %1440 = dma.done.wait [#allocation3], 128 }
  0x11   : > { %1441 = vsyncadd [#allocation3], 4294967168  ;;  %vm344_vm0 = vcmask 7168   ;;  %v1298_v1 = vcombine.low %v250_v0, %v250_v0  ;;  %v1454_v2 = vmov 0.0   ;;  %v1299_v3 = vcombine.high %v250_v0, %v250_v0  ;;  %s1455_s30 = smov 127   ;;  %s1456_s6 = smov 126  }
  0x12   : > { %345 = vst.msk [vmem:[%s1524_s29] sm:$0xff] %vm344_vm0, %v1454_v2  ;;  %vm368_vm1 = vcmask 1043456   ;;  %v1457_v5 = vmov 0   ;;  %vm364_vm2 = vcmask 64512   ;;  %v346_v6 = vld [vmem:[%s1684_s1] sm:$0xf]  ;;  %v775_v58 = vlaneseq }
  0x13   : > { %358 = vrot.lane.b32.xlu0 %v1298_v1, %s1455_s30  ;;  %468 = vrot.lane.b32.xlu1 %v1298_v1, %s1456_s6  ;;  %v420_v4 = vsel %vm368_vm1, %v1298_v1, 0  ;;  %v1297_v7 = vcombine.low %v346_v6, %v346_v6  ;;  %s1458_s9 = smov 120   ;;  %s1459_s10 = smov 112   ;;  %v347_v8 = vld [vmem:[%s1685_s2] sm:$0xff]  ;;  %vm362_vm3 = vcmask 1039360   ;;  %vm472_vm4 = vcmask 1031168  }
  0x14   : > { %1302 = vmatprep.subr.msk.bf16.mxu1 %vm368_vm1, %v1299_v3  ;;  %407 = vmatprep.mubr.bf16.mxu0 %v1457_v5  ;;  %s1460_s11 = smov 125   ;;  %s1461_s12 = smov 124   ;;  %vm532_vm5 = vcmask 1022976   ;;  %vm592_vm6 = vcmask 1014784   ;;  %vm652_vm7 = vcmask 1006592   ;;  %vm712_vm8 = vcmask 998400  }
  0x15   : > { %440 = vmatpush1.bf16.msra.mxu1 %v420_v4  ;;  %457 = vmatprep.mubr.bf16.mxu1 %v1457_v5  ;;  %s1462_s13 = smov 104   ;;  %s1463_s14 = smov 96   ;;  %v796_v43 = vld [vmem:[%s1686_s3] sm:$0xf]  ;;  %v1468_v45 = vmov 0.0|0.0   ;;  %v1605_v0 = vand.u32 127, %v775_v58 }
  0x16   : > { %1425 = vset.pattern.permute.xlu0 %v1457_v5  ;;  %s1464_s15 = smov 123   ;;  %s1465_s16 = smov 122   ;;  %v1593_v44 = vcombine.low %v796_v43, %v796_v43  ;;  %vm1469_vm9 = vmmov 0  }
  0x17   : > { %360 = vrot.lane.b32.xlu0 %v1299_v3, %s1455_s30  ;;  %351 = vrot.lane.b32.xlu1 %v1297_v7, %s1458_s9  ;;  %s1466_s17 = smov 88   ;;  %s1467_s23 = smov 80   ;;  %vm1181_vm13 = vcmp.lt.s32.totalorder %v1605_v0, 16 }
  0x18   : > { %1303 = vmatmul.mubr.msk.bf16.vlgmr.msra.gmra.mxu1 %vm364_vm2, %v346_v6  ;;  %v780_v6 = vadd.s32 4294967293, %v1605_v0 }
  0x19   : > { %575 = vmatprep.mubr.bf16.mxu1 %v1457_v5 }
  0x1a   : > { %vm782_vm10 = vcmp.ge.s32.totalorder %v780_v6, 0  ;;  %vm784_vm11 = vcmp.lt.s32.totalorder %v780_v6, 16 }
  0x1b   : > { %470 = vrot.lane.b32.xlu0 %v1299_v3, %s1456_s6  ;;  %466 = vrot.lane.b32.xlu1 %v1297_v7, %s1459_s10  ;;  %vm786_vm12 = vmand %vm782_vm10, %vm784_vm11 }
  0x1f   : > { %528 = vrot.lane.b32.xlu0 %v1298_v1, %s1460_s11  ;;  %530 = vrot.lane.b32.xlu1 %v1299_v3, %s1460_s11 }
  0x23   : > { %588 = vrot.lane.b32.xlu0 %v1298_v1, %s1461_s12  ;;  %590 = vrot.lane.b32.xlu1 %v1299_v3, %s1461_s12 }
  0x27   : > { %526 = vrot.lane.b32.xlu0 %v1297_v7, %s1462_s13  ;;  %586 = vrot.lane.b32.xlu1 %v1297_v7, %s1463_s14 }
  0x2b   : > { %648 = vrot.lane.b32.xlu0 %v1298_v1, %s1464_s15  ;;  %650 = vrot.lane.b32.xlu1 %v1299_v3, %s1464_s15 }
  0x2f   : > { %708 = vrot.lane.b32.xlu0 %v1298_v1, %s1465_s16  ;;  %710 = vrot.lane.b32.xlu1 %v1299_v3, %s1465_s16 }
  0x33   : > { %646 = vrot.lane.b32.xlu0 %v1297_v7, %s1466_s17  ;;  %706 = vrot.lane.b32.xlu1 %v1297_v7, %s1467_s23 }
  0x37   : > { %768 = vperm.xlu0 %1425, %v347_v8   ;;  %806 = vrot.lane.b32.xlu1 %v1468_v45, %s1455_s30 }
  0x3b   : > { %800 = vrot.lane.b32.xlu0 %v1593_v44, %s1458_s9  ;;  %901 = vrot.lane.b32.xlu1 %v1593_v44, %s1459_s10 }
  0x3f   : > { %905 = vrot.lane.b32.xlu0 %v1468_v45, %s1456_s6 }
  0x43   : > { %955 = vrot.lane.b32.xlu0 %v1593_v44, %s1462_s13 }
  0x85   : > { %v359_v9 = vpop.permute.xlu0 %358  ;;  %v469_v10 = vpop.permute.xlu1 %468 }
  0x89   : > { %v361_v11 = vpop.permute.xlu0 %360  ;;  %v352_v15 = vpop.permute.xlu1 %351 }
  0x8a   : > { %1300 = vmatprep.subr.msk.bf16.mxu0 %vm368_vm1, %v361_v11  ;;  %v363_v12 = vsel %vm362_vm3, %v359_v9, %v361_v11 }
  0x8b   : > { %v370_v13 = vsel %vm368_vm1, %v363_v12, 0 }
  0x8c   : > { %390 = vmatpush1.bf16.msra.mxu0 %v370_v13 }
  0x8d   : > { %v471_v14 = vpop.permute.xlu0 %470  ;;  %v467_v18 = vpop.permute.xlu1 %466 }
  0x8e   : > { %v473_v16 = vsel %vm472_vm4, %v469_v10, %v471_v14  ;;  %1304 = vmatprep.subr.msk.bf16.mxu0 %vm368_vm1, %v471_v14 }
  0x8f   : > { %v478_v17 = vsel %vm368_vm1, %v473_v16, 0  ;;  %1301 = vmatmul.mubr.msk.bf16.vlgmr.msra.gmra.mxu0 %vm364_vm2, %v352_v15 }
  0x90   : > { %498 = vmatpush1.bf16.msra.mxu0 %v478_v17  ;;  %515 = vmatprep.mubr.bf16.mxu0 %v1457_v5 }
  0x91   : > { %v529_v19 = vpop.permute.xlu0 %528  ;;  %v531_v20 = vpop.permute.xlu1 %530 }
  0x92   : > { %v533_v22 = vsel %vm532_vm5, %v529_v19, %v531_v20  ;;  %1306 = vmatprep.subr.msk.bf16.mxu1 %vm368_vm1, %v531_v20 }
  0x93   : > { %v538_v23 = vsel %vm368_vm1, %v533_v22, 0  ;;  %v1171_v22 = vld [vmem:[%s1687_s4] sm:$0xff] }
  0x94   : > { %558 = vmatpush1.bf16.msra.mxu1 %v538_v23 }
  0x95   : > { %v589_v21 = vpop.permute.xlu0 %588  ;;  %v591_v24 = vpop.permute.xlu1 %590 }
  0x96   : > { %v593_v26 = vsel %vm592_vm6, %v589_v21, %v591_v24  ;;  %1308 = vmatprep.subr.msk.bf16.mxu0 %vm368_vm1, %v591_v24 }
  0x97   : > { %1305 = vmatmul.mubr.msk.bf16.vlgmr.msra.gmra.mxu0 %vm364_vm2, %v467_v18  ;;  %v598_v27 = vsel %vm368_vm1, %v593_v26, 0 }
  0x98   : > { %635 = vmatprep.mubr.bf16.mxu0 %v1457_v5  ;;  %618 = vmatpush1.bf16.msra.mxu0 %v598_v27 }
  0x99   : > { %v527_v25 = vpop.permute.xlu0 %526  ;;  %v587_v28 = vpop.permute.xlu1 %586 }
  0x9a   : > { %1307 = vmatmul.mubr.msk.bf16.vlgmr.msra.gmra.mxu1 %vm364_vm2, %v527_v25 }
  0x9b   : > { %695 = vmatprep.mubr.bf16.mxu1 %v1457_v5 }
  0x9d   : > { %v649_v29 = vpop.permute.xlu0 %648  ;;  %v651_v30 = vpop.permute.xlu1 %650 }
  0x9e   : > { %v653_v32 = vsel %vm652_vm7, %v649_v29, %v651_v30  ;;  %1310 = vmatprep.subr.msk.bf16.mxu1 %vm368_vm1, %v651_v30 }
  0x9f   : > { %1309 = vmatmul.mubr.msk.bf16.vlgmr.msra.gmra.mxu0 %vm364_vm2, %v587_v28  ;;  %v658_v33 = vsel %vm368_vm1, %v653_v32, 0 }
  0xa0   : > { %755 = vmatprep.mubr.bf16.mxu0 %v1457_v5  ;;  %678 = vmatpush1.bf16.msra.mxu1 %v658_v33 }
  0xa1   : > { %v709_v31 = vpop.permute.xlu0 %708  ;;  %v711_v34 = vpop.permute.xlu1 %710  ;;  %1343 = vmatprep.subr.bf16.mxu1 %v1454_v2 }
  0xa2   : > { %v713_v36 = vsel %vm712_vm8, %v709_v31, %v711_v34  ;;  %1312 = vmatprep.subr.msk.bf16.mxu0 %vm368_vm1, %v711_v34 }
  0xa3   : > { %v718_v37 = vsel %vm368_vm1, %v713_v36, 0 }
  0xa4   : > { %738 = vmatpush1.bf16.msra.mxu0 %v718_v37 }
  0xa5   : > { %v647_v35 = vpop.permute.xlu0 %646  ;;  %v707_v38 = vpop.permute.xlu1 %706  ;;  %1349 = vmatprep.subr.bf16.mxu0 %v1454_v2 }
  0xa6   : > { %1311 = vmatmul.mubr.msk.bf16.vlgmr.msra.gmra.mxu1 %vm364_vm2, %v647_v35 }
  0xa7   : > { %1313 = vmatmul.mubr.msk.bf16.vlgmr.msra.gmra.mxu0 %vm364_vm2, %v707_v38  ;;  %1345 = vmatprep.mubr.msk.bf16.mxu1 %vm1469_vm9, %v1454_v2 }
  0xa8   : > { %1351 = vmatprep.mubr.msk.bf16.mxu0 %vm1469_vm9, %v1454_v2 }
  0xa9   : > { %v807_v24 = vpop.permute.xlu1 %806 }
  0xad   : > { %v902_v26 = vpop.permute.xlu1 %901 }
  0xb2   : > { %v769_v9 = vpop.permute.xlu0 %768 }
  0xb6   : > { %v801_v23 = vpop.permute.xlu0 %800 }
  0xba   : > { %v906_v25 = vpop.permute.xlu0 %905 }
  0xbe   : > { %v956_v27 = vpop.permute.xlu0 %955 }
  0xd8   : > { %v459_v39 = vpop.f32.mrf.mxu1 }
  0xda   : > { %v461_v40 = vpop.f32.mrf.mxu1 }
  0xdc   : > { %v463_v41 = vpop.f32.mrf.mxu1 }
  0xde   : > { %v464_v42 = vpop.f32.mrf.mxu1 }
 0x14f   : > { %v409_v46 = vpop.f32.mrf.mxu0 }
 0x150   : > { %v460_v61 = vadd.f32 %v459_v39, %v409_v46 }
 0x151   : > { %v411_v47 = vpop.f32.mrf.mxu0 }
 0x153   : > { %v413_v48 = vpop.f32.mrf.mxu0 }
 0x155   : > { %v414_v49 = vpop.f32.mrf.mxu0 }
 0x157   : > { %v517_v50 = vpop.f32.mrf.mxu0 }
 0x158   : > { %v524_v63 = vadd.f32 %v517_v50, %v460_v61 }
 0x159   : > { %v519_v51 = vpop.f32.mrf.mxu0 }
 0x15a   : > { %v577_v53 = vpop.f32.mrf.mxu1 }
 0x15b   : > { %v521_v52 = vpop.f32.mrf.mxu0  ;;  %v584_v3 = vadd.f32 %v577_v53, %v524_v63 }
 0x15c   : > { %v579_v55 = vpop.f32.mrf.mxu1 }
 0x15d   : > { %v522_v54 = vpop.f32.mrf.mxu0 }
 0x15e   : > { %v581_v56 = vpop.f32.mrf.mxu1 }
 0x15f   : > { %v637_v57 = vpop.f32.mrf.mxu0 }
 0x160   : > { %v582_v59 = vpop.f32.mrf.mxu1  ;;  %v644_v5 = vadd.f32 %v637_v57, %v584_v3 }
 0x161   : > { %v639_v60 = vpop.f32.mrf.mxu0 }
 0x163   : > { %v641_v62 = vpop.f32.mrf.mxu0 }
 0x165   : > { %v642_v1 = vpop.f32.mrf.mxu0 }
 0x166   : > { %v697_v4 = vpop.f32.mrf.mxu1 }
 0x167   : > { %v704_v8 = vadd.f32 %v697_v4, %v644_v5  ;;  %v757_v11 = vpop.f32.mrf.mxu0 }
 0x168   : > { %v699_v7 = vpop.f32.mrf.mxu1 }
 0x169   : > { %v764_v12 = vadd.f32 %v757_v11, %v704_v8  ;;  %v759_v14 = vpop.f32.mrf.mxu0 }
 0x16a   : > { %v701_v10 = vpop.f32.mrf.mxu1 }
 0x16b   : > { %v771_v15 = vadd.f32 %v769_v9, %v764_v12  ;;  %v761_v16 = vpop.f32.mrf.mxu0 }
 0x16c   : > { %v702_v13 = vpop.f32.mrf.mxu1 }
 0x16d   : > { %v773_v17 = vmax.f32 %v771_v15, 0.0  ;;  %v762_v18 = vpop.f32.mrf.mxu0 }
 0x16f   : > { %v792_v19 = vsel %vm786_vm12, %v773_v17, 0.0 }
 0x170   : > { %v794_v20 = vpack.c.bf16 %v792_v19, %v792_v19 }
 0x172   : > { %957 = vrot.lane.b32.xlu0 %v794_v20, %s1460_s11  ;;  %804 = vrot.lane.b32.xlu1 %v794_v20, %s1455_s30  ;;  %v859_v21 = vsel %vm368_vm1, %v794_v20, 0 }
 0x173   : > { %1350 = vmatpush3.bf16.msra.mxu0 %v859_v21 }
 0x174   : > { %1361 = vmatprep.subr.bf16.mxu0 %v1454_v2 }
 0x176   : > { %1011 = vrot.lane.b32.xlu0 %v794_v20, %s1461_s12  ;;  %959 = vrot.lane.b32.xlu1 %v1468_v45, %s1460_s11 }
 0x177   : > { %1352 = vmatmul.mubr.msk.bf16.vlgmr.msra.gmra.mxu0 %vm364_vm2, %v796_v43 }
 0x178   : > { %1363 = vmatprep.mubr.msk.bf16.mxu0 %vm1469_vm9, %v1454_v2 }
 0x17a   : > { %1065 = vrot.lane.b32.xlu0 %v794_v20, %s1464_s15  ;;  %903 = vrot.lane.b32.xlu1 %v794_v20, %s1456_s6 }
 0x17e   : > { %1119 = vrot.lane.b32.xlu0 %v794_v20, %s1465_s16  ;;  %1013 = vrot.lane.b32.xlu1 %v1468_v45, %s1461_s12 }
 0x182   : > { %1063 = vrot.lane.b32.xlu0 %v1593_v44, %s1466_s17  ;;  %1009 = vrot.lane.b32.xlu1 %v1593_v44, %s1463_s14 }
 0x186   : > { %1174 = vperm.xlu0 %1425, %v1171_v22   ;;  %1067 = vrot.lane.b32.xlu1 %v1468_v45, %s1464_s15 }
 0x18a   : > { %1121 = vrot.lane.b32.xlu1 %v1468_v45, %s1465_s16 }
 0x18e   : > { %1117 = vrot.lane.b32.xlu1 %v1593_v44, %s1467_s23 }
 0x1e4   : > { %v805_v28 = vpop.permute.xlu1 %804  ;;  %v958_v29 = vpop.permute.xlu0 %957 }
 0x1e5   : > { %v808_v30 = vsel %vm362_vm3, %v805_v28, %v807_v24  ;;  %v1185_v28 = vld [vmem:[%s1524_s29] sm:$0xff] }
 0x1e6   : > { %v813_v31 = vsel %vm368_vm1, %v808_v30, 0 }
 0x1e7   : > { %1344 = vmatpush3.bf16.msra.mxu1 %v813_v31 }
 0x1e8   : > { %v960_v32 = vpop.permute.xlu1 %959  ;;  %1355 = vmatprep.subr.bf16.mxu1 %v1454_v2  ;;  %v1012_v35 = vpop.permute.xlu0 %1011 }
 0x1e9   : > { %v961_v33 = vsel %vm532_vm5, %v958_v29, %v960_v32 }
 0x1ea   : > { %v966_v34 = vsel %vm368_vm1, %v961_v33, 0  ;;  %1346 = vmatmul.mubr.msk.bf16.vlgmr.msra.gmra.mxu1 %vm364_vm2, %v801_v23 }
 0x1eb   : > { %1362 = vmatpush3.bf16.msra.mxu0 %v966_v34  ;;  %1357 = vmatprep.mubr.msk.bf16.mxu1 %vm1469_vm9, %v1454_v2 }
 0x1ec   : > { %v904_v36 = vpop.permute.xlu1 %903  ;;  %1373 = vmatprep.subr.bf16.mxu0 %v1454_v2  ;;  %v1066_v40 = vpop.permute.xlu0 %1065 }
 0x1ed   : > { %v907_v37 = vsel %vm472_vm4, %v904_v36, %v906_v25 }
 0x1ee   : > { %v912_v38 = vsel %vm368_vm1, %v907_v37, 0  ;;  %1364 = vmatmul.mubr.msk.bf16.vlgmr.msra.gmra.mxu0 %vm364_vm2, %v956_v27 }
 0x1ef   : > { %1356 = vmatpush3.bf16.msra.mxu1 %v912_v38  ;;  %1375 = vmatprep.mubr.msk.bf16.mxu0 %vm1469_vm9, %v1454_v2 }
 0x1f0   : > { %v1014_v39 = vpop.permute.xlu1 %1013  ;;  %1367 = vmatprep.subr.bf16.mxu1 %v1454_v2  ;;  %v1120_v44 = vpop.permute.xlu0 %1119 }
 0x1f1   : > { %v1015_v41 = vsel %vm592_vm6, %v1012_v35, %v1014_v39 }
 0x1f2   : > { %v1020_v42 = vsel %vm368_vm1, %v1015_v41, 0  ;;  %1358 = vmatmul.mubr.msk.bf16.vlgmr.msra.gmra.mxu1 %vm364_vm2, %v902_v26 }
 0x1f3   : > { %1368 = vmatpush3.bf16.msra.mxu1 %v1020_v42  ;;  %1369 = vmatprep.mubr.msk.bf16.mxu1 %vm1469_vm9, %v1454_v2 }
 0x1f4   : > { %v1010_v43 = vpop.permute.xlu1 %1009  ;;  %1379 = vmatprep.subr.bf16.mxu1 %v1454_v2  ;;  %v1064_v48 = vpop.permute.xlu0 %1063 }
 0x1f8   : > { %v1068_v45 = vpop.permute.xlu1 %1067 }
 0x1f9   : > { %v1069_v46 = vsel %vm652_vm7, %v1066_v40, %v1068_v45 }
 0x1fa   : > { %v1074_v47 = vsel %vm368_vm1, %v1069_v46, 0  ;;  %1370 = vmatmul.mubr.msk.bf16.vlgmr.msra.gmra.mxu1 %vm364_vm2, %v1010_v43 }
 0x1fb   : > { %1374 = vmatpush3.bf16.msra.mxu0 %v1074_v47  ;;  %1381 = vmatprep.mubr.msk.bf16.mxu1 %vm1469_vm9, %v1454_v2 }
 0x1fc   : > { %v1122_v49 = vpop.permute.xlu1 %1121 }
 0x1fd   : > { %v1123_v50 = vsel %vm712_vm8, %v1120_v44, %v1122_v49 }
 0x1fe   : > { %v1128_v51 = vsel %vm368_vm1, %v1123_v50, 0  ;;  %1376 = vmatmul.mubr.msk.bf16.vlgmr.msra.gmra.mxu0 %vm364_vm2, %v1064_v48 }
 0x1ff   : > { %1380 = vmatpush3.bf16.msra.mxu1 %v1128_v51 }
 0x200   : > { %v1118_v52 = vpop.permute.xlu1 %1117 }
 0x201   : > { %v1175_v19 = vpop.permute.xlu0 %1174 }
 0x202   : > { %1382 = vmatmul.mubr.msk.bf16.vlgmr.msra.gmra.mxu1 %vm364_vm2, %v1118_v52 }
 0x237   : > { %v895_v53 = vpop.f32.mrf.mxu0 }
 0x239   : > { %v1353_v54 = vpop.f32.mrf.mxu0 }
 0x23b   : > { %v898_v55 = vpop.f32.mrf.mxu0 }
 0x23d   : > { %v1354_v56 = vpop.f32.mrf.mxu0 }
 0x2aa   : > { %v849_v57 = vpop.f32.mrf.mxu1 }
 0x2ab   : > { %v896_v5 = vadd.f32 %v895_v53, %v849_v57 }
 0x2ac   : > { %v1347_v58 = vpop.f32.mrf.mxu1 }
 0x2ae   : > { %v852_v59 = vpop.f32.mrf.mxu1  ;;  %v1002_v60 = vpop.f32.mrf.mxu0 }
 0x2b0   : > { %v1348_v2 = vpop.f32.mrf.mxu1  ;;  %v1365_v61 = vpop.f32.mrf.mxu0 }
 0x2b2   : > { %v948_v62 = vpop.f32.mrf.mxu1  ;;  %v1005_v63 = vpop.f32.mrf.mxu0 }
 0x2b3   : > { %v954_v7 = vadd.f32 %v948_v62, %v896_v5 }
 0x2b4   : > { %v1359_v1 = vpop.f32.mrf.mxu1  ;;  %v1366_v3 = vpop.f32.mrf.mxu0 }
 0x2b5   : > { %v1008_v10 = vadd.f32 %v1002_v60, %v954_v7 }
 0x2b6   : > { %v951_v4 = vpop.f32.mrf.mxu1 }
 0x2b8   : > { %v1360_v6 = vpop.f32.mrf.mxu1 }
 0x2ba   : > { %v1056_v8 = vpop.f32.mrf.mxu1 }
 0x2bb   : > { %v1062_v13 = vadd.f32 %v1056_v8, %v1008_v10 }
 0x2bc   : > { %v1371_v9 = vpop.f32.mrf.mxu1 }
 0x2be   : > { %v1059_v11 = vpop.f32.mrf.mxu1  ;;  %v1110_v12 = vpop.f32.mrf.mxu0 }
 0x2bf   : > { %v1116_v16 = vadd.f32 %v1110_v12, %v1062_v13 }
 0x2c0   : > { %v1372_v14 = vpop.f32.mrf.mxu1  ;;  %v1377_v15 = vpop.f32.mrf.mxu0 }
 0x2c2   : > { %v1164_v17 = vpop.f32.mrf.mxu1  ;;  %v1113_v18 = vpop.f32.mrf.mxu0 }
 0x2c3   : > { %v1170_v20 = vadd.f32 %v1164_v17, %v1116_v16 }
 0x2c4   : > { %v1383_v21 = vpop.f32.mrf.mxu1  ;;  %v1378_v22 = vpop.f32.mrf.mxu0 }
 0x2c5   : > { %v1177_v23 = vadd.f32 %v1175_v19, %v1170_v20 }
 0x2c6   : > { %v1167_v24 = vpop.f32.mrf.mxu1 }
 0x2c7   : > { %v1178_v25 = vmax.f32 %v1177_v23, 0.0 }
 0x2c8   : > { %v1384_v26 = vpop.f32.mrf.mxu1 }
 0x2c9   : > { %v1184_v27 = vsel %vm1181_vm13, %v1178_v25, 0.0 }
 0x2ca   : > { %1186 = vadd.xlane.f32.xlu1 %v1184_v27 }
 0x353   : > { %v1187_v29 = vpop.xlane.xlu1 %1186 }
 0x354   : > { %v1188_v30 = vadd.f32 %v1187_v29, %v1185_v28 }
 0x356   : > { %1190 = vst.msk [vmem:[%s1524_s29] sm:$0xff] %vm344_vm0, %v1188_v30 }
 0x357 PF: > { %s15_s20 = sadd.s32 1, %s1452_s20   ;;  %s1689_s18 = smov %s1448_s19 }
 0x358   : > { %p12_p5 = scmp.ge.s32.totalorder %s15_s20, 4   ;;  %s1690_s19 = smov %s1692_s21 }
 0x35a   :  { %14 = sbr.rel (!%p12_p5) target bundleno = 2 (0x2), region = 168 }
 0x35f   :  { %1210 = vsyncmov [#allocation3] }
 0x362   :  { %s1211_s28 = vpop.sfrf %1210 }
 0x363   :  { %p1324_p6 = scmp.ne.s32.totalorder %s1211_s28, 0 }
 0x365   :  { %1215 = shalt.err (%p1324_p6)  }
 0x366   :  { %1217 = vsyncmov [#allocation3 + $0x1] }
 0x369   :  { %s1218_s30 = vpop.sfrf %1217 }
 0x36a   :  { %p1325_p7 = scmp.ne.s32.totalorder %s1218_s30, 0 }
 0x36c   :  { %1222 = shalt.err (%p1325_p7)  }

// kernel: re_block_forward.5
= control target key start
LH: loop header
LB: loop body
LE: loop exit
PB: predicated region body
PF: predicated region fallthrough
CT: control target
= control target key end

     0   :  { %s1542_s18 = smov 0   ;;  %s1544_s19 = smov 0   ;;  %s1733_s0 = inlined_call_operand.vmem [shape: bf16[2,8,256], index: 0, kind: input, shape index: {}]   ;;  %s1734_s1 = inlined_call_operand.vmem [shape: bf16[8,56], index: 1, kind: input, shape index: {}]   ;;  %s1735_s2 = inlined_call_operand.vmem [shape: f32[8,1], index: 2, kind: input, shape index: {}]   ;;  %s1736_s3 = inlined_call_operand.vmem [shape: bf16[8,56], index: 3, kind: input, shape index: {}]   ;;  %s1737_s4 = inlined_call_operand.vmem [shape: f32[2,8,1], index: 4, kind: output, shape index: {0}]   ;;  %s1738_s5 = inlined_call_operand.vmem [shape: f32[2,8,1], index: 5, kind: output, shape index: {1}]  }
   0x1   :  { %s1546_s20 = smov 0  }
   0x2 LB: > { %s28_s21 = sadd.s32 1, %s1490_s19  ;;  %p1330_p0 = scmp.ge.s32.totalorder %s1494_s20, 1  ;;  %s1494_s20 = sphi %s1546_s20, %s16_s20   ;;  %s1490_s19 = sphi %s1544_s19, %s1740_s19   ;;  %s1486_s18 = sphi %s1542_s18, %s1739_s18  }
   0x3   : > { %p30_p1 = scmp.ge.s32.totalorder %s28_s21, 2  ;;  %p168_p2 = scmp.lt.s32.totalorder %s1494_s20, 3 }
   0x5   : > { %s1742_s21 = smov (%p30_p1, %s28_s21), 0  ;;  %p169_p3 = pnand %p1330_p0, %p168_p2 }
   0x6   : > { %p192_p4 = scmp.lt.s32.totalorder (!%p169_p3), %s1486_s18, 1  ;;  %s1368_s22 = sshll.u32 (!%p169_p3), %s1486_s18, 3 }
   0x7   : > { %172 = sbr.rel (%p169_p3) target bundleno = 853 (0x355), region = 32  ;;  %s223_s25 = scalar_lea.vmem (!%p169_p3), %s1733_s0, %s1368_s22 }
   0xc   : > { %s1744_s18 = smov (!%p192_p4, %s1486_s18), 1  ;;  %v261_v0 = vld [vmem:[%s223_s25] sm:$0xff] }
   0xd   : > { %s1331_s26 = sshll.u32 %s1744_s18, 3 }
   0xe   : > { %s1566_s29 = scalar_lea.vmem %s1737_s4, %s1331_s26  ;;  %s1571_s7 = scalar_lea.vmem %s1738_s5, %s1331_s26 }
   0xf   : > { %270 = vsyncadd [#allocation3], 128 }
  0x10   : > { %1482 = dma.done.wait [#allocation3], 128 }
  0x11   : > { %1483 = vsyncadd [#allocation3], 4294967168  ;;  %v1340_v1 = vcombine.low %v261_v0, %v261_v0  ;;  %vm380_vm0 = vcmask 1043456   ;;  %v1341_v2 = vcombine.high %v261_v0, %v261_v0  ;;  %s1496_s8 = smov 127   ;;  %s1497_s9 = smov 126   ;;  %v1498_v4 = vmov 0  }
  0x12   : > { %419 = vmatprep.mubr.bf16.mxu0 %v1498_v4  ;;  %469 = vmatprep.mubr.bf16.mxu1 %v1498_v4  ;;  %vm376_vm1 = vcmask 64512   ;;  %v358_v5 = vld [vmem:[%s1734_s1] sm:$0xf]  ;;  %s1499_s12 = smov 120   ;;  %s1500_s13 = smov 112   ;;  %vm374_vm2 = vcmask 1039360   ;;  %v787_v58 = vlaneseq }
  0x13   : > { %370 = vrot.lane.b32.xlu0 %v1340_v1, %s1496_s8  ;;  %480 = vrot.lane.b32.xlu1 %v1340_v1, %s1497_s9  ;;  %v432_v3 = vsel %vm380_vm0, %v1340_v1, 0  ;;  %v1339_v6 = vcombine.low %v358_v5, %v358_v5  ;;  %s1501_s14 = smov 125   ;;  %s1502_s15 = smov 124   ;;  %v359_v7 = vld [vmem:[%s1735_s2] sm:$0xff]  ;;  %vm484_vm3 = vcmask 1031168   ;;  %vm544_vm4 = vcmask 1022976  }
  0x14   : > { %1344 = vmatprep.subr.msk.bf16.mxu1 %vm380_vm0, %v1341_v2  ;;  %1467 = vset.pattern.permute.xlu0 %v1498_v4  ;;  %s1503_s16 = smov 104   ;;  %s1504_s17 = smov 96   ;;  %vm604_vm5 = vcmask 1014784   ;;  %vm664_vm6 = vcmask 1006592   ;;  %vm724_vm7 = vcmask 998400   ;;  %v1509_v44 = vmov 0.0|0.0  }
  0x15   : > { %452 = vmatpush1.bf16.msra.mxu1 %v432_v3  ;;  %s1505_s18 = smov 123   ;;  %s1506_s22 = smov 122   ;;  %v808_v42 = vld [vmem:[%s1736_s3] sm:$0xf]  ;;  %v1510_v45 = vmov 0.0   ;;  %v1649_v0 = vand.u32 127, %v787_v58 }
  0x16   : > { %s1507_s23 = smov 88   ;;  %s1508_s26 = smov 80   ;;  %v1635_v43 = vcombine.low %v808_v42, %v808_v42  ;;  %vm1511_vm8 = vmmov 0   ;;  %vm355_vm12 = vcmask 7168  }
  0x17   : > { %372 = vrot.lane.b32.xlu0 %v1341_v2, %s1496_s8  ;;  %363 = vrot.lane.b32.xlu1 %v1339_v6, %s1499_s12  ;;  %356 = vst.msk [vmem:[%s1566_s29] sm:$0xff] %vm355_vm12, %v1510_v45  ;;  %357 = vst.msk [vmem:[%s1571_s7] sm:$0xff] %vm355_vm12, %v1510_v45  ;;  %vm1185_vm13 = vcmp.lt.s32.totalorder %v1649_v0, 16 }
  0x18   : > { %1345 = vmatmul.mubr.msk.bf16.vlgmr.msra.gmra.mxu1 %vm376_vm1, %v358_v5  ;;  %v792_v5 = vadd.s32 4294967293, %v1649_v0 }
  0x19   : > { %587 = vmatprep.mubr.bf16.mxu1 %v1498_v4 }
  0x1a   : > { %vm794_vm9 = vcmp.ge.s32.totalorder %v792_v5, 0  ;;  %vm796_vm10 = vcmp.lt.s32.totalorder %v792_v5, 16 }
  0x1b   : > { %482 = vrot.lane.b32.xlu0 %v1341_v2, %s1497_s9  ;;  %478 = vrot.lane.b32.xlu1 %v1339_v6, %s1500_s13  ;;  %vm798_vm11 = vmand %vm794_vm9, %vm796_vm10 }
  0x1f   : > { %540 = vrot.lane.b32.xlu0 %v1340_v1, %s1501_s14  ;;  %542 = vrot.lane.b32.xlu1 %v1341_v2, %s1501_s14 }
  0x23   : > { %600 = vrot.lane.b32.xlu0 %v1340_v1, %s1502_s15  ;;  %602 = vrot.lane.b32.xlu1 %v1341_v2, %s1502_s15 }
  0x27   : > { %538 = vrot.lane.b32.xlu0 %v1339_v6, %s1503_s16  ;;  %598 = vrot.lane.b32.xlu1 %v1339_v6, %s1504_s17 }
  0x2b   : > { %660 = vrot.lane.b32.xlu0 %v1340_v1, %s1505_s18  ;;  %662 = vrot.lane.b32.xlu1 %v1341_v2, %s1505_s18 }
  0x2f   : > { %720 = vrot.lane.b32.xlu0 %v1340_v1, %s1506_s22  ;;  %722 = vrot.lane.b32.xlu1 %v1341_v2, %s1506_s22 }
  0x33   : > { %658 = vrot.lane.b32.xlu0 %v1339_v6, %s1507_s23  ;;  %718 = vrot.lane.b32.xlu1 %v1339_v6, %s1508_s26 }
  0x37   : > { %780 = vperm.xlu0 %1467, %v359_v7   ;;  %818 = vrot.lane.b32.xlu1 %v1509_v44, %s1496_s8 }
  0x3b   : > { %812 = vrot.lane.b32.xlu0 %v1635_v43, %s1499_s12  ;;  %913 = vrot.lane.b32.xlu1 %v1635_v43, %s1500_s13 }
  0x3f   : > { %917 = vrot.lane.b32.xlu0 %v1509_v44, %s1497_s9 }
  0x43   : > { %967 = vrot.lane.b32.xlu0 %v1635_v43, %s1503_s16 }
  0x85   : > { %v371_v8 = vpop.permute.xlu0 %370  ;;  %v481_v9 = vpop.permute.xlu1 %480 }
  0x89   : > { %v373_v10 = vpop.permute.xlu0 %372  ;;  %v364_v14 = vpop.permute.xlu1 %363 }
  0x8a   : > { %1342 = vmatprep.subr.msk.bf16.mxu0 %vm380_vm0, %v373_v10  ;;  %v375_v11 = vsel %vm374_vm2, %v371_v8, %v373_v10 }
  0x8b   : > { %v382_v12 = vsel %vm380_vm0, %v375_v11, 0 }
  0x8c   : > { %402 = vmatpush1.bf16.msra.mxu0 %v382_v12 }
  0x8d   : > { %v483_v13 = vpop.permute.xlu0 %482  ;;  %v479_v17 = vpop.permute.xlu1 %478 }
  0x8e   : > { %v485_v15 = vsel %vm484_vm3, %v481_v9, %v483_v13  ;;  %1346 = vmatprep.subr.msk.bf16.mxu0 %vm380_vm0, %v483_v13 }
  0x8f   : > { %v490_v16 = vsel %vm380_vm0, %v485_v15, 0  ;;  %1343 = vmatmul.mubr.msk.bf16.vlgmr.msra.gmra.mxu0 %vm376_vm1, %v364_v14 }
  0x90   : > { %510 = vmatpush1.bf16.msra.mxu0 %v490_v16  ;;  %527 = vmatprep.mubr.bf16.mxu0 %v1498_v4 }
  0x91   : > { %v541_v18 = vpop.permute.xlu0 %540  ;;  %v543_v19 = vpop.permute.xlu1 %542 }
  0x92   : > { %v545_v21 = vsel %vm544_vm4, %v541_v18, %v543_v19  ;;  %1348 = vmatprep.subr.msk.bf16.mxu1 %vm380_vm0, %v543_v19 }
  0x93   : > { %v550_v22 = vsel %vm380_vm0, %v545_v21, 0 }
  0x94   : > { %570 = vmatpush1.bf16.msra.mxu1 %v550_v22 }
  0x95   : > { %v601_v20 = vpop.permute.xlu0 %600  ;;  %v603_v23 = vpop.permute.xlu1 %602 }
  0x96   : > { %v605_v25 = vsel %vm604_vm5, %v601_v20, %v603_v23  ;;  %1350 = vmatprep.subr.msk.bf16.mxu0 %vm380_vm0, %v603_v23 }
  0x97   : > { %1347 = vmatmul.mubr.msk.bf16.vlgmr.msra.gmra.mxu0 %vm376_vm1, %v479_v17  ;;  %v610_v26 = vsel %vm380_vm0, %v605_v25, 0 }
  0x98   : > { %647 = vmatprep.mubr.bf16.mxu0 %v1498_v4  ;;  %630 = vmatpush1.bf16.msra.mxu0 %v610_v26 }
  0x99   : > { %v539_v24 = vpop.permute.xlu0 %538  ;;  %v599_v27 = vpop.permute.xlu1 %598 }
  0x9a   : > { %1349 = vmatmul.mubr.msk.bf16.vlgmr.msra.gmra.mxu1 %vm376_vm1, %v539_v24 }
  0x9b   : > { %707 = vmatprep.mubr.bf16.mxu1 %v1498_v4 }
  0x9d   : > { %v661_v28 = vpop.permute.xlu0 %660  ;;  %v663_v29 = vpop.permute.xlu1 %662 }
  0x9e   : > { %v665_v31 = vsel %vm664_vm6, %v661_v28, %v663_v29  ;;  %1352 = vmatprep.subr.msk.bf16.mxu1 %vm380_vm0, %v663_v29 }
  0x9f   : > { %1351 = vmatmul.mubr.msk.bf16.vlgmr.msra.gmra.mxu0 %vm376_vm1, %v599_v27  ;;  %v670_v32 = vsel %vm380_vm0, %v665_v31, 0 }
  0xa0   : > { %767 = vmatprep.mubr.bf16.mxu0 %v1498_v4  ;;  %690 = vmatpush1.bf16.msra.mxu1 %v670_v32 }
  0xa1   : > { %v721_v30 = vpop.permute.xlu0 %720  ;;  %v723_v33 = vpop.permute.xlu1 %722  ;;  %1385 = vmatprep.subr.bf16.mxu1 %v1510_v45 }
  0xa2   : > { %v725_v35 = vsel %vm724_vm7, %v721_v30, %v723_v33  ;;  %1354 = vmatprep.subr.msk.bf16.mxu0 %vm380_vm0, %v723_v33 }
  0xa3   : > { %v730_v36 = vsel %vm380_vm0, %v725_v35, 0 }
  0xa4   : > { %750 = vmatpush1.bf16.msra.mxu0 %v730_v36 }
  0xa5   : > { %v659_v34 = vpop.permute.xlu0 %658  ;;  %v719_v37 = vpop.permute.xlu1 %718  ;;  %1391 = vmatprep.subr.bf16.mxu0 %v1510_v45 }
  0xa6   : > { %1353 = vmatmul.mubr.msk.bf16.vlgmr.msra.gmra.mxu1 %vm376_vm1, %v659_v34 }
  0xa7   : > { %1355 = vmatmul.mubr.msk.bf16.vlgmr.msra.gmra.mxu0 %vm376_vm1, %v719_v37  ;;  %1387 = vmatprep.mubr.msk.bf16.mxu1 %vm1511_vm8, %v1510_v45 }
  0xa8   : > { %1393 = vmatprep.mubr.msk.bf16.mxu0 %vm1511_vm8, %v1510_v45 }
  0xa9   : > { %v819_v22 = vpop.permute.xlu1 %818 }
  0xad   : > { %v914_v24 = vpop.permute.xlu1 %913 }
  0xb2   : > { %v781_v8 = vpop.permute.xlu0 %780 }
  0xb6   : > { %v813_v21 = vpop.permute.xlu0 %812 }
  0xba   : > { %v918_v23 = vpop.permute.xlu0 %917 }
  0xbe   : > { %v968_v25 = vpop.permute.xlu0 %967 }
  0xd8   : > { %v471_v38 = vpop.f32.mrf.mxu1 }
  0xda   : > { %v473_v39 = vpop.f32.mrf.mxu1 }
  0xdc   : > { %v475_v40 = vpop.f32.mrf.mxu1 }
  0xde   : > { %v476_v41 = vpop.f32.mrf.mxu1 }
 0x14f   : > { %v421_v46 = vpop.f32.mrf.mxu0 }
 0x150   : > { %v472_v61 = vadd.f32 %v471_v38, %v421_v46 }
 0x151   : > { %v423_v47 = vpop.f32.mrf.mxu0 }
 0x153   : > { %v425_v48 = vpop.f32.mrf.mxu0 }
 0x155   : > { %v426_v49 = vpop.f32.mrf.mxu0 }
 0x157   : > { %v529_v50 = vpop.f32.mrf.mxu0 }
 0x158   : > { %v536_v63 = vadd.f32 %v529_v50, %v472_v61 }
 0x159   : > { %v531_v51 = vpop.f32.mrf.mxu0 }
 0x15a   : > { %v589_v53 = vpop.f32.mrf.mxu1 }
 0x15b   : > { %v533_v52 = vpop.f32.mrf.mxu0  ;;  %v596_v2 = vadd.f32 %v589_v53, %v536_v63 }
 0x15c   : > { %v591_v55 = vpop.f32.mrf.mxu1 }
 0x15d   : > { %v534_v54 = vpop.f32.mrf.mxu0 }
 0x15e   : > { %v593_v56 = vpop.f32.mrf.mxu1 }
 0x15f   : > { %v649_v57 = vpop.f32.mrf.mxu0 }
 0x160   : > { %v594_v59 = vpop.f32.mrf.mxu1  ;;  %v656_v4 = vadd.f32 %v649_v57, %v596_v2 }
 0x161   : > { %v651_v60 = vpop.f32.mrf.mxu0 }
 0x163   : > { %v653_v62 = vpop.f32.mrf.mxu0 }
 0x165   : > { %v654_v1 = vpop.f32.mrf.mxu0 }
 0x166   : > { %v709_v3 = vpop.f32.mrf.mxu1 }
 0x167   : > { %v716_v7 = vadd.f32 %v709_v3, %v656_v4  ;;  %v769_v10 = vpop.f32.mrf.mxu0 }
 0x168   : > { %v711_v6 = vpop.f32.mrf.mxu1 }
 0x169   : > { %v776_v11 = vadd.f32 %v769_v10, %v716_v7  ;;  %v771_v13 = vpop.f32.mrf.mxu0 }
 0x16a   : > { %v713_v9 = vpop.f32.mrf.mxu1 }
 0x16b   : > { %v783_v14 = vadd.f32 %v781_v8, %v776_v11  ;;  %v773_v15 = vpop.f32.mrf.mxu0 }
 0x16c   : > { %v714_v12 = vpop.f32.mrf.mxu1 }
 0x16d   : > { %v785_v16 = vmax.f32 %v783_v14, 0.0  ;;  %v774_v17 = vpop.f32.mrf.mxu0 }
 0x16f   : > { %v804_v18 = vsel %vm798_vm11, %v785_v16, 0.0 }
 0x170   : > { %v806_v19 = vpack.c.bf16 %v804_v18, %v804_v18 }
 0x172   : > { %969 = vrot.lane.b32.xlu0 %v806_v19, %s1501_s14  ;;  %816 = vrot.lane.b32.xlu1 %v806_v19, %s1496_s8  ;;  %v871_v20 = vsel %vm380_vm0, %v806_v19, 0 }
 0x173   : > { %1392 = vmatpush3.bf16.msra.mxu0 %v871_v20 }
 0x174   : > { %1403 = vmatprep.subr.bf16.mxu0 %v1510_v45 }
 0x176   : > { %1023 = vrot.lane.b32.xlu0 %v806_v19, %s1502_s15  ;;  %971 = vrot.lane.b32.xlu1 %v1509_v44, %s1501_s14 }
 0x177   : > { %1394 = vmatmul.mubr.msk.bf16.vlgmr.msra.gmra.mxu0 %vm376_vm1, %v808_v42 }
 0x178   : > { %1405 = vmatprep.mubr.msk.bf16.mxu0 %vm1511_vm8, %v1510_v45 }
 0x17a   : > { %1077 = vrot.lane.b32.xlu0 %v806_v19, %s1505_s18  ;;  %915 = vrot.lane.b32.xlu1 %v806_v19, %s1497_s9 }
 0x17e   : > { %1131 = vrot.lane.b32.xlu0 %v806_v19, %s1506_s22  ;;  %1025 = vrot.lane.b32.xlu1 %v1509_v44, %s1502_s15 }
 0x182   : > { %1021 = vrot.lane.b32.xlu1 %v1635_v43, %s1504_s17  ;;  %1075 = vrot.lane.b32.xlu0 %v1635_v43, %s1507_s23 }
 0x186   : > { %1079 = vrot.lane.b32.xlu1 %v1509_v44, %s1505_s18 }
 0x18a   : > { %1133 = vrot.lane.b32.xlu1 %v1509_v44, %s1506_s22 }
 0x18e   : > { %1129 = vrot.lane.b32.xlu1 %v1635_v43, %s1508_s26 }
 0x1e4   : > { %v817_v26 = vpop.permute.xlu1 %816  ;;  %v970_v27 = vpop.permute.xlu0 %969 }
 0x1e5   : > { %v820_v28 = vsel %vm374_vm2, %v817_v26, %v819_v22  ;;  %v1195_v26 = vld [vmem:[%s1571_s7] sm:$0xff] }
 0x1e6   : > { %v825_v29 = vsel %vm380_vm0, %v820_v28, 0 }
 0x1e7   : > { %1386 = vmatpush3.bf16.msra.mxu1 %v825_v29 }
 0x1e8   : > { %v972_v30 = vpop.permute.xlu1 %971  ;;  %1397 = vmatprep.subr.bf16.mxu1 %v1510_v45  ;;  %v1024_v33 = vpop.permute.xlu0 %1023 }
 0x1e9   : > { %v973_v31 = vsel %vm544_vm4, %v970_v27, %v972_v30 }
 0x1ea   : > { %v978_v32 = vsel %vm380_vm0, %v973_v31, 0  ;;  %1388 = vmatmul.mubr.msk.bf16.vlgmr.msra.gmra.mxu1 %vm376_vm1, %v813_v21 }
 0x1eb   : > { %1404 = vmatpush3.bf16.msra.mxu0 %v978_v32  ;;  %1399 = vmatprep.mubr.msk.bf16.mxu1 %vm1511_vm8, %v1510_v45 }
 0x1ec   : > { %v916_v34 = vpop.permute.xlu1 %915  ;;  %1415 = vmatprep.subr.bf16.mxu0 %v1510_v45  ;;  %v1078_v38 = vpop.permute.xlu0 %1077 }
 0x1ed   : > { %v919_v35 = vsel %vm484_vm3, %v916_v34, %v918_v23 }
 0x1ee   : > { %v924_v36 = vsel %vm380_vm0, %v919_v35, 0  ;;  %1406 = vmatmul.mubr.msk.bf16.vlgmr.msra.gmra.mxu0 %vm376_vm1, %v968_v25 }
 0x1ef   : > { %1398 = vmatpush3.bf16.msra.mxu1 %v924_v36  ;;  %1417 = vmatprep.mubr.msk.bf16.mxu0 %vm1511_vm8, %v1510_v45 }
 0x1f0   : > { %v1026_v37 = vpop.permute.xlu1 %1025  ;;  %1409 = vmatprep.subr.bf16.mxu1 %v1510_v45  ;;  %v1132_v42 = vpop.permute.xlu0 %1131 }
 0x1f1   : > { %v1027_v39 = vsel %vm604_vm5, %v1024_v33, %v1026_v37 }
 0x1f2   : > { %v1032_v40 = vsel %vm380_vm0, %v1027_v39, 0  ;;  %1400 = vmatmul.mubr.msk.bf16.vlgmr.msra.gmra.mxu1 %vm376_vm1, %v914_v24  ;;  %v1189_v24 = vld [vmem:[%s1566_s29] sm:$0xff] }
 0x1f3   : > { %1410 = vmatpush3.bf16.msra.mxu1 %v1032_v40  ;;  %1411 = vmatprep.mubr.msk.bf16.mxu1 %vm1511_vm8, %v1510_v45 }
 0x1f4   : > { %v1022_v41 = vpop.permute.xlu1 %1021  ;;  %1421 = vmatprep.subr.bf16.mxu1 %v1510_v45  ;;  %v1076_v47 = vpop.permute.xlu0 %1075 }
 0x1f8   : > { %v1080_v43 = vpop.permute.xlu1 %1079 }
 0x1f9   : > { %v1081_v44 = vsel %vm664_vm6, %v1078_v38, %v1080_v43 }
 0x1fa   : > { %v1086_v46 = vsel %vm380_vm0, %v1081_v44, 0  ;;  %1412 = vmatmul.mubr.msk.bf16.vlgmr.msra.gmra.mxu1 %vm376_vm1, %v1022_v41 }
 0x1fb   : > { %1416 = vmatpush3.bf16.msra.mxu0 %v1086_v46  ;;  %1423 = vmatprep.mubr.msk.bf16.mxu1 %vm1511_vm8, %v1510_v45 }
 0x1fc   : > { %v1134_v48 = vpop.permute.xlu1 %1133 }
 0x1fd   : > { %v1135_v49 = vsel %vm724_vm7, %v1132_v42, %v1134_v48 }
 0x1fe   : > { %v1140_v50 = vsel %vm380_vm0, %v1135_v49, 0  ;;  %1418 = vmatmul.mubr.msk.bf16.vlgmr.msra.gmra.mxu0 %vm376_vm1, %v1076_v47 }
 0x1ff   : > { %1422 = vmatpush3.bf16.msra.mxu1 %v1140_v50 }
 0x200   : > { %v1130_v51 = vpop.permute.xlu1 %1129 }
 0x202   : > { %1424 = vmatmul.mubr.msk.bf16.vlgmr.msra.gmra.mxu1 %vm376_vm1, %v1130_v51 }
 0x237   : > { %v907_v52 = vpop.f32.mrf.mxu0 }
 0x239   : > { %v1395_v53 = vpop.f32.mrf.mxu0 }
 0x23b   : > { %v910_v54 = vpop.f32.mrf.mxu0 }
 0x23d   : > { %v1396_v55 = vpop.f32.mrf.mxu0 }
 0x2aa   : > { %v861_v56 = vpop.f32.mrf.mxu1 }
 0x2ab   : > { %v908_v4 = vadd.f32 %v907_v52, %v861_v56 }
 0x2ac   : > { %v1389_v57 = vpop.f32.mrf.mxu1 }
 0x2ae   : > { %v864_v58 = vpop.f32.mrf.mxu1  ;;  %v1014_v59 = vpop.f32.mrf.mxu0 }
 0x2b0   : > { %v1390_v60 = vpop.f32.mrf.mxu1  ;;  %v1407_v61 = vpop.f32.mrf.mxu0 }
 0x2b2   : > { %v960_v62 = vpop.f32.mrf.mxu1  ;;  %v1017_v63 = vpop.f32.mrf.mxu0 }
 0x2b3   : > { %v966_v6 = vadd.f32 %v960_v62, %v908_v4 }
 0x2b4   : > { %v1401_v1 = vpop.f32.mrf.mxu1  ;;  %v1408_v2 = vpop.f32.mrf.mxu0 }
 0x2b5   : > { %v1020_v9 = vadd.f32 %v1014_v59, %v966_v6 }
 0x2b6   : > { %v963_v3 = vpop.f32.mrf.mxu1 }
 0x2b8   : > { %v1402_v5 = vpop.f32.mrf.mxu1 }
 0x2ba   : > { %v1068_v7 = vpop.f32.mrf.mxu1 }
 0x2bb   : > { %v1074_v45 = vadd.f32 %v1068_v7, %v1020_v9 }
 0x2bc   : > { %v1413_v8 = vpop.f32.mrf.mxu1 }
 0x2be   : > { %v1071_v10 = vpop.f32.mrf.mxu1  ;;  %v1122_v11 = vpop.f32.mrf.mxu0 }
 0x2bf   : > { %v1128_v14 = vadd.f32 %v1122_v11, %v1074_v45 }
 0x2c0   : > { %v1414_v12 = vpop.f32.mrf.mxu1  ;;  %v1419_v13 = vpop.f32.mrf.mxu0 }
 0x2c2   : > { %v1176_v15 = vpop.f32.mrf.mxu1  ;;  %v1125_v16 = vpop.f32.mrf.mxu0 }
 0x2c3   : > { %v1182_v17 = vadd.f32 %v1176_v15, %v1128_v14 }
 0x2c4   : > { %v1425_v18 = vpop.f32.mrf.mxu1  ;;  %v1420_v19 = vpop.f32.mrf.mxu0 }
 0x2c5   : > { %v1188_v20 = vsel %vm1185_vm13, %v1182_v17, 0.0 }
 0x2c6   : > { %1190 = vadd.xlane.f32.xlu0 %v1188_v20  ;;  %v1179_v21 = vpop.f32.mrf.mxu1  ;;  %v1196_v22 = vmul.f32 %v1188_v20, %v1188_v20 }
 0x2c8   : > { %1197 = vadd.xlane.f32.xlu1 %v1196_v22  ;;  %v1426_v23 = vpop.f32.mrf.mxu1 }
 0x34f   : > { %v1191_v25 = vpop.xlane.xlu0 %1190 }
 0x350   : > { %v1192_v27 = vadd.f32 %v1191_v25, %v1189_v24 }
 0x351   : > { %v1198_v28 = vpop.xlane.xlu1 %1197 }
 0x352   : > { %1194 = vst.msk [vmem:[%s1566_s29] sm:$0xff] %vm355_vm12, %v1192_v27  ;;  %v1199_v29 = vadd.f32 %v1198_v28, %v1195_v26 }
 0x354   : > { %1200 = vst.msk [vmem:[%s1571_s7] sm:$0xff] %vm355_vm12, %v1199_v29 }
 0x355 PF: > { %s16_s20 = sadd.s32 1, %s1494_s20   ;;  %s1739_s18 = smov %s1490_s19 }
 0x356   : > { %p13_p5 = scmp.ge.s32.totalorder %s16_s20, 4   ;;  %s1740_s19 = smov %s1742_s21 }
 0x358   :  { %15 = sbr.rel (!%p13_p5) target bundleno = 2 (0x2), region = 176 }
 0x35d   :  { %1234 = vsyncmov [#allocation3] }
 0x360   :  { %s1235_s30 = vpop.sfrf %1234 }
 0x361   :  { %p1366_p6 = scmp.ne.s32.totalorder %s1235_s30, 0 }
 0x363   :  { %1239 = shalt.err (%p1366_p6)  }
 0x364   :  { %1241 = vsyncmov [#allocation3 + $0x1] }
 0x367   :  { %s1242_s29 = vpop.sfrf %1241 }
 0x368   :  { %p1367_p7 = scmp.ne.s32.totalorder %s1242_s29, 0 }
 0x36a   :  { %1246 = shalt.err (%p1367_p7)  }

// kernel: re_block_forward.7
= control target key start
LH: loop header
LB: loop body
LE: loop exit
PB: predicated region body
PF: predicated region fallthrough
CT: control target
= control target key end

     0   :  { %12 = vsyncpa [#allocation5], 0  ;;  %s2007_s0 = inlined_call_operand.vmem [shape: bf16[2,8,256], index: 0, kind: input, shape index: {}]   ;;  %s2008_s1 = inlined_call_operand.vmem [shape: f32[2,8,128], index: 1, kind: input, shape index: {}]   ;;  %s2009_s2 = inlined_call_operand.vmem [shape: bf16[8,56], index: 2, kind: input, shape index: {}]   ;;  %s2010_s3 = inlined_call_operand.vmem [shape: f32[8,1], index: 3, kind: input, shape index: {}]   ;;  %s2011_s4 = inlined_call_operand.vmem [shape: bf16[8,56], index: 4, kind: input, shape index: {}]   ;;  %s2012_s5 = inlined_call_operand.vmem [shape: f32[8,1], index: 5, kind: input, shape index: {}]   ;;  %s2013_s6 = inlined_call_operand.vmem [shape: f32[2,8,1], index: 6, kind: input, shape index: {}]   ;;  %s2014_s7 = inlined_call_operand.hbm [shape: f32[2,8,128], index: 7, kind: output, shape index: {}]  }
   0x1   :  { %14 = vsyncpa [#allocation5 + $0x1], 0  ;;  %s1745_s24 = smov 0   ;;  %s1747_s25 = smov 0  }
   0x2   :  { %s1749_s26 = smov 0   ;;  %s1751_s27 = smov 0  }
   0x3   :  { %s1753_s28 = smov 0   ;;  %s1755_s29 = smov 0  }
   0x4 LB: > { %s1429_s30 = sadd.s32 4294967295, %s1686_s29   ;;  %s1430_s8 = sadd.s32 4294967294, %s1686_s29   ;;  %s1686_s29 = sphi %s1755_s29, %s20_s29   ;;  %s1682_s28 = sphi %s1753_s28, %s2038_s28   ;;  %s1678_s27 = sphi %s1751_s27, %s2037_s27   ;;  %s1674_s26 = sphi %s1749_s26, %s2036_s26   ;;  %s1670_s25 = sphi %s1747_s25, %s2035_s25   ;;  %s1666_s24 = sphi %s1745_s24, %s2034_s24  }
   0x5   : > { %s32_s9 = sadd.s32 1, %s1682_s28  ;;  %s179_s10 = sadd.s32 1, %s1674_s26 }
   0x6   : > { %p34_p0 = scmp.ge.s32.totalorder %s32_s9, 2  ;;  %p189_p1 = scmp.ne.s32.totalorder %s1674_s26, %s1670_s25 }
   0x7   : > { %p190_p2 = scmp.eq.s32.totalorder %s1429_s30, 1  ;;  %p195_p3 = scmp.ne.s32.totalorder %s1670_s25, %s1666_s24 }
   0x8   : > { %s2040_s9 = smov (%p34_p0, %s32_s9), 0  ;;  %p196_p5 = scmp.eq.s32.totalorder %s1430_s8, 1 }
   0x9   : > { %2023 = sst [smem:[#allocation10_spill]] %s2040_s9  ;;  %p1785_p4 = por %p190_p2, %p189_p1 }
   0xa   : > { %s174_s12 = ssub.s32 %s1682_s28, %s2040_s9  ;;  %p1433_p6 = scmp.ge.s32.totalorder %s1686_s29, 1 }
   0xb   : > { %p177_p7 = scmp.eq.s32.totalorder %s174_s12, 0  ;;  %p1792_p8 = por %p196_p5, %p195_p3 }
   0xc   : > { %p243_p9 = scmp.lt.s32.totalorder %s1686_s29, 3 }
   0xd   : > { %s1798_s14 = scalar_select %p177_p7, %s1674_s26, %s179_s10  }
   0xe   : > { %p244_p10 = pnand %p1433_p6, %p243_p9 }
   0xf   : > { %s2016_s15 = sand.u32 (!%p244_p10), 1, %s1670_s25   ;;  %p279_p11 = scmp.lt.s32.totalorder (!%p244_p10), %s1678_s27, 1 }
  0x10   : > { %247 = sbr.rel (%p244_p10) target bundleno = 740 (0x2e4), region = 44  ;;  %s1804_s16 = sshll.u32 (!%p244_p10), %s2016_s15, 3 }
  0x11   : > { %s1474_s17 = sshll.u32 (!%p244_p10), %s1678_s27, 3 }
  0x12   : > { %s313_s20 = scalar_lea.vmem (!%p244_p10), %s2007_s0, %s1474_s17 }
  0x15   : > { %s280_s21 = scalar_select %p279_p11, %s1678_s27, 1  ;;  %v351_v0 = vld [vmem:[%s313_s20] sm:$0xff] }
  0x17   : > { %s1435_s22 = sshll.u32 %s280_s21, 3 }
  0x18   : > { %s1814_s8 = scalar_lea.vmem %s2008_s1, %s1435_s22  ;;  %s1819_s9 = scalar_lea.vmem %s2013_s6, %s1435_s22 }
  0x19   : > { %360 = vsyncadd [#allocation3], 128 }
  0x1a   : > { %1658 = dma.done.wait [#allocation3], 128 }
  0x1b   : > { %1659 = vsyncadd [#allocation3], 4294967168  ;;  %v1444_v1 = vcombine.low %v351_v0, %v351_v0  ;;  %vm464_vm0 = vcmask 1043456   ;;  %v1445_v2 = vcombine.high %v351_v0, %v351_v0  ;;  %s1688_s17 = smov 127   ;;  %s1689_s18 = smov 126   ;;  %v1690_v4 = vmov 0  }
  0x1c   : > { %503 = vmatprep.mubr.bf16.mxu0 %v1690_v4  ;;  %553 = vmatprep.mubr.bf16.mxu1 %v1690_v4  ;;  %vm460_vm1 = vcmask 64512   ;;  %v442_v5 = vld [vmem:[%s2009_s2] sm:$0xf]  ;;  %s1691_s21 = smov 120   ;;  %s2021_s22 = smov 112   ;;  %vm458_vm2 = vcmask 1039360   ;;  %v871_v58 = vlaneseq }
  0x1d   : > { %454 = vrot.lane.b32.xlu0 %v1444_v1, %s1688_s17  ;;  %564 = vrot.lane.b32.xlu1 %v1444_v1, %s1689_s18  ;;  %v516_v3 = vsel %vm464_vm0, %v1444_v1, 0  ;;  %v1443_v6 = vcombine.low %v442_v5, %v442_v5  ;;  %s2019_s23 = smov 125   ;;  %s2017_s30 = smov 124   ;;  %v443_v7 = vld [vmem:[%s2010_s3] sm:$0xff]  ;;  %vm568_vm3 = vcmask 1031168   ;;  %vm628_vm4 = vcmask 1022976  }
  0x1e   : > { %1448 = vmatprep.subr.msk.bf16.mxu1 %vm464_vm0, %v1445_v2  ;;  %1604 = vset.pattern.permute.xlu0 %v1690_v4  ;;  %s1695_s10 = smov 104   ;;  %s1696_s12 = smov 96   ;;  %vm688_vm5 = vcmask 1014784   ;;  %vm748_vm6 = vcmask 1006592   ;;  %vm808_vm7 = vcmask 998400   ;;  %v1701_v44 = vmov 0.0|0.0  }
  0x1f   : > { %536 = vmatpush1.bf16.msra.mxu1 %v516_v3  ;;  %1605 = vset.pattern.permute.xlu1 %v1690_v4  ;;  %s1697_s19 = smov 123   ;;  %s1698_s20 = smov 122   ;;  %v892_v42 = vld [vmem:[%s2011_s4] sm:$0xf]  ;;  %v1702_v45 = vmov 0.0   ;;  %v872_v0 = vand.u32 127, %v871_v58 }
  0x20   : > { %s1699_s15 = smov 88   ;;  %v1885_v43 = vcombine.low %v892_v42, %v892_v42  ;;  %vm1703_vm8 = vmmov 0  }
  0x21   : > { %456 = vrot.lane.b32.xlu0 %v1445_v2, %s1688_s17  ;;  %447 = vrot.lane.b32.xlu1 %v1443_v6, %s1691_s21 }
  0x22   : > { %1449 = vmatmul.mubr.msk.bf16.vlgmr.msra.gmra.mxu1 %vm460_vm1, %v442_v5  ;;  %v876_v5 = vadd.s32 4294967293, %v872_v0 }
  0x23   : > { %671 = vmatprep.mubr.bf16.mxu1 %v1690_v4 }
  0x24   : > { %vm878_vm9 = vcmp.ge.s32.totalorder %v876_v5, 0  ;;  %vm880_vm10 = vcmp.lt.s32.totalorder %v876_v5, 16 }
  0x25   : > { %566 = vrot.lane.b32.xlu0 %v1445_v2, %s1689_s18  ;;  %562 = vrot.lane.b32.xlu1 %v1443_v6, %s2021_s22  ;;  %s2022_s22 = smov 80   ;;  %vm882_vm11 = vmand %vm878_vm9, %vm880_vm10 }
  0x29   : > { %624 = vrot.lane.b32.xlu0 %v1444_v1, %s2019_s23  ;;  %626 = vrot.lane.b32.xlu1 %v1445_v2, %s2019_s23 }
  0x2d   : > { %684 = vrot.lane.b32.xlu0 %v1444_v1, %s2017_s30  ;;  %686 = vrot.lane.b32.xlu1 %v1445_v2, %s2017_s30 }
  0x31   : > { %622 = vrot.lane.b32.xlu0 %v1443_v6, %s1695_s10  ;;  %682 = vrot.lane.b32.xlu1 %v1443_v6, %s1696_s12 }
  0x35   : > { %744 = vrot.lane.b32.xlu0 %v1444_v1, %s1697_s19  ;;  %746 = vrot.lane.b32.xlu1 %v1445_v2, %s1697_s19 }
  0x39   : > { %804 = vrot.lane.b32.xlu0 %v1444_v1, %s1698_s20  ;;  %806 = vrot.lane.b32.xlu1 %v1445_v2, %s1698_s20 }
  0x3d   : > { %742 = vrot.lane.b32.xlu0 %v1443_v6, %s1699_s15  ;;  %802 = vrot.lane.b32.xlu1 %v1443_v6, %s2022_s22  ;;  %s2026_s22 = smov 112  }
  0x41   : > { %864 = vperm.xlu0 %1604, %v443_v7   ;;  %902 = vrot.lane.b32.xlu1 %v1701_v44, %s1688_s17 }
  0x45   : > { %896 = vrot.lane.b32.xlu0 %v1885_v43, %s1691_s21  ;;  %997 = vrot.lane.b32.xlu1 %v1885_v43, %s2026_s22  ;;  %s2027_s21 = smov 125   ;;  %s2028_s22 = smov 124  }
  0x49   : > { %1001 = vrot.lane.b32.xlu0 %v1701_v44, %s1689_s18 }
  0x4d   : > { %1051 = vrot.lane.b32.xlu0 %v1885_v43, %s1695_s10 }
  0x8f   : > { %v455_v8 = vpop.permute.xlu0 %454  ;;  %v565_v9 = vpop.permute.xlu1 %564 }
  0x93   : > { %v457_v10 = vpop.permute.xlu0 %456  ;;  %v448_v14 = vpop.permute.xlu1 %447 }
  0x94   : > { %1446 = vmatprep.subr.msk.bf16.mxu0 %vm464_vm0, %v457_v10  ;;  %v459_v11 = vsel %vm458_vm2, %v455_v8, %v457_v10 }
  0x95   : > { %v466_v12 = vsel %vm464_vm0, %v459_v11, 0 }
  0x96   : > { %486 = vmatpush1.bf16.msra.mxu0 %v466_v12 }
  0x97   : > { %v567_v13 = vpop.permute.xlu0 %566  ;;  %v563_v17 = vpop.permute.xlu1 %562 }
  0x98   : > { %v569_v15 = vsel %vm568_vm3, %v565_v9, %v567_v13  ;;  %1450 = vmatprep.subr.msk.bf16.mxu0 %vm464_vm0, %v567_v13 }
  0x99   : > { %v574_v16 = vsel %vm464_vm0, %v569_v15, 0  ;;  %1447 = vmatmul.mubr.msk.bf16.vlgmr.msra.gmra.mxu0 %vm460_vm1, %v448_v14 }
  0x9a   : > { %594 = vmatpush1.bf16.msra.mxu0 %v574_v16  ;;  %611 = vmatprep.mubr.bf16.mxu0 %v1690_v4 }
  0x9b   : > { %v625_v18 = vpop.permute.xlu0 %624  ;;  %v627_v19 = vpop.permute.xlu1 %626 }
  0x9c   : > { %v629_v21 = vsel %vm628_vm4, %v625_v18, %v627_v19  ;;  %1452 = vmatprep.subr.msk.bf16.mxu1 %vm464_vm0, %v627_v19 }
  0x9d   : > { %v634_v22 = vsel %vm464_vm0, %v629_v21, 0  ;;  %v1267_v21 = vld [vmem:[%s2012_s5] sm:$0xff] }
  0x9e   : > { %654 = vmatpush1.bf16.msra.mxu1 %v634_v22  ;;  %v1277_v22 = vld [vmem:[%s1819_s9] sm:$0xff]  ;;  %s1469_s9 = sshll.u32 %s1678_s27, 7 }
  0x9f   : > { %v685_v20 = vpop.permute.xlu0 %684  ;;  %v687_v23 = vpop.permute.xlu1 %686  ;;  %s1298_s23 = scalar_lea.hbm %s2014_s7, %s1469_s9 }
  0xa0   : > { %v689_v25 = vsel %vm688_vm5, %v685_v20, %v687_v23  ;;  %1454 = vmatprep.subr.msk.bf16.mxu0 %vm464_vm0, %v687_v23 }
  0xa1   : > { %1451 = vmatmul.mubr.msk.bf16.vlgmr.msra.gmra.mxu0 %vm460_vm1, %v563_v17  ;;  %v694_v26 = vsel %vm464_vm0, %v689_v25, 0 }
  0xa2   : > { %731 = vmatprep.mubr.bf16.mxu0 %v1690_v4  ;;  %714 = vmatpush1.bf16.msra.mxu0 %v694_v26 }
  0xa3   : > { %v623_v24 = vpop.permute.xlu0 %622  ;;  %v683_v27 = vpop.permute.xlu1 %682 }
  0xa4   : > { %1453 = vmatmul.mubr.msk.bf16.vlgmr.msra.gmra.mxu1 %vm460_vm1, %v623_v24 }
  0xa5   : > { %791 = vmatprep.mubr.bf16.mxu1 %v1690_v4 }
  0xa7   : > { %v745_v28 = vpop.permute.xlu0 %744  ;;  %v747_v29 = vpop.permute.xlu1 %746 }
  0xa8   : > { %v749_v31 = vsel %vm748_vm6, %v745_v28, %v747_v29  ;;  %1456 = vmatprep.subr.msk.bf16.mxu1 %vm464_vm0, %v747_v29 }
  0xa9   : > { %1455 = vmatmul.mubr.msk.bf16.vlgmr.msra.gmra.mxu0 %vm460_vm1, %v683_v27  ;;  %v754_v32 = vsel %vm464_vm0, %v749_v31, 0 }
  0xaa   : > { %851 = vmatprep.mubr.bf16.mxu0 %v1690_v4  ;;  %774 = vmatpush1.bf16.msra.mxu1 %v754_v32 }
  0xab   : > { %v805_v30 = vpop.permute.xlu0 %804  ;;  %v807_v33 = vpop.permute.xlu1 %806  ;;  %1491 = vmatprep.subr.bf16.mxu1 %v1702_v45 }
  0xac   : > { %v809_v35 = vsel %vm808_vm7, %v805_v30, %v807_v33  ;;  %1458 = vmatprep.subr.msk.bf16.mxu0 %vm464_vm0, %v807_v33 }
  0xad   : > { %v814_v36 = vsel %vm464_vm0, %v809_v35, 0 }
  0xae   : > { %834 = vmatpush1.bf16.msra.mxu0 %v814_v36 }
  0xaf   : > { %v743_v34 = vpop.permute.xlu0 %742  ;;  %v803_v37 = vpop.permute.xlu1 %802  ;;  %1497 = vmatprep.subr.bf16.mxu0 %v1702_v45 }
  0xb0   : > { %1457 = vmatmul.mubr.msk.bf16.vlgmr.msra.gmra.mxu1 %vm460_vm1, %v743_v34 }
  0xb1   : > { %1459 = vmatmul.mubr.msk.bf16.vlgmr.msra.gmra.mxu0 %vm460_vm1, %v803_v37  ;;  %1493 = vmatprep.mubr.msk.bf16.mxu1 %vm1703_vm8, %v1702_v45 }
  0xb2   : > { %1499 = vmatprep.mubr.msk.bf16.mxu0 %vm1703_vm8, %v1702_v45 }
  0xb3   : > { %v903_v24 = vpop.permute.xlu1 %902 }
  0xb7   : > { %v998_v26 = vpop.permute.xlu1 %997 }
  0xbc   : > { %v865_v8 = vpop.permute.xlu0 %864 }
  0xc0   : > { %v897_v23 = vpop.permute.xlu0 %896 }
  0xc4   : > { %v1002_v25 = vpop.permute.xlu0 %1001 }
  0xc8   : > { %v1052_v27 = vpop.permute.xlu0 %1051 }
  0xe2   : > { %v555_v38 = vpop.f32.mrf.mxu1 }
  0xe4   : > { %v557_v39 = vpop.f32.mrf.mxu1 }
  0xe6   : > { %v559_v40 = vpop.f32.mrf.mxu1 }
  0xe8   : > { %v560_v41 = vpop.f32.mrf.mxu1 }
 0x159   : > { %v505_v46 = vpop.f32.mrf.mxu0 }
 0x15a   : > { %v556_v61 = vadd.f32 %v555_v38, %v505_v46 }
 0x15b   : > { %v507_v47 = vpop.f32.mrf.mxu0 }
 0x15d   : > { %v509_v48 = vpop.f32.mrf.mxu0 }
 0x15f   : > { %v510_v49 = vpop.f32.mrf.mxu0 }
 0x161   : > { %v613_v50 = vpop.f32.mrf.mxu0 }
 0x162   : > { %v620_v63 = vadd.f32 %v613_v50, %v556_v61 }
 0x163   : > { %v615_v51 = vpop.f32.mrf.mxu0 }
 0x164   : > { %v673_v53 = vpop.f32.mrf.mxu1 }
 0x165   : > { %v617_v52 = vpop.f32.mrf.mxu0  ;;  %v680_v2 = vadd.f32 %v673_v53, %v620_v63 }
 0x166   : > { %v675_v55 = vpop.f32.mrf.mxu1 }
 0x167   : > { %v618_v54 = vpop.f32.mrf.mxu0 }
 0x168   : > { %v677_v56 = vpop.f32.mrf.mxu1 }
 0x169   : > { %v733_v57 = vpop.f32.mrf.mxu0 }
 0x16a   : > { %v678_v59 = vpop.f32.mrf.mxu1  ;;  %v740_v4 = vadd.f32 %v733_v57, %v680_v2 }
 0x16b   : > { %v735_v60 = vpop.f32.mrf.mxu0 }
 0x16d   : > { %v737_v62 = vpop.f32.mrf.mxu0 }
 0x16f   : > { %v738_v1 = vpop.f32.mrf.mxu0 }
 0x170   : > { %v793_v3 = vpop.f32.mrf.mxu1 }
 0x171   : > { %v800_v7 = vadd.f32 %v793_v3, %v740_v4  ;;  %v853_v10 = vpop.f32.mrf.mxu0 }
 0x172   : > { %v795_v6 = vpop.f32.mrf.mxu1 }
 0x173   : > { %v860_v11 = vadd.f32 %v853_v10, %v800_v7  ;;  %v855_v13 = vpop.f32.mrf.mxu0 }
 0x174   : > { %v797_v9 = vpop.f32.mrf.mxu1 }
 0x175   : > { %v867_v14 = vadd.f32 %v865_v8, %v860_v11  ;;  %v857_v15 = vpop.f32.mrf.mxu0 }
 0x176   : > { %v798_v12 = vpop.f32.mrf.mxu1 }
 0x177   : > { %v869_v16 = vmax.f32 %v867_v14, 0.0  ;;  %v858_v17 = vpop.f32.mrf.mxu0 }
 0x179   : > { %v888_v18 = vsel %vm882_vm11, %v869_v16, 0.0 }
 0x17a   : > { %v890_v19 = vpack.c.bf16 %v888_v18, %v888_v18 }
 0x17c   : > { %1053 = vrot.lane.b32.xlu0 %v890_v19, %s2027_s21  ;;  %900 = vrot.lane.b32.xlu1 %v890_v19, %s1688_s17  ;;  %v955_v20 = vsel %vm464_vm0, %v890_v19, 0 }
 0x17d   : > { %1498 = vmatpush3.bf16.msra.mxu0 %v955_v20 }
 0x17e   : > { %1509 = vmatprep.subr.bf16.mxu0 %v1702_v45 }
 0x180   : > { %1107 = vrot.lane.b32.xlu0 %v890_v19, %s2028_s22  ;;  %1055 = vrot.lane.b32.xlu1 %v1701_v44, %s2027_s21  ;;  %s2032_s21 = sand.u32 1, %s1670_s25  }
 0x181   : > { %1500 = vmatmul.mubr.msk.bf16.vlgmr.msra.gmra.mxu0 %vm460_vm1, %v892_v42 }
 0x182   : > { %1511 = vmatprep.mubr.msk.bf16.mxu0 %vm1703_vm8, %v1702_v45 }
 0x184   : > { %1161 = vrot.lane.b32.xlu0 %v890_v19, %s1697_s19  ;;  %999 = vrot.lane.b32.xlu1 %v890_v19, %s1689_s18  ;;  %s2029_s18 = smov 80  }
 0x188   : > { %1215 = vrot.lane.b32.xlu0 %v890_v19, %s1698_s20  ;;  %1109 = vrot.lane.b32.xlu1 %v1701_v44, %s2028_s22  ;;  %s1286_s22 = scalar_lea.sflag [#allocation5], %s2032_s21 }
 0x18c   : > { %1159 = vrot.lane.b32.xlu0 %v1885_v43, %s1699_s15  ;;  %1105 = vrot.lane.b32.xlu1 %v1885_v43, %s1696_s12  ;;  %s2030_s15 = scalar_lea.vmem [#allocation4], %s1804_s16 }
 0x18d   : > { %s1300_s12 = sshll.u32 %s2030_s15, 4  ;;  %s2031_s30 = smov %s2030_s15  ;;  %s1301_s12 = int_to_ptr.vmem [resolvable:$true] %s1300_s12 }
 0x18e   : > { %s1608_s17 = scalar_lea.vmem %s1301_s12, 128 }
 0x18f   : > { %p1609_p12 = scmp.ne.s32.totalorder %s1301_s12, %s1608_s17 }
 0x190   : > { %1270 = vperm.xlu0 %1604, %v1267_v21   ;;  %1163 = vrot.lane.b32.xlu1 %v1701_v44, %s1697_s19 }
 0x191   : > { %p1610_p13 = pnand %p1609_p12, %p1785_p4 }
 0x193   : > { %p1611_p0 = pneg %p1610_p13 }
 0x194   : > { %1217 = vrot.lane.b32.xlu1 %v1701_v44, %s1698_s20 }
 0x198   : > { %1213 = vrot.lane.b32.xlu1 %v1885_v43, %s2029_s18 }
 0x19c   : > { %1280 = vperm.xlu1 %1605, %v1277_v22  }
 0x1ee   : > { %v901_v28 = vpop.permute.xlu1 %900  ;;  %v1054_v29 = vpop.permute.xlu0 %1053 }
 0x1ef   : > { %v904_v30 = vsel %vm458_vm2, %v901_v28, %v903_v24  ;;  %v1275_v24 = vld [vmem:[%s1814_s8] sm:$0xff]  ;;  %s1704_s8 = smov [#allocation4]  }
 0x1f0   : > { %v909_v31 = vsel %vm464_vm0, %v904_v30, 0  ;;  %s1612_s27 = sshll.u32 %s1704_s8, 4  ;;  %s1613_s27 = int_to_ptr.vmem [resolvable:$false] %s1612_s27 }
 0x1f1   : > { %1492 = vmatpush3.bf16.msra.mxu1 %v909_v31  ;;  %s1614_s10 = scalar_lea.vmem %s1613_s27, 256  ;;  %p1615_p1 = scmp.lt.s32.totalorder %s1301_s12, %s1613_s27 }
 0x1f2   : > { %v1056_v32 = vpop.permute.xlu1 %1055  ;;  %1503 = vmatprep.subr.bf16.mxu1 %v1702_v45  ;;  %v1108_v35 = vpop.permute.xlu0 %1107  ;;  %p1616_p2 = scmp.lt.s32.totalorder %s1614_s10, %s1608_s17 }
 0x1f3   : > { %v1057_v33 = vsel %vm628_vm4, %v1054_v29, %v1056_v32 }
 0x1f4   : > { %v1062_v34 = vsel %vm464_vm0, %v1057_v33, 0  ;;  %1494 = vmatmul.mubr.msk.bf16.vlgmr.msra.gmra.mxu1 %vm460_vm1, %v897_v23  ;;  %p1617_p3 = por %p1616_p2, %p1615_p1 }
 0x1f5   : > { %1510 = vmatpush3.bf16.msra.mxu0 %v1062_v34  ;;  %1505 = vmatprep.mubr.msk.bf16.mxu1 %vm1703_vm8, %v1702_v45 }
 0x1f6   : > { %v1000_v36 = vpop.permute.xlu1 %999  ;;  %1521 = vmatprep.subr.bf16.mxu0 %v1702_v45  ;;  %v1162_v40 = vpop.permute.xlu0 %1161  ;;  %p1618_p5 = pnand %p1617_p3, %p1611_p0 }
 0x1f7   : > { %v1003_v37 = vsel %vm568_vm3, %v1000_v36, %v1002_v25 }
 0x1f8   : > { %v1008_v38 = vsel %vm464_vm0, %v1003_v37, 0  ;;  %1512 = vmatmul.mubr.msk.bf16.vlgmr.msra.gmra.mxu0 %vm460_vm1, %v1052_v27 }
 0x1f9   : > { %1504 = vmatpush3.bf16.msra.mxu1 %v1008_v38  ;;  %1523 = vmatprep.mubr.msk.bf16.mxu0 %vm1703_vm8, %v1702_v45 }
 0x1fa   : > { %v1110_v39 = vpop.permute.xlu1 %1109  ;;  %1515 = vmatprep.subr.bf16.mxu1 %v1702_v45  ;;  %v1216_v44 = vpop.permute.xlu0 %1215 }
 0x1fb   : > { %v1111_v41 = vsel %vm688_vm5, %v1108_v35, %v1110_v39 }
 0x1fc   : > { %v1116_v42 = vsel %vm464_vm0, %v1111_v41, 0  ;;  %1506 = vmatmul.mubr.msk.bf16.vlgmr.msra.gmra.mxu1 %vm460_vm1, %v998_v26 }
 0x1fd   : > { %1516 = vmatpush3.bf16.msra.mxu1 %v1116_v42  ;;  %1517 = vmatprep.mubr.msk.bf16.mxu1 %vm1703_vm8, %v1702_v45 }
 0x1fe   : > { %v1106_v43 = vpop.permute.xlu1 %1105  ;;  %1527 = vmatprep.subr.bf16.mxu1 %v1702_v45  ;;  %v1160_v49 = vpop.permute.xlu0 %1159 }
 0x202   : > { %v1164_v46 = vpop.permute.xlu1 %1163 }
 0x203   : > { %v1165_v47 = vsel %vm748_vm6, %v1162_v40, %v1164_v46 }
 0x204   : > { %v1170_v48 = vsel %vm464_vm0, %v1165_v47, 0  ;;  %1518 = vmatmul.mubr.msk.bf16.vlgmr.msra.gmra.mxu1 %vm460_vm1, %v1106_v43 }
 0x205   : > { %1522 = vmatpush3.bf16.msra.mxu0 %v1170_v48  ;;  %1529 = vmatprep.mubr.msk.bf16.mxu1 %vm1703_vm8, %v1702_v45 }
 0x206   : > { %v1218_v50 = vpop.permute.xlu1 %1217 }
 0x207   : > { %v1219_v51 = vsel %vm808_vm7, %v1216_v44, %v1218_v50 }
 0x208   : > { %v1224_v52 = vsel %vm464_vm0, %v1219_v51, 0  ;;  %1524 = vmatmul.mubr.msk.bf16.vlgmr.msra.gmra.mxu0 %vm460_vm1, %v1160_v49 }
 0x209   : > { %1528 = vmatpush3.bf16.msra.mxu1 %v1224_v52 }
 0x20a   : > { %v1214_v53 = vpop.permute.xlu1 %1213 }
 0x20b   : > { %v1271_v18 = vpop.permute.xlu0 %1270 }
 0x20c   : > { %1530 = vmatmul.mubr.msk.bf16.vlgmr.msra.gmra.mxu1 %vm460_vm1, %v1214_v53 }
 0x217   : > { %v1281_v27 = vpop.permute.xlu1 %1280 }
 0x241   : > { %v991_v54 = vpop.f32.mrf.mxu0 }
 0x243   : > { %v1501_v55 = vpop.f32.mrf.mxu0 }
 0x245   : > { %v994_v56 = vpop.f32.mrf.mxu0 }
 0x247   : > { %v1502_v57 = vpop.f32.mrf.mxu0 }
 0x2b4   : > { %v945_v58 = vpop.f32.mrf.mxu1 }
 0x2b5   : > { %v992_v4 = vadd.f32 %v991_v54, %v945_v58 }
 0x2b6   : > { %v1495_v59 = vpop.f32.mrf.mxu1 }
 0x2b8   : > { %v948_v60 = vpop.f32.mrf.mxu1  ;;  %v1098_v61 = vpop.f32.mrf.mxu0 }
 0x2ba   : > { %v1496_v45 = vpop.f32.mrf.mxu1  ;;  %v1513_v62 = vpop.f32.mrf.mxu0 }
 0x2bc   : > { %v1044_v63 = vpop.f32.mrf.mxu1  ;;  %v1101_v0 = vpop.f32.mrf.mxu0 }
 0x2bd   : > { %v1050_v6 = vadd.f32 %v1044_v63, %v992_v4 }
 0x2be   : > { %v1507_v1 = vpop.f32.mrf.mxu1  ;;  %v1514_v2 = vpop.f32.mrf.mxu0 }
 0x2bf   : > { %v1104_v9 = vadd.f32 %v1098_v61, %v1050_v6 }
 0x2c0   : > { %v1047_v3 = vpop.f32.mrf.mxu1 }
 0x2c2   : > { %v1508_v5 = vpop.f32.mrf.mxu1 }
 0x2c4   : > { %v1152_v7 = vpop.f32.mrf.mxu1 }
 0x2c5   : > { %v1158_v12 = vadd.f32 %v1152_v7, %v1104_v9 }
 0x2c6   : > { %v1519_v8 = vpop.f32.mrf.mxu1 }
 0x2c8   : > { %v1155_v10 = vpop.f32.mrf.mxu1  ;;  %v1206_v11 = vpop.f32.mrf.mxu0 }
 0x2c9   : > { %v1212_v15 = vadd.f32 %v1206_v11, %v1158_v12 }
 0x2ca   : > { %v1520_v13 = vpop.f32.mrf.mxu1  ;;  %v1525_v14 = vpop.f32.mrf.mxu0 }
 0x2cc   : > { %v1260_v16 = vpop.f32.mrf.mxu1  ;;  %v1209_v17 = vpop.f32.mrf.mxu0 }
 0x2cd   : > { %v1266_v19 = vadd.f32 %v1260_v16, %v1212_v15 }
 0x2ce   : > { %v1531_v20 = vpop.f32.mrf.mxu1  ;;  %v1526_v21 = vpop.f32.mrf.mxu0 }
 0x2cf   : > { %v1273_v22 = vadd.f32 %v1271_v18, %v1266_v19 }
 0x2d0   : > { %v1263_v23 = vpop.f32.mrf.mxu1 }
 0x2d1   : > { %v1274_v25 = vmax.f32 %v1273_v22, 0.0 }
 0x2d2   : > { %v1532_v26 = vpop.f32.mrf.mxu1 }
 0x2d3   : > { %v1276_v28 = vadd.f32 %v1275_v24, %v1274_v25 }
 0x2d5   : > { %v1283_v29 = vadd.f32 %v1281_v27, %v1276_v28 }
 0x2d7   : > { %1284 = vst [vmem:[%s2031_s30] sm:$0xff] %v1283_v29 }
 0x2d8   : > { %1621 = shalt.err (!%p1618_p5)
}
 0x2d9   : > { %s1622_s18 = scalar_lea.hbm %s1298_s23, 128  ;;  %s1626_s15 = scalar_lea.hbm %s2014_s7, 256 }
 0x2da   : > { %p1623_p6 = scmp.ne.s32.totalorder %s1298_s23, %s1622_s18  ;;  %p1627_p10 = scmp.lt.s32.totalorder %s1298_s23, %s2014_s7 }
 0x2db   : > { %p1628_p11 = scmp.lt.s32.totalorder %s1626_s15, %s1622_s18 }
 0x2dc   : > { %p1624_p7 = pnand %p1623_p6, %p1785_p4 }
 0x2dd   : > { %p1629_p12 = por %p1628_p11, %p1627_p10 }
 0x2de   : > { %p1625_p9 = pneg %p1624_p7 }
 0x2e0   : > { %p1630_p13 = pnand %p1629_p12, %p1625_p9 }
 0x2e2   : > { %1633 = shalt.err (!%p1630_p13)
}
 0x2e3   : > { %1533 = dma.vmem_to_hbm [thread:$0]  (%p1785_p4), %s1301_s12, 128, %s1298_s23, %s1286_s22  }
 0x2e4 PF: > { %p1539_p0 = scmp.ge.s32.totalorder %s1686_s29, 2  ;;  %s1312_s30 = sand.u32 1, %s1666_s24  }
 0x2e5   : > { %s1313_s21 = scalar_lea.sflag [#allocation5], %s1312_s30 }
 0x2e6   : > { %p1536_p1 = pnand %p1539_p0, %p1792_p8 }
 0x2e8   : > { %p1537_p2 = pneg %p1536_p1 }
 0x2ea   : > { %1661 = dma.done.wait (%p1537_p2), %s1313_s21, 128  }
 0x2eb   : > { %1663 = vsyncadd (%p1537_p2), %s1313_s21, 4294967168  ;;  %s20_s29 = sadd.s32 1, %s1686_s29   ;;  %s2033_s11 = sld [smem:[#allocation10_spill]] }
 0x2ec   : > { %p17_p3 = scmp.ge.s32.totalorder %s20_s29, 4   ;;  %s2034_s24 = smov %s1670_s25 }
 0x2ed   : > { %s2035_s25 = smov %s1674_s26  ;;  %s2036_s26 = smov %s1798_s14 }
 0x2ee   : > { %s2037_s27 = smov %s1682_s28  ;;  %19 = sbr.rel (!%p17_p3) target bundleno = 4 (0x4), region = 183 }
 0x2f1   : > { %s2038_s28 = smov %s2033_s11 }
 0x2f3   :  { %1318 = vsyncpa [#allocation5], 1 }
 0x2f4   :  { %1320 = vsyncpa [#allocation5 + $0x1], 1 }
 0x2f5   :  { %1321 = vsyncmov [#allocation3] }
 0x2f8   :  { %s1322_s13 = vpop.sfrf %1321 }
 0x2f9   :  { %p1472_p4 = scmp.ne.s32.totalorder %s1322_s13, 0 }
 0x2fb   :  { %1326 = shalt.err (%p1472_p4)  }
 0x2fc   :  { %1328 = vsyncmov [#allocation3 + $0x1] }
 0x2ff   :  { %s1329_s12 = vpop.sfrf %1328 }
 0x300   :  { %p1473_p8 = scmp.ne.s32.totalorder %s1329_s12, 0 }
 0x302   :  { %1333 = shalt.err (%p1473_p8)  }

</bundles_post_ra>
